<compile_context>
chip_gen: v6e
topology: v6e:2x2x1
jax: 0.10.0
libtpu: 0.0.40
codegen_flags: <defaults>
</compile_context>

<pallas_src>
import functools

import jax
import jax.numpy as jnp
from jax import lax
from jax.experimental import pallas as pl
from jax.experimental.pallas import tpu as pltpu


def pinn_kernel(x_ref, w1_ref, b1_ref, w2_ref, b2_ref, w3_ref, b3_ref,
                w4_ref, b4_ref, o_ref):
    """Fused 4-layer MLP on one (2, TILE_N) batch-on-lanes tile."""
    x = x_ref[...]            # (2, tile_n) f32, batch on the lane axis
    w1 = w1_ref[...]          # (64, 2)  PyTorch-native (out, in)
    b1 = b1_ref[...]          # (64, 1)  broadcasts along lanes for free

    # Layer 1: K=2 contraction as two VPU broadcast-FMAs (an MXU pass with a
    # 2-deep contraction would be pure waste).
    h = w1[:, 0:1] * x[0:1, :] + w1[:, 1:2] * x[1:2, :] + b1
    h = jnp.tanh(h)           # (64, tile_n), tanh goes to the EUP

    # Layer 2: (64, 64) @ (64, tile_n) on the MXU.
    h = jnp.dot(w2_ref[...], h, preferred_element_type=jnp.float32,
                precision=lax.Precision.HIGHEST) + b2_ref[...]
    h = jnp.tanh(h)

    # Layer 3: (32, 64) @ (64, tile_n).
    h = jnp.dot(w3_ref[...], h, preferred_element_type=jnp.float32,
                precision=lax.Precision.HIGHEST) + b3_ref[...]
    h = jnp.tanh(h)

    # Layer 4: (1, 32) @ (32, tile_n) -> lane-dense (1, tile_n) output tile.
    out = jnp.dot(w4_ref[...], h, preferred_element_type=jnp.float32,
                  precision=lax.Precision.HIGHEST) + b4_ref[...]
    o_ref[...] = out.astype(o_ref.dtype)
    # TODO(synk): optional bf16 tanh / bf16 matmul passes on v6e/v7x once PINN
    # accuracy at collocation points is validated; kept f32 so v5e is exact too.


@functools.partial(jax.jit, static_argnames=("tile_n",))
def pinn_forward(x, params, *, tile_n=1024):
    """x: (N, 2) float32. params: PyTorch-layout weights (out, in) / biases (out, 1)."""
    n, d_in = x.shape
    assert d_in == 2

    # Batch onto the lane axis, padded up to a multiple of tile_n.
    n_pad = -(-n // tile_n) * tile_n
    x_t = x.T
    if n_pad != n:
        x_t = jnp.pad(x_t, ((0, 0), (0, n_pad - n)))

    w1, b1 = params["w1"], params["b1"]   # (64, 2), (64, 1)
    w2, b2 = params["w2"], params["b2"]   # (64, 64), (64, 1)
    w3, b3 = params["w3"], params["b3"]   # (32, 64), (32, 1)
    w4, b4 = params["w4"], params["b4"]   # (1, 32),  (1, 1)

    # Constant block index -> weights stay resident in VMEM across grid steps.
    def full_spec(arr):
        return pl.BlockSpec(arr.shape, lambda i: (0, 0))

    grid = (n_pad // tile_n,)

    flops = 2 * n_pad * (2 * 64 + 64 * 64 + 64 * 32 + 32 * 1)
    transcendentals = n_pad * (64 + 64 + 32)
    bytes_accessed = 4 * (n_pad * (d_in + 1)
                          + 64 * 2 + 64 + 64 * 64 + 64 + 32 * 64 + 32 + 32 + 1)

    out = pl.pallas_call(
        pinn_kernel,
        out_shape=jax.ShapeDtypeStruct((1, n_pad), x.dtype),
        grid_spec=pl.GridSpec(
            grid=grid,
            in_specs=[
                pl.BlockSpec((d_in, tile_n), lambda i: (0, i)),  # lane-dense x tile
                full_spec(w1), full_spec(b1),
                full_spec(w2), full_spec(b2),
                full_spec(w3), full_spec(b3),
                full_spec(w4), full_spec(b4),
            ],
            out_specs=pl.BlockSpec((1, tile_n), lambda i: (0, i)),  # lane-dense store
        ),
        compiler_params=pltpu.CompilerParams(
            dimension_semantics=("parallel",),
        ),
        cost_estimate=pl.CostEstimate(
            flops=flops,
            transcendentals=transcendentals,
            bytes_accessed=bytes_accessed,
        ),
    )(x_t, w1, b1, w2, b2, w3, b3, w4, b4)

    return out[:, :n].T   # back to (N, 1), matching the PyTorch module


def init_params(key):
    """PyTorch nn.Linear-style init, stored in native (out, in) / (out, 1) layout."""
    dims = [(2, 64), (64, 64), (64, 32), (32, 1)]
    params = {}
    for idx, (fan_in, fan_out) in enumerate(dims, start=1):
        key, kw, kb = jax.random.split(key, 3)
        bound = 1.0 / jnp.sqrt(jnp.float32(fan_in))
        params[f"w{idx}"] = jax.random.uniform(
            kw, (fan_out, fan_in), jnp.float32, -bound, bound)
        params[f"b{idx}"] = jax.random.uniform(
            kb, (fan_out, 1), jnp.float32, -bound, bound)
    return params


def pinn_reference(x, params):
    """Pure-JAX reference mirroring the PyTorch forward (y = x @ W.T + b)."""
    hi = lax.Precision.HIGHEST
    h = jnp.tanh(jnp.dot(x, params["w1"].T, precision=hi) + params["b1"].T)
    h = jnp.tanh(jnp.dot(h, params["w2"].T, precision=hi) + params["b2"].T)
    h = jnp.tanh(jnp.dot(h, params["w3"].T, precision=hi) + params["b3"].T)
    return jnp.dot(h, params["w4"].T, precision=hi) + params["b4"].T


if __name__ == "__main__":
    key = jax.random.PRNGKey(0)
    key, kx = jax.random.split(key)

    N = 2048   # collocation points; tile_n=512 -> 4 grid tiles (>= 2 for v7x)
    x = jax.random.uniform(kx, (N, 2), jnp.float32, -1.0, 1.0)

    params = init_params(key)

    out = pinn_forward(x, params, tile_n=512)
    out = jax.block_until_ready(out)

    ref = pinn_reference(x, params)
    assert out.shape == (N, 1), out.shape
    assert jnp.allclose(out, ref, atol=1e-5, rtol=1e-5), float(
        jnp.max(jnp.abs(out - ref)))

    print("KERNEL_OK")
</pallas_src>

<mosaic_0001>
module attributes {stable_mosaic.version = 11 : i64} {
  func.func @pinn_kernel(%arg0: i32, %arg1: memref<2x512xf32, #tpu.memory_space<vmem>>, %arg2: memref<64x2xf32, #tpu.memory_space<vmem>>, %arg3: memref<64x1xf32, #tpu.memory_space<vmem>>, %arg4: memref<64x64xf32, #tpu.memory_space<vmem>>, %arg5: memref<64x1xf32, #tpu.memory_space<vmem>>, %arg6: memref<32x64xf32, #tpu.memory_space<vmem>>, %arg7: memref<32x1xf32, #tpu.memory_space<vmem>>, %arg8: memref<1x32xf32, #tpu.memory_space<vmem>>, %arg9: memref<1x1xf32, #tpu.memory_space<vmem>>, %arg10: memref<1x512xf32, #tpu.memory_space<vmem>>) attributes {dimension_semantics = [#tpu.dimension_semantics<parallel>], iteration_bounds = array<i64: 4>, scalar_prefetch = 0 : i64, scratch_operands = 0 : i64, tpu.core_type = #tpu.core_type<tc>, window_params = [{transform_indices = @transform_0, window_bounds = array<i64: 2, 512>}, {pipeline_mode = #tpu.pipeline_mode<synchronous>, transform_indices = @transform_1, window_bounds = array<i64: 64, 2>}, {pipeline_mode = #tpu.pipeline_mode<synchronous>, transform_indices = @transform_2, window_bounds = array<i64: 64, 1>}, {pipeline_mode = #tpu.pipeline_mode<synchronous>, transform_indices = @transform_3, window_bounds = array<i64: 64, 64>}, {pipeline_mode = #tpu.pipeline_mode<synchronous>, transform_indices = @transform_4, window_bounds = array<i64: 64, 1>}, {pipeline_mode = #tpu.pipeline_mode<synchronous>, transform_indices = @transform_5, window_bounds = array<i64: 32, 64>}, {pipeline_mode = #tpu.pipeline_mode<synchronous>, transform_indices = @transform_6, window_bounds = array<i64: 32, 1>}, {pipeline_mode = #tpu.pipeline_mode<synchronous>, transform_indices = @transform_7, window_bounds = array<i64: 1, 32>}, {pipeline_mode = #tpu.pipeline_mode<synchronous>, transform_indices = @transform_8, window_bounds = array<i64: 1, 1>}, {transform_indices = @transform_9, window_bounds = array<i64: 1, 512>}]} {
    %c0 = arith.constant 0 : index
    %c0_0 = arith.constant 0 : index
    %0 = vector.load %arg1[%c0, %c0_0] : memref<2x512xf32, #tpu.memory_space<vmem>>, vector<2x512xf32>
    %c0_1 = arith.constant 0 : index
    %c0_2 = arith.constant 0 : index
    %1 = vector.load %arg2[%c0_1, %c0_2] : memref<64x2xf32, #tpu.memory_space<vmem>>, vector<64x2xf32>
    %c0_3 = arith.constant 0 : index
    %c0_4 = arith.constant 0 : index
    %2 = vector.load %arg3[%c0_3, %c0_4] : memref<64x1xf32, #tpu.memory_space<vmem>>, vector<64x1xf32>
    %3 = vector.extract_strided_slice %1 {offsets = [0, 0], sizes = [64, 1], strides = [1, 1]} : vector<64x2xf32> to vector<64x1xf32>
    %4 = vector.extract_strided_slice %0 {offsets = [0, 0], sizes = [1, 512], strides = [1, 1]} : vector<2x512xf32> to vector<1x512xf32>
    %5 = vector.broadcast %3 : vector<64x1xf32> to vector<64x512xf32>
    %6 = vector.broadcast %4 : vector<1x512xf32> to vector<64x512xf32>
    %7 = arith.mulf %5, %6 : vector<64x512xf32>
    %8 = vector.extract_strided_slice %1 {offsets = [0, 1], sizes = [64, 1], strides = [1, 1]} : vector<64x2xf32> to vector<64x1xf32>
    %9 = vector.extract_strided_slice %0 {offsets = [1, 0], sizes = [1, 512], strides = [1, 1]} : vector<2x512xf32> to vector<1x512xf32>
    %10 = vector.broadcast %8 : vector<64x1xf32> to vector<64x512xf32>
    %11 = vector.broadcast %9 : vector<1x512xf32> to vector<64x512xf32>
    %12 = arith.mulf %10, %11 : vector<64x512xf32>
    %13 = arith.addf %7, %12 : vector<64x512xf32>
    %14 = vector.broadcast %2 : vector<64x1xf32> to vector<64x512xf32>
    %15 = arith.addf %13, %14 : vector<64x512xf32>
    %16 = math.tanh %15 : vector<64x512xf32>
    %c0_5 = arith.constant 0 : index
    %c0_6 = arith.constant 0 : index
    %17 = vector.load %arg4[%c0_5, %c0_6] : memref<64x64xf32, #tpu.memory_space<vmem>>, vector<64x64xf32>
    %cst = arith.constant dense<0.000000e+00> : vector<64x512xf32>
    %18 = tpu.matmul %17, %16, %cst {dimension_numbers = #tpu.dot_dimension_numbers<[1], [0], [0], [1], [0, 0, 1, 1], [], []>, precision = #tpu.contract_precision<fp32>} : vector<64x64xf32>, vector<64x512xf32>, vector<64x512xf32> -> vector<64x512xf32>
    %c0_7 = arith.constant 0 : index
    %c0_8 = arith.constant 0 : index
    %19 = vector.load %arg5[%c0_7, %c0_8] : memref<64x1xf32, #tpu.memory_space<vmem>>, vector<64x1xf32>
    %20 = vector.broadcast %19 : vector<64x1xf32> to vector<64x512xf32>
    %21 = arith.addf %18, %20 : vector<64x512xf32>
    %22 = math.tanh %21 : vector<64x512xf32>
    %c0_9 = arith.constant 0 : index
    %c0_10 = arith.constant 0 : index
    %23 = vector.load %arg6[%c0_9, %c0_10] : memref<32x64xf32, #tpu.memory_space<vmem>>, vector<32x64xf32>
    %cst_11 = arith.constant dense<0.000000e+00> : vector<32x512xf32>
    %24 = tpu.matmul %23, %22, %cst_11 {dimension_numbers = #tpu.dot_dimension_numbers<[1], [0], [0], [1], [0, 0, 1, 1], [], []>, precision = #tpu.contract_precision<fp32>} : vector<32x64xf32>, vector<64x512xf32>, vector<32x512xf32> -> vector<32x512xf32>
    %c0_12 = arith.constant 0 : index
    %c0_13 = arith.constant 0 : index
    %25 = vector.load %arg7[%c0_12, %c0_13] : memref<32x1xf32, #tpu.memory_space<vmem>>, vector<32x1xf32>
    %26 = vector.broadcast %25 : vector<32x1xf32> to vector<32x512xf32>
    %27 = arith.addf %24, %26 : vector<32x512xf32>
    %28 = math.tanh %27 : vector<32x512xf32>
    %c0_14 = arith.constant 0 : index
    %c0_15 = arith.constant 0 : index
    %29 = vector.load %arg8[%c0_14, %c0_15] : memref<1x32xf32, #tpu.memory_space<vmem>>, vector<1x32xf32>
    %cst_16 = arith.constant dense<0.000000e+00> : vector<1x512xf32>
    %30 = tpu.matmul %29, %28, %cst_16 {dimension_numbers = #tpu.dot_dimension_numbers<[1], [0], [0], [1], [0, 0, 1, 1], [], []>, precision = #tpu.contract_precision<fp32>} : vector<1x32xf32>, vector<32x512xf32>, vector<1x512xf32> -> vector<1x512xf32>
    %c0_17 = arith.constant 0 : index
    %c0_18 = arith.constant 0 : index
    %31 = vector.load %arg9[%c0_17, %c0_18] : memref<1x1xf32, #tpu.memory_space<vmem>>, vector<1x1xf32>
    %32 = vector.broadcast %31 : vector<1x1xf32> to vector<1x512xf32>
    %33 = arith.addf %30, %32 : vector<1x512xf32>
    %c0_19 = arith.constant 0 : index
    %c0_20 = arith.constant 0 : index
    %34 = vector.load %arg10[%c0_19, %c0_20] : memref<1x512xf32, #tpu.memory_space<vmem>>, vector<1x512xf32>
    tpu.vector_store %arg10[%c0_19, %c0_20], %33 {strides = array<i32>} : memref<1x512xf32, #tpu.memory_space<vmem>>, vector<1x512xf32>,
    return
  }
  func.func @transform_0(%arg0: i32) -> (i32, i32) {
    %c0_i32 = arith.constant 0 : i32
    %c0_i32_0 = arith.constant 0 : i32
    return %c0_i32, %arg0 : i32, i32
  }
  func.func @transform_1(%arg0: i32) -> (i32, i32) {
    %c0_i32 = arith.constant 0 : i32
    %c0_i32_0 = arith.constant 0 : i32
    %c0_i32_1 = arith.constant 0 : i32
    return %c0_i32, %c0_i32_0 : i32, i32
  }
  func.func @transform_2(%arg0: i32) -> (i32, i32) {
    %c0_i32 = arith.constant 0 : i32
    %c0_i32_0 = arith.constant 0 : i32
    %c0_i32_1 = arith.constant 0 : i32
    return %c0_i32, %c0_i32_0 : i32, i32
  }
  func.func @transform_3(%arg0: i32) -> (i32, i32) {
    %c0_i32 = arith.constant 0 : i32
    %c0_i32_0 = arith.constant 0 : i32
    %c0_i32_1 = arith.constant 0 : i32
    return %c0_i32, %c0_i32_0 : i32, i32
  }
  func.func @transform_4(%arg0: i32) -> (i32, i32) {
    %c0_i32 = arith.constant 0 : i32
    %c0_i32_0 = arith.constant 0 : i32
    %c0_i32_1 = arith.constant 0 : i32
    return %c0_i32, %c0_i32_0 : i32, i32
  }
  func.func @transform_5(%arg0: i32) -> (i32, i32) {
    %c0_i32 = arith.constant 0 : i32
    %c0_i32_0 = arith.constant 0 : i32
    %c0_i32_1 = arith.constant 0 : i32
    return %c0_i32, %c0_i32_0 : i32, i32
  }
  func.func @transform_6(%arg0: i32) -> (i32, i32) {
    %c0_i32 = arith.constant 0 : i32
    %c0_i32_0 = arith.constant 0 : i32
    %c0_i32_1 = arith.constant 0 : i32
    return %c0_i32, %c0_i32_0 : i32, i32
  }
  func.func @transform_7(%arg0: i32) -> (i32, i32) {
    %c0_i32 = arith.constant 0 : i32
    %c0_i32_0 = arith.constant 0 : i32
    %c0_i32_1 = arith.constant 0 : i32
    return %c0_i32, %c0_i32_0 : i32, i32
  }
  func.func @transform_8(%arg0: i32) -> (i32, i32) {
    %c0_i32 = arith.constant 0 : i32
    %c0_i32_0 = arith.constant 0 : i32
    %c0_i32_1 = arith.constant 0 : i32
    return %c0_i32, %c0_i32_0 : i32, i32
  }
  func.func @transform_9(%arg0: i32) -> (i32, i32) {
    %c0_i32 = arith.constant 0 : i32
    %c0_i32_0 = arith.constant 0 : i32
    return %c0_i32, %arg0 : i32, i32
  }
}

</mosaic_0001>

<bundles_post_ra>
// kernel: pinn_forward.1
= control target key start
LH: loop header
LB: loop body
LE: loop exit
PB: predicated region body
PF: predicated region fallthrough
CT: control target
= control target key end

     0   :  { %s8498_s0 = inlined_call_operand.vmem [shape: f32[2,2048], index: 0, kind: input, shape index: {}]   ;;  %s8499_s1 = inlined_call_operand.vmem [shape: f32[64,2], index: 1, kind: input, shape index: {}]   ;;  %s8500_s2 = inlined_call_operand.vmem [shape: f32[64,1], index: 2, kind: input, shape index: {}]   ;;  %s8501_s3 = inlined_call_operand.vmem [shape: f32[64,64], index: 3, kind: input, shape index: {}]   ;;  %s8502_s4 = inlined_call_operand.vmem [shape: f32[64,1], index: 4, kind: input, shape index: {}]   ;;  %s8503_s5 = inlined_call_operand.vmem [shape: f32[32,64], index: 5, kind: input, shape index: {}]   ;;  %s8504_s6 = inlined_call_operand.vmem [shape: f32[32,1], index: 6, kind: input, shape index: {}]   ;;  %s8505_s7 = inlined_call_operand.vmem [shape: f32[1,32], index: 7, kind: input, shape index: {}]   ;;  %s8506_s8 = inlined_call_operand.<no memory space> [shape: f32[1,1], index: 8, kind: input, shape index: {}]   ;;  %s8507_s9 = inlined_call_operand.hbm [shape: f32[1,2048], index: 9, kind: output, shape index: {}]  }
   0x1   :  { %v14_v0 = vstv %s8506_s8 }
   0x2   :  { %15 = vst [vmem:[#allocation2] sm:$0x1] %v14_v0 }
   0x3   :  { %16 = vsyncpa [#allocation4], 0 }
   0x4   :  { %18 = vsyncpa [#allocation4 + $0x1], 0  ;;  %s5991_s11 = smov 0   ;;  %s5993_s12 = smov 0  }
   0x5   :  { %s5995_s13 = smov 0   ;;  %s5997_s14 = smov 0  }
   0x6 LB: > { %s6012_s8 = sadd.s32 4294967295, %s5931_s14   ;;  %s5644_s15 = sadd.s32 4294967294, %s5931_s14   ;;  %s5931_s14 = sphi %s5997_s14, %s8828_s14   ;;  %s5927_s13 = sphi %s5995_s13, %s8827_s13   ;;  %s5923_s12 = sphi %s5993_s12, %s8826_s12   ;;  %s5919_s11 = sphi %s5991_s11, %s8825_s11  }
   0x7   : > { %s6016_s16 = sadd.s32 1, %s5931_s14   ;;  %s225_s17 = sadd.s32 1, %s5927_s13 }
   0x8   : > { %s222_s18 = ssub.s32 %s5931_s14, %s6016_s16  ;;  %p235_p0 = scmp.ne.s32.totalorder %s5927_s13, %s5923_s12 }
   0x9   : > { %p223_p1 = scmp.eq.s32.totalorder %s222_s18, 0  ;;  %p236_p2 = scmp.eq.s32.totalorder %s6012_s8, 3 }
   0xa   : > { %p241_p3 = scmp.ne.s32.totalorder %s5923_s12, %s5919_s11  ;;  %p242_p4 = scmp.eq.s32.totalorder %s5644_s15, 3 }
   0xb   : > { %s6027_s19 = scalar_select %p223_p1, %s5927_s13, %s225_s17  }
   0xc   : > { %p6029_p5 = por %p236_p2, %p235_p0  ;;  %p6033_p6 = por %p242_p4, %p241_p3 }
   0xd   : > { %p5647_p7 = scmp.ge.s32.totalorder %s5931_s14, 1  ;;  %p293_p8 = scmp.lt.s32.totalorder %s5931_s14, 5 }
   0xf   : > { %p294_p9 = pnand %p5647_p7, %p293_p8 }
  0x11   : > { %297 = sbr.rel (%p294_p9) target bundleno = 1209 (0x4b9), region = 56 }
  0x16   : > { %v344_v1 = vld [vmem:[%s8499_s1 + $0x38] sm:$0xff]  ;;  %v343_v2 = vld [vmem:[%s8499_s1 + $0x30] sm:$0xff]  ;;  %s5649_s26 = sshll.u32 %s6012_s8, 2  ;;  %v5933_v3 = vmov 1   ;;  %v5934_v4 = vmov 0   ;;  %v8508_v5 = vlaneseq  ;;  %v342_v6 = vld [vmem:[%s8499_s1 + $0x28] sm:$0xff] }
  0x17   : > { %5700 = vset.pattern.permute.xlu0 %v5933_v3  ;;  %5701 = vset.pattern.permute.xlu1 %v5934_v4  ;;  %p330_p10 = scmp.lt.s32.totalorder %s5649_s26, 15  ;;  %v339_v8 = vld [vmem:[%s8499_s1 + $0x10] sm:$0xff]  ;;  %v338_v12 = vld [vmem:[%s8499_s1 + $0x8] sm:$0xff]  ;;  %v352_v16 = vld [vmem:[%s8500_s2 + $0x38] sm:$0xff]  ;;  %v8518_v40 = vmov 0.0   ;;  %vm754_vm0 = vcmask 523264  }
  0x18   : > { %491 = vperm.xlu0 %5700, %v344_v1   ;;  %385 = vperm.xlu1 %5701, %v343_v2   ;;  %v6052_v7 = vshrl.u32 %v8508_v5, 7  ;;  %v341_v19 = vld [vmem:[%s8499_s1 + $0x20] sm:$0xff]  ;;  %v351_v20 = vld [vmem:[%s8500_s2 + $0x30] sm:$0xff]  ;;  %v340_v21 = vld [vmem:[%s8499_s1 + $0x18] sm:$0xff]  ;;  %vm4446_vm1 = vcmask 261120   ;;  %s326_s10 = sand.u32 1, %s5923_s12  }
  0x19   : > { %s8830_s26 = smov (!%p330_p10, %s5649_s26), 15  ;;  %v350_v22 = vld [vmem:[%s8500_s2 + $0x28] sm:$0xff]  ;;  %v337_v23 = vld [vmem:[%s8499_s1] sm:$0xff]  ;;  %v713_v26 = vld [vmem:[%s8502_s4 + $0x38] sm:$0xff]  ;;  %859 = vmatprep.mubr.f32.mxu0 %v8518_v40  ;;  %1092 = vmatprep.mubr.f32.mxu1 %v8518_v40  ;;  %s5648_s15 = sshll.u32 %s326_s10, 2 }
  0x1a   : > { %8578 = vst [vmem:[#allocation6_spill] sm:$0xff] %v6052_v7  ;;  %s5650_s29 = sshll.u32 %s8830_s26, 1  ;;  %v504_v9 = vsub.s32 5, %v6052_v7  ;;  %v508_v10 = vsub.s32 7, %v6052_v7  ;;  %v6070_v13 = vsub.s32 1, %v6052_v7  ;;  %v346_v24 = vld [vmem:[%s8500_s2 + $0x8] sm:$0xff] }
  0x1b   : > { %s333_s18 = scalar_lea.vmem %s8498_s0, %s5650_s29  ;;  %v349_v25 = vld [vmem:[%s8500_s2 + $0x20] sm:$0xff]  ;;  %v711_v27 = vld [vmem:[%s8502_s4 + $0x28] sm:$0xff]  ;;  %v348_v28 = vld [vmem:[%s8500_s2 + $0x18] sm:$0xff]  ;;  %v404_v43 = vsub.s32 4, %v6052_v7  ;;  %v408_v44 = vsub.s32 6, %v6052_v7  ;;  %v6163_v47 = vsub.s32 0, %v6052_v7 }
  0x1c   : > { %5702 = vset.pattern.permute.xlu1 %v5933_v3  ;;  %483 = vperm.xlu0 %5700, %v342_v6   ;;  %v6063_v11 = vld [vmem:[%s333_s18] sm:$0xff]  ;;  %v709_v29 = vld [vmem:[%s8502_s4 + $0x18] sm:$0xff]  ;;  %v707_v30 = vld [vmem:[%s8502_s4 + $0x8] sm:$0xff]  ;;  %v500_v60 = vsub.s32 3, %v6052_v7  ;;  %v400_v63 = vsub.s32 2, %v6052_v7  ;;  %s5656_s17 = sshll.u32 %s6012_s8, 6 }
  0x1d   : > { %487 = vperm.xlu1 %5702, %v343_v2   ;;  %v505_v14 = vrot.slane %v6063_v11, %v504_v9  ;;  %v509_v15 = vrot.slane %v6063_v11, %v508_v10  ;;  %v347_v31 = vld [vmem:[%s8500_s2 + $0x10] sm:$0xff]  ;;  %v2798_v32 = vld [vmem:[%s8504_s6 + $0x18] sm:$0xff]  ;;  %v345_v33 = vld [vmem:[%s8500_s2] sm:$0xff]  ;;  %v405_v45 = vrot.slane %v6063_v11, %v404_v43  ;;  %v409_v46 = vrot.slane %v6063_v11, %v408_v44  ;;  %s328_s18 = scalar_lea.vmem [#allocation3], %s5648_s15  ;;  %s5583_s25 = scalar_lea.hbm %s8507_s9, %s5656_s17 }
  0x1e   : > { %v2796_v34 = vld [vmem:[%s8504_s6 + $0x8] sm:$0xff]  ;;  %v712_v35 = vld [vmem:[%s8502_s4 + $0x30] sm:$0xff]  ;;  %v4436_v36 = vld [vmem:[#allocation2] sm:$0x1]  ;;  %8579 = vst [vmem:[#allocation7_spill] sm:$0xff] %v6163_v47  ;;  %v397_v10 = vrot.slane %v6063_v11, %v6163_v47  ;;  %s5585_s22 = sshll.u32 %s328_s18, 4  ;;  %s5586_s22 = int_to_ptr.vmem [resolvable:$true] %s5585_s22 }
  0x1f   : > { %v6078_v17 = vrot.slane %v505_v14, %v6070_v13  ;;  %v6081_v18 = vrot.slane %v509_v15, %v6070_v13  ;;  %v710_v37 = vld [vmem:[%s8502_s4 + $0x20] sm:$0xff]  ;;  %v708_v38 = vld [vmem:[%s8502_s4 + $0x10] sm:$0xff]  ;;  %v6166_v48 = vrot.slane %v405_v45, %v6163_v47  ;;  %v6169_v49 = vrot.slane %v409_v46, %v6163_v47  ;;  %s5571_s26 = scalar_lea.sflag [#allocation4], %s326_s10  ;;  %s5871_s27 = scalar_lea.vmem %s5586_s22, 64 }
  0x20   : > { %471 = vperm.xlu0 %5700, %v339_v8   ;;  %v706_v39 = vld [vmem:[%s8502_s4] sm:$0xff]  ;;  %v2797_v41 = vld [vmem:[%s8504_s6 + $0x10] sm:$0xff]  ;;  %v401_v15 = vrot.slane %v6063_v11, %v400_v63  ;;  %p5872_p11 = scmp.ne.s32.totalorder %s5586_s22, %s5871_s27  ;;  %s5937_s28 = smov [#allocation3]  }
  0x21   : > { %5703 = vset.pattern.permute.xlu1 %v5934_v4  ;;  %v2795_v42 = vld [vmem:[%s8504_s6] sm:$0xff]  ;;  %s5875_s8 = sshll.u32 %s5937_s28, 4  ;;  %s5876_s8 = int_to_ptr.vmem [resolvable:$false] %s5875_s8 }
  0x22   : > { %380 = vperm.xlu1 %5703, %v342_v6   ;;  %v497_v6 = vrot.slane %v6063_v11, %v6070_v13  ;;  %p5873_p12 = pnand %p5872_p11, %p6029_p5  ;;  %s5877_s29 = scalar_lea.vmem %s5876_s8, 128 }
  0x23   : > { %p5878_p0 = scmp.lt.s32.totalorder %s5586_s22, %s5876_s8  ;;  %p5879_p1 = scmp.lt.s32.totalorder %s5877_s29, %s5871_s27 }
  0x24   : > { %467 = vperm.xlu0 %5700, %v338_v12   ;;  %p5874_p13 = pneg %p5873_p12 }
  0x25   : > { %p5880_p2 = por %p5879_p1, %p5878_p0 }
  0x26   : > { %631 = vperm.xlu1 %5703, %v352_v16  }
  0x27   : > { %p5881_p3 = pnand %p5880_p2, %p5874_p13 }
  0x28   : > { %5708 = vset.pattern.permute.xlu0 %v5934_v4 }
  0x29   : > { %390 = vperm.xlu0 %5708, %v344_v1  }
  0x2a   : > { %5704 = vset.pattern.permute.xlu1 %v5933_v3 }
  0x2b   : > { %479 = vperm.xlu1 %5704, %v341_v19  }
  0x2d   : > { %375 = vperm.xlu0 %5708, %v341_v19  }
  0x2f   : > { %5705 = vset.pattern.permute.xlu1 %v5934_v4 }
  0x30   : > { %626 = vperm.xlu1 %5705, %v351_v20  }
  0x31   : > { %370 = vperm.xlu0 %5708, %v340_v21  }
  0x34   : > { %5706 = vset.pattern.permute.xlu1 %v5933_v3 }
  0x35   : > { %475 = vperm.xlu1 %5706, %v340_v21   ;;  %621 = vperm.xlu0 %5708, %v350_v22   ;;  %v6210_v21 = vrot.slane %v497_v6, %v6070_v13 }
  0x39   : > { %5707 = vset.pattern.permute.xlu1 %v5934_v4  ;;  %355 = vperm.xlu0 %5708, %v337_v23  }
  0x3a   : > { %365 = vperm.xlu1 %5707, %v339_v8   ;;  %v501_v8 = vrot.slane %v6063_v11, %v500_v60  ;;  %v6216_v11 = vrot.slane %v397_v10, %v6163_v47 }
  0x3c   : > { %v6213_v22 = vrot.slane %v501_v8, %v6070_v13 }
  0x3d   : > { %601 = vperm.xlu0 %5708, %v346_v24  }
  0x3e   : > { %616 = vperm.xlu1 %5707, %v349_v25  }
  0x41   : > { %751 = vperm.xlu0 %5708, %v713_v26   ;;  %v6219_v26 = vrot.slane %v401_v15, %v6163_v47 }
  0x42   : > { %360 = vperm.xlu1 %5707, %v338_v12  }
  0x45   : > { %741 = vperm.xlu0 %5708, %v711_v27  }
  0x46   : > { %611 = vperm.xlu1 %5707, %v348_v28  }
  0x49   : > { %731 = vperm.xlu0 %5708, %v709_v29  }
  0x4a   : > { %5709 = vset.pattern.permute.xlu1 %v5933_v3 }
  0x4b   : > { %463 = vperm.xlu1 %5709, %v337_v23  }
  0x4d   : > { %721 = vperm.xlu0 %5708, %v707_v30  }
  0x4f   : > { %5710 = vset.pattern.permute.xlu1 %v5934_v4 }
  0x50   : > { %606 = vperm.xlu1 %5710, %v347_v31  }
  0x51   : > { %2816 = vperm.xlu0 %5708, %v2798_v32  }
  0x54   : > { %596 = vperm.xlu1 %5710, %v345_v33  }
  0x55   : > { %2806 = vperm.xlu0 %5708, %v2796_v34  }
  0x58   : > { %746 = vperm.xlu1 %5710, %v712_v35  }
  0x59   : > { %4439 = vperm.xlu0 %5708, %v4436_v36  }
  0x5c   : > { %736 = vperm.xlu1 %5710, %v710_v37  }
  0x60   : > { %726 = vperm.xlu1 %5710, %v708_v38  }
  0x64   : > { %716 = vperm.xlu1 %5710, %v706_v39  }
  0x68   : > { %2811 = vperm.xlu1 %5710, %v2797_v41  }
  0x6c   : > { %2801 = vperm.xlu1 %5710, %v2795_v42  }
  0x93   : > { %v386_v50 = vpop.permute.xlu1 %385  ;;  %v492_v51 = vpop.permute.xlu0 %491 }
  0x94   : > { %v456_v52 = vmul.f32 %v6166_v48, %v386_v50  ;;  %v457_v53 = vmul.f32 %v6169_v49, %v386_v50  ;;  %v560_v54 = vmul.f32 %v6078_v17, %v492_v51  ;;  %v561_v55 = vmul.f32 %v6081_v18, %v492_v51 }
  0x95   : > { %v558_v27 = vmul.f32 %v6210_v21, %v492_v51  ;;  %v559_v28 = vmul.f32 %v6213_v22, %v492_v51  ;;  %v454_v33 = vmul.f32 %v6216_v11, %v386_v50  ;;  %v455_v42 = vmul.f32 %v6219_v26, %v386_v50 }
  0x97   : > { %v484_v56 = vpop.permute.xlu0 %483 }
  0x98   : > { %v488_v57 = vpop.permute.xlu1 %487  ;;  %v552_v58 = vmul.f32 %v6078_v17, %v484_v56  ;;  %v553_v59 = vmul.f32 %v6081_v18, %v484_v56  ;;  %v550_v43 = vmul.f32 %v6210_v21, %v484_v56  ;;  %v551_v50 = vmul.f32 %v6213_v22, %v484_v56 }
  0x99   : > { %v556_v61 = vmul.f32 %v6078_v17, %v488_v57  ;;  %v557_v62 = vmul.f32 %v6081_v18, %v488_v57  ;;  %v554_v34 = vmul.f32 %v6210_v21, %v488_v57  ;;  %v555_v35 = vmul.f32 %v6213_v22, %v488_v57 }
  0x9b   : > { %v6181_v0 = vpop.permute.xlu0 %471  ;;  %v588_v1 = vadd.f32 %v556_v61, %v456_v52  ;;  %v589_v2 = vadd.f32 %v557_v62, %v457_v53 }
  0x9c   : > { %v6185_v3 = vmul.f32 %v6078_v17, %v6181_v0  ;;  %v6189_v4 = vmul.f32 %v6081_v18, %v6181_v0 }
  0x9d   : > { %v381_v9 = vpop.permute.xlu1 %380 }
  0x9e   : > { %v452_v12 = vmul.f32 %v6166_v48, %v381_v9  ;;  %v453_v14 = vmul.f32 %v6169_v49, %v381_v9  ;;  %v450_v60 = vmul.f32 %v6216_v11, %v381_v9  ;;  %v451_v61 = vmul.f32 %v6219_v26, %v381_v9 }
  0x9f   : > { %v6199_v16 = vpop.permute.xlu0 %467 }
  0xa0   : > { %v6203_v19 = vmul.f32 %v6078_v17, %v6199_v16  ;;  %v6207_v20 = vmul.f32 %v6081_v18, %v6199_v16  ;;  %v584_v24 = vadd.f32 %v552_v58, %v452_v12  ;;  %v585_v25 = vadd.f32 %v553_v59, %v453_v14 }
  0xa1   : > { %v632_v23 = vpop.permute.xlu1 %631  ;;  %v587_v59 = vadd.f32 %v555_v35, %v455_v42 }
  0xa4   : > { %v391_v29 = vpop.permute.xlu0 %390 }
  0xa5   : > { %v458_v30 = vmul.f32 %v6216_v11, %v391_v29  ;;  %v459_v31 = vmul.f32 %v6219_v26, %v391_v29  ;;  %v460_v13 = vmul.f32 %v6166_v48, %v391_v29  ;;  %v461_v32 = vmul.f32 %v6169_v49, %v391_v29 }
  0xa6   : > { %v480_v36 = vpop.permute.xlu1 %479  ;;  %v583_v29 = vadd.f32 %v551_v50, %v451_v61 }
  0xa7   : > { %v590_v37 = vadd.f32 %v558_v27, %v458_v30  ;;  %v591_v38 = vadd.f32 %v559_v28, %v459_v31  ;;  %v592_v39 = vadd.f32 %v560_v54, %v460_v13  ;;  %v593_v41 = vadd.f32 %v561_v55, %v461_v32 }
  0xa8   : > { %v548_v44 = vmul.f32 %v6078_v17, %v480_v36  ;;  %v549_v45 = vmul.f32 %v6081_v18, %v480_v36  ;;  %v376_v46 = vpop.permute.xlu0 %375  ;;  %v586_v55 = vadd.f32 %v554_v34, %v454_v33  ;;  %v582_v28 = vadd.f32 %v550_v43, %v450_v60 }
  0xa9   : > { %v662_v51 = vadd.f32 %v632_v23, %v590_v37  ;;  %v663_v52 = vadd.f32 %v632_v23, %v591_v38  ;;  %v6234_v53 = vadd.f32 %v632_v23, %v592_v39  ;;  %v6236_v58 = vadd.f32 %v632_v23, %v593_v41  ;;  %v698_v39 = vld [vmem:[%s8501_s3] sm:$0xff] }
  0xaa   : > { %v448_v57 = vmul.f32 %v6166_v48, %v376_v46  ;;  %v449_v54 = vmul.f32 %v6169_v49, %v376_v46  ;;  %v447_v34 = vmul.f32 %v6219_v26, %v376_v46  ;;  %v546_v41 = vmul.f32 %v6210_v21, %v480_v36 }
  0xab   : > { %5711 = vtanh.f32 %v662_v51  ;;  %v627_v62 = vpop.permute.xlu1 %626  ;;  %v547_v42 = vmul.f32 %v6213_v22, %v480_v36  ;;  %v6284_v51 = vsel %vm754_vm0, %v698_v39, 0 }
  0xac   : > { %5713 = vtanh.f32 %v663_v52  ;;  %v658_v63 = vadd.f32 %v627_v62, %v586_v55  ;;  %v659_v6 = vadd.f32 %v627_v62, %v587_v59  ;;  %v6243_v8 = vadd.f32 %v627_v62, %v588_v1  ;;  %v371_v10 = vpop.permute.xlu0 %370 }
  0xad   : > { %v6245_v12 = vadd.f32 %v627_v62, %v589_v2  ;;  %v444_v14 = vmul.f32 %v6166_v48, %v371_v10  ;;  %v445_v15 = vmul.f32 %v6169_v49, %v371_v10  ;;  %v580_v56 = vadd.f32 %v548_v44, %v448_v57 }
  0xae   : > { %5715 = vtanh.f32 %v658_v63  ;;  %v581_v23 = vadd.f32 %v549_v45, %v449_v54  ;;  %v446_v2 = vmul.f32 %v6216_v11, %v376_v46  ;;  %v442_v44 = vmul.f32 %v6216_v11, %v371_v10 }
  0xaf   : > { %5717 = vtanh.f32 %v659_v6  ;;  %v443_v57 = vmul.f32 %v6219_v26, %v371_v10  ;;  %v579_v55 = vadd.f32 %v547_v42, %v447_v34 }
  0xb0   : > { %v476_v27 = vpop.permute.xlu1 %475  ;;  %v622_v9 = vpop.permute.xlu0 %621  ;;  %v578_v54 = vadd.f32 %v546_v41, %v446_v2 }
  0xb1   : > { %v544_v30 = vmul.f32 %v6078_v17, %v476_v27  ;;  %v545_v1 = vmul.f32 %v6081_v18, %v476_v27  ;;  %v654_v31 = vadd.f32 %v622_v9, %v582_v28  ;;  %v655_v13 = vadd.f32 %v622_v9, %v583_v29 }
  0xb2   : > { %v6252_v32 = vadd.f32 %v622_v9, %v584_v24  ;;  %v6254_v33 = vadd.f32 %v622_v9, %v585_v25  ;;  %v542_v36 = vmul.f32 %v6210_v21, %v476_v27  ;;  %v543_v50 = vmul.f32 %v6213_v22, %v476_v27 }
  0xb3   : > { %5719 = vtanh.f32 %v654_v31  ;;  %v6259_v37 = vadd.f32 %v544_v30, %v444_v14  ;;  %v6261_v38 = vadd.f32 %v545_v1, %v445_v15  ;;  %v6303_v9 = vmul.f32 %v6210_v21, %v6181_v0 }
  0xb4   : > { %8580 = vst [vmem:[#allocation8_spill] sm:$0xff] %v6252_v32  ;;  %8581 = vst [vmem:[#allocation9_spill] sm:$0xff] %v6254_v33  ;;  %v6257_v35 = vpop.permute.xlu0 %355  ;;  %5721 = vtanh.f32 %v655_v13  ;;  %v6307_v27 = vmul.f32 %v6213_v22, %v6181_v0  ;;  %v574_v29 = vadd.f32 %v542_v36, %v442_v44  ;;  %v575_v39 = vadd.f32 %v543_v50, %v443_v57 }
  0xb5   : > { %v6268_v24 = vmul.f32 %v6166_v48, %v6257_v35  ;;  %v6270_v25 = vpop.permute.xlu1 %365  ;;  %v6276_v43 = vmul.f32 %v6169_v49, %v6257_v35  ;;  %v6331_v41 = vmul.f32 %v6216_v11, %v6257_v35 }
  0xb6   : > { %v440_v45 = vmul.f32 %v6166_v48, %v6270_v25  ;;  %v441_v46 = vmul.f32 %v6169_v49, %v6270_v25 }
  0xb8   : > { %v5712_v52 = vpop.eup %5711  ;;  %v6292_v62 = vadd.f32 %v6185_v3, %v440_v45  ;;  %v6295_v63 = vadd.f32 %v6189_v4, %v441_v46  ;;  %v602_v57 = vpop.permute.xlu0 %601 }
  0xb9   : > { %v5714_v59 = vpop.eup %5713  ;;  %v617_v60 = vpop.permute.xlu1 %616  ;;  %v6289_v61 = vand.u32 4294901760, %v5712_v52 }
  0xba   : > { %v650_v6 = vadd.f32 %v617_v60, %v578_v54  ;;  %v651_v14 = vadd.f32 %v617_v60, %v579_v55  ;;  %v6297_v15 = vadd.f32 %v617_v60, %v580_v56  ;;  %v6299_v10 = vadd.f32 %v617_v60, %v581_v23 }
  0xbb   : > { %v6309_v28 = vand.u32 4294901760, %v5714_v59  ;;  %v6312_v3 = vsub.f32 %v5712_v52, %v6289_v61  ;;  %v5716_v4 = vpop.eup %5715  ;;  %v534_v56 = vmul.f32 %v6210_v21, %v6199_v16  ;;  %v535_v23 = vmul.f32 %v6213_v22, %v6199_v16 }
  0xbc   : > { %8582 = vst [vmem:[#allocation10_spill] sm:$0xff] %v6297_v15  ;;  %8583 = vst [vmem:[#allocation11_spill] sm:$0xff] %v6299_v10  ;;  %5723 = vtanh.f32 %v650_v6  ;;  %v5718_v30 = vpop.eup %5717  ;;  %v6319_v1 = vand.u32 4294901760, %v5716_v4  ;;  %v431_v6 = vmul.f32 %v6219_v26, %v6257_v35 }
  0xbd   : > { %5725 = vtanh.f32 %v651_v14  ;;  %796 = vmatprep.subr.mxu0 %v6309_v28  ;;  %v361_v0 = vpop.permute.xlu1 %360  ;;  %v6322_v31 = vsub.f32 %v5714_v59, %v6309_v28  ;;  %v8515_v13 = vand.u32 4294901760, %v6312_v3  ;;  %v6334_v44 = vand.u32 4294901760, %v5718_v30 }
  0xbe   : > { %798 = vmatpush1.msra.mxu0 %v6289_v61  ;;  %v434_v2 = vmul.f32 %v6216_v11, %v361_v0  ;;  %v435_v16 = vmul.f32 %v6219_v26, %v361_v0  ;;  %v436_v34 = vmul.f32 %v6166_v48, %v361_v0  ;;  %v437_v42 = vmul.f32 %v6169_v49, %v361_v0 }
  0xbf   : > { %v8517_v45 = vand.u32 4294901760, %v6322_v31  ;;  %v973_v54 = vsub.f32 %v6312_v3, %v8515_v13  ;;  %800 = vmatprep.subr.mxu0 %v6334_v44  ;;  %v6347_v50 = vsub.f32 %v5718_v30, %v6334_v44 }
  0xc0   : > { %v566_v46 = vadd.f32 %v534_v56, %v434_v2  ;;  %v567_v52 = vadd.f32 %v535_v23, %v435_v16  ;;  %v568_v36 = vadd.f32 %v6203_v19, %v436_v34  ;;  %v5720_v48 = vpop.eup %5719  ;;  %v569_v55 = vadd.f32 %v6207_v20, %v437_v42  ;;  %802 = vmatpush1.msra.mxu0 %v6319_v1 }
  0xc1   : > { %v612_v59 = vpop.permute.xlu1 %611  ;;  %v967_v49 = vsub.f32 %v6322_v31, %v8517_v45  ;;  %v6350_v19 = vsub.f32 %v5716_v4, %v6319_v1  ;;  %v5722_v60 = vpop.eup %5721  ;;  %v438_v20 = vmul.f32 %v6216_v11, %v6270_v25  ;;  %v6369_v34 = vand.u32 4294901760, %v5720_v48 }
  0xc2   : > { %v638_v14 = vadd.f32 %v602_v57, %v566_v46  ;;  %v6356_v56 = vadd.f32 %v602_v57, %v568_v36  ;;  %v639_v23 = vadd.f32 %v602_v57, %v567_v52  ;;  %v6359_v0 = vadd.f32 %v602_v57, %v569_v55 }
  0xc3   : > { %v6362_v30 = vadd.f32 %v612_v59, %v6259_v37  ;;  %v6365_v4 = vadd.f32 %v612_v59, %v6261_v38  ;;  %v646_v2 = vadd.f32 %v612_v59, %v574_v29  ;;  %v6367_v16 = vand.u32 4294901760, %v5722_v60 }
  0xc4   : > { %8584 = vst [vmem:[#allocation12_spill] sm:$0xff] %v6356_v56  ;;  %8585 = vst [vmem:[#allocation13_spill] sm:$0xff] %v6359_v0  ;;  %v968_v35 = vand.u32 4294901760, %v967_v49  ;;  %v647_v11 = vadd.f32 %v612_v59, %v575_v39  ;;  %v974_v42 = vand.u32 4294901760, %v973_v54  ;;  %v8514_v46 = vand.u32 4294901760, %v6347_v50 }
  0xc5   : > { %8586 = vst [vmem:[#allocation14_spill] sm:$0xff] %v6362_v30  ;;  %8587 = vst [vmem:[#allocation15_spill] sm:$0xff] %v6365_v4  ;;  %v8513_v52 = vand.u32 4294901760, %v6350_v19  ;;  %v439_v36 = vmul.f32 %v6219_v26, %v6270_v25  ;;  %5727 = vtanh.f32 %v638_v14  ;;  %804 = vmatprep.subr.mxu0 %v6367_v16  ;;  %v6377_v38 = vsub.f32 %v5722_v60, %v6367_v16 }
  0xc6   : > { %969 = vmatprep.subr.mxu1 %v968_v35  ;;  %v464_v37 = vpop.permute.xlu1 %463  ;;  %v6380_v29 = vsub.f32 %v5720_v48, %v6369_v34  ;;  %5729 = vtanh.f32 %v639_v23  ;;  %806 = vmatpush1.msra.mxu0 %v6369_v34  ;;  %v570_v26 = vadd.f32 %v6303_v9, %v438_v20  ;;  %v979_v57 = vsub.f32 %v6347_v50, %v8514_v46 }
  0xc7   : > { %975 = vmatpush1.msra.mxu1 %v974_v42  ;;  %v530_v39 = vmul.f32 %v6210_v21, %v464_v37  ;;  %v532_v54 = vmul.f32 %v6078_v17, %v464_v37  ;;  %5731 = vtanh.f32 %v646_v2  ;;  %v533_v25 = vmul.f32 %v6081_v18, %v464_v37 }
  0xc8   : > { %v985_v48 = vsub.f32 %v6350_v19, %v8513_v52  ;;  %5733 = vtanh.f32 %v647_v11  ;;  %v531_v59 = vmul.f32 %v6213_v22, %v464_v37  ;;  %v8512_v21 = vand.u32 4294901760, %v6377_v38 }
  0xc9   : > { %v5724_v55 = vpop.eup %5723  ;;  %v8511_v17 = vand.u32 4294901760, %v6380_v29  ;;  %v980_v49 = vand.u32 4294901760, %v979_v57  ;;  %v571_v18 = vadd.f32 %v6307_v27, %v439_v36  ;;  %v562_v35 = vadd.f32 %v530_v39, %v6331_v41 }
  0xca   : > { %v5726_v9 = vpop.eup %5725  ;;  %v986_v60 = vand.u32 4294901760, %v985_v48  ;;  %v6397_v20 = vand.u32 4294901760, %v5724_v55  ;;  %v991_v23 = vsub.f32 %v6377_v38, %v8512_v21  ;;  %v563_v48 = vadd.f32 %v531_v59, %v431_v6  ;;  %v699_v6 = vld [vmem:[%s8501_s3 + $0x8] sm:$0xff] }
  0xcb   : > { %v607_v14 = vpop.permute.xlu1 %606  ;;  %v6402_v2 = vand.u32 4294901760, %v5726_v9  ;;  %v997_v22 = vsub.f32 %v6380_v29, %v8511_v17  ;;  %981 = vmatprep.subr.mxu1 %v980_v49  ;;  %v564_v5 = vadd.f32 %v532_v54, %v6268_v24  ;;  %v565_v41 = vadd.f32 %v533_v25, %v6276_v43 }
  0xcc   : > { %v642_v11 = vadd.f32 %v607_v14, %v570_v26  ;;  %v643_v42 = vadd.f32 %v607_v14, %v571_v18  ;;  %v6409_v27 = vadd.f32 %v607_v14, %v6292_v62  ;;  %v6412_v36 = vadd.f32 %v607_v14, %v6295_v63  ;;  %987 = vmatpush1.msra.mxu1 %v986_v60 }
  0xcd   : > { %v992_v37 = vand.u32 4294901760, %v991_v23  ;;  %808 = vmatprep.subr.mxu0 %v6402_v2  ;;  %v998_v57 = vand.u32 4294901760, %v997_v22  ;;  %v6419_v39 = vsub.f32 %v5726_v9, %v6402_v2  ;;  %v6422_v62 = vsub.f32 %v5724_v55, %v6397_v20  ;;  %v700_v23 = vld [vmem:[%s8501_s3 + $0x10] sm:$0xff] }
  0xce   : > { %8588 = vst [vmem:[#allocation16_spill] sm:$0xff] %v6409_v27  ;;  %8589 = vst [vmem:[#allocation17_spill] sm:$0xff] %v6412_v36  ;;  %5735 = vtanh.f32 %v642_v11  ;;  %810 = vmatpush1.msra.mxu0 %v6397_v20  ;;  %v6430_v43 = vand.u32 4294901760, %v6284_v51  ;;  %v759_v9 = vsel %vm754_vm0, %v699_v6, 0 }
  0xcf   : > { %5737 = vtanh.f32 %v643_v42  ;;  %993 = vmatprep.subr.mxu1 %v992_v37  ;;  %v597_v63 = vpop.permute.xlu1 %596  ;;  %v8510_v55 = vand.u32 4294901760, %v6419_v39  ;;  %v8509_v59 = vand.u32 4294901760, %v6422_v62  ;;  %v6450_v42 = vand.u32 4294901760, %v759_v9 }
  0xd0   : > { %999 = vmatpush1.msra.mxu1 %v998_v57  ;;  %v634_v24 = vadd.f32 %v597_v63, %v562_v35  ;;  %v635_v54 = vadd.f32 %v597_v63, %v563_v48  ;;  %v6427_v26 = vadd.f32 %v597_v63, %v564_v5  ;;  %v6432_v25 = vadd.f32 %v597_v63, %v565_v41 }
  0xd1   : > { %v1003_v60 = vsub.f32 %v6419_v39, %v8510_v55  ;;  %v1009_v5 = vsub.f32 %v6422_v62, %v8509_v59  ;;  %v6445_v14 = vsub.f32 %v6284_v51, %v6430_v43  ;;  %8592 = vst [vmem:[#allocation20_spill] sm:$0xff] %v6450_v42  ;;  %v762_v51 = vsel %vm754_vm0, %v700_v23, 0 }
  0xd2   : > { %8590 = vst [vmem:[#allocation18_spill] sm:$0xff] %v6427_v26  ;;  %8591 = vst [vmem:[#allocation19_spill] sm:$0xff] %v6432_v25  ;;  %5739 = vtanh.f32 %v634_v24  ;;  %v5728_v49 = vpop.eup %5727  ;;  %v6476_v23 = vand.u32 4294901760, %v762_v51 }
  0xd3   : > { %5741 = vtanh.f32 %v635_v54  ;;  %v5730_v18 = vpop.eup %5729  ;;  %v1004_v35 = vand.u32 4294901760, %v1003_v60  ;;  %v1010_v11 = vand.u32 4294901760, %v1009_v5  ;;  %v6462_v6 = vand.u32 4294901760, %v5728_v49 }
  0xd4   : > { %v5732_v22 = vpop.eup %5731  ;;  %v6456_v41 = vand.u32 4294901760, %v5730_v18  ;;  %v6465_v24 = vand.u32 4294901760, %v6445_v14  ;;  %v6472_v60 = vsub.f32 %v759_v9, %v6450_v42  ;;  %v6508_v40 = vsub.f32 %v762_v51, %v6476_v23 }
  0xd5   : > { %v5734_v37 = vpop.eup %5733  ;;  %v6452_v57 = vand.u32 4294901760, %v5732_v22  ;;  %1005 = vmatprep.subr.mxu1 %v1004_v35  ;;  %v6493_v21 = vsub.f32 %v5728_v49, %v6462_v6  ;;  %5743 = vtanh.f32 %v6236_v58  ;;  %v8614_v58 = vand.u32 4294901760, %v6350_v19 }
  0xd6   : > { %v6454_v48 = vand.u32 4294901760, %v5734_v37  ;;  %1011 = vmatpush1.msra.mxu1 %v1010_v11  ;;  %v6483_v59 = vsub.f32 %v5730_v18, %v6456_v41  ;;  %v863_v17 = vsub.f32 %v6445_v14, %v6465_v24  ;;  %v6501_v18 = vand.u32 4294901760, %v6472_v60 }
  0xd7   : > { %v6460_v63 = vsub.f32 %v5732_v22, %v6452_v57  ;;  %v701_v22 = vld [vmem:[%s8501_s3 + $0x18] sm:$0xff]  ;;  %v6541_v0 = vand.u32 4294901760, %v6508_v40  ;;  %v8597_v30 = vand.u32 4294901760, %v6493_v21  ;;  %5745 = vtanh.f32 %v6234_v53 }
  0xd8   : > { %812 = vmatprep.subr.mxu0 %v6454_v48  ;;  %v6469_v54 = vsub.f32 %v5734_v37, %v6454_v48  ;;  %v765_v13 = vsel %vm754_vm0, %v701_v22, 0  ;;  %v6528_v47 = vand.u32 4294901760, %v863_v17  ;;  %5747 = vtanh.f32 %v6245_v12  ;;  %v8625_v12 = vld [vmem:[#allocation9_spill] sm:$0xff] }
  0xd9   : > { %814 = vmatpush1.msra.mxu0 %v6452_v57  ;;  %v8516_v5 = vand.u32 4294901760, %v6460_v63  ;;  %v6520_v51 = vand.u32 4294901760, %v765_v13  ;;  %8595 = vst [vmem:[#allocation22_spill] sm:$0xff] %v6541_v0  ;;  %v1045_v4 = vsub.f32 %v6493_v21, %v8597_v30  ;;  %v8599_v30 = vmov 0.0  }
  0xda   : > { %v8521_v11 = vand.u32 4294901760, %v6469_v54  ;;  %8593 = vst [vmem:[#allocation21_spill] sm:$0xff] %v6528_v47  ;;  %v885_v10 = vsub.f32 %v6508_v40, %v6541_v0  ;;  %5749 = vtanh.f32 %v6243_v8  ;;  %v8624_v53 = vand.u32 4294901760, %v6493_v21 }
  0xdb   : > { %v5736_v35 = vpop.eup %5735  ;;  %v1021_v9 = vsub.f32 %v6460_v63, %v8516_v5  ;;  %v1046_v33 = vand.u32 4294901760, %v1045_v4  ;;  %5751 = vtanh.f32 %v8625_v12 }
  0xdc   : > { %v5738_v37 = vpop.eup %5737  ;;  %v6488_v55 = vand.u32 4294901760, %v5736_v35  ;;  %v1015_v52 = vsub.f32 %v6469_v54, %v8521_v11 }
  0xdd   : > { %v6498_v46 = vand.u32 4294901760, %v5738_v37  ;;  %v1022_v5 = vand.u32 4294901760, %v1021_v9 }
  0xde   : > { %v6505_v45 = vsub.f32 %v5736_v35, %v6488_v55  ;;  %v1016_v7 = vand.u32 4294901760, %v1015_v52  ;;  %v702_v52 = vld [vmem:[%s8501_s3 + $0x20] sm:$0xff]  ;;  %v874_v35 = vsub.f32 %v6472_v60, %v6501_v18 }
  0xdf   : > { %v5740_v49 = vpop.eup %5739  ;;  %816 = vmatprep.subr.mxu0 %v6498_v46  ;;  %v6512_v11 = vsub.f32 %v5738_v37, %v6498_v46 }
  0xe0   : > { %v5742_v26 = vpop.eup %5741  ;;  %818 = vmatpush1.msra.mxu0 %v6488_v55  ;;  %v6516_v22 = vand.u32 4294901760, %v5740_v49  ;;  %1017 = vmatprep.subr.mxu1 %v1016_v7  ;;  %v8594_v9 = vand.u32 4294901760, %v6505_v45 }
  0xe1   : > { %820 = vmatprep.subr.mxu0 %v6456_v41  ;;  %v6526_v37 = vand.u32 4294901760, %v5742_v26  ;;  %v8523_v25 = vand.u32 4294901760, %v6512_v11  ;;  %1023 = vmatpush1.msra.mxu1 %v1022_v5  ;;  %v8596_v5 = vand.u32 4294901760, %v6483_v59 }
  0xe2   : > { %822 = vmatpush1.msra.mxu0 %v6462_v6  ;;  %v1033_v56 = vsub.f32 %v6505_v45, %v8594_v9  ;;  %v6538_v7 = vsub.f32 %v5740_v49, %v6516_v22  ;;  %v768_v9 = vsel %vm754_vm0, %v702_v52, 0  ;;  %v6567_v52 = vand.u32 4294901760, %v874_v35 }
  0xe3   : > { %824 = vmatprep.subr.mxu0 %v6526_v37  ;;  %v1027_v17 = vsub.f32 %v6512_v11, %v8523_v25  ;;  %v1039_v27 = vsub.f32 %v6483_v59, %v8596_v5  ;;  %v6551_v36 = vsub.f32 %v5742_v26, %v6526_v37  ;;  %v6560_v25 = vsub.f32 %v765_v13, %v6520_v51  ;;  %v703_v5 = vld [vmem:[%s8501_s3 + $0x28] sm:$0xff] }
  0xe4   : > { %826 = vmatpush1.msra.mxu0 %v6516_v22  ;;  %v1034_v49 = vand.u32 4294901760, %v1033_v56  ;;  %v8525_v15 = vand.u32 4294901760, %v6538_v7  ;;  %8598 = vst [vmem:[#allocation23_spill] sm:$0xff] %v6567_v52  ;;  %v6577_v32 = vand.u32 4294901760, %v768_v9  ;;  %v8627_v8 = vand.u32 4294901760, %v6538_v7 }
  0xe5   : > { %865 = vmatmul.mubr.f32.vlgmr.msra.gmra.mxu0 %v6528_v47  ;;  %1167 = vmatprep.subr.mxu0 %v6322_v31  ;;  %v1028_v26 = vand.u32 4294901760, %v1027_v17  ;;  %v8528_v56 = vand.u32 4294901760, %v6551_v36  ;;  %v1040_v35 = vand.u32 4294901760, %v1039_v27  ;;  %v771_v47 = vsel %vm754_vm0, %v703_v5, 0 }
  0xe6   : > { %1170 = vmatpush1.msra.mxu0 %v6312_v3  ;;  %870 = vmatprep.mubr.f32.mxu0 %v8599_v30  ;;  %v1057_v13 = vsub.f32 %v6538_v7, %v8525_v15  ;;  %v6586_v15 = vand.u32 4294901760, %v6560_v25  ;;  %v6593_v5 = vand.u32 4294901760, %v885_v10  ;;  %v6598_v4 = vand.u32 4294901760, %v771_v47 }
  0xe7   : > { %1029 = vmatprep.subr.mxu1 %v1028_v26  ;;  %1173 = vmatprep.subr.mxu0 %v6347_v50  ;;  %v1051_v17 = vsub.f32 %v6551_v36, %v8528_v56  ;;  %v704_v26 = vld [vmem:[%s8501_s3 + $0x30] sm:$0xff] }
  0xe8   : > { %1035 = vmatpush1.msra.mxu1 %v1034_v49  ;;  %1176 = vmatpush1.msra.mxu0 %v6350_v19  ;;  %8600 = vst [vmem:[#allocation24_spill] sm:$0xff] %v6586_v15  ;;  %v1058_v0 = vand.u32 4294901760, %v1057_v13  ;;  %8601 = vst [vmem:[#allocation25_spill] sm:$0xff] %v6593_v5  ;;  %v6596_v49 = vsub.f32 %v768_v9, %v6577_v32  ;;  %v774_v56 = vsel %vm754_vm0, %v704_v26, 0  ;;  %v8618_v19 = vand.u32 4294901760, %v6422_v62 }
  0xe9   : > { %876 = vmatmul.mubr.f32.gmra.mxu0 %v6567_v52  ;;  %1041 = vmatprep.subr.mxu1 %v1040_v35  ;;  %v1052_v27 = vand.u32 4294901760, %v1051_v17  ;;  %v896_v13 = vsub.f32 %v6560_v25, %v6586_v15  ;;  %v6616_v9 = vsub.f32 %v771_v47, %v6598_v4  ;;  %v6618_v35 = vand.u32 4294901760, %v774_v56 }
  0xea   : > { %1179 = vmatprep.subr.mxu0 %v6377_v38  ;;  %1047 = vmatpush1.msra.mxu1 %v1046_v33  ;;  %v705_v33 = vld [vmem:[%s8501_s3 + $0x38] sm:$0xff]  ;;  %v6613_v10 = vand.u32 4294901760, %v6596_v49 }
  0xeb   : > { %1182 = vmatpush1.msra.mxu0 %v6380_v29  ;;  %1053 = vmatprep.subr.mxu1 %v1052_v27  ;;  %8603 = vst [vmem:[#allocation27_spill] sm:$0xff] %v6616_v9  ;;  %v6625_v17 = vand.u32 4294901760, %v896_v13  ;;  %v6634_v26 = vand.u32 4294901760, %v6616_v9  ;;  %v6637_v27 = vsub.f32 %v774_v56, %v6618_v35 }
  0xec   : > { %1185 = vmatprep.subr.mxu0 %v6419_v39  ;;  %881 = vmatprep.mubr.f32.mxu0 %v8599_v30  ;;  %8602 = vst [vmem:[#allocation26_spill] sm:$0xff] %v6613_v10  ;;  %v907_v47 = vsub.f32 %v6596_v49, %v6613_v10 }
  0xed   : > { %1059 = vmatpush1.msra.mxu1 %v1058_v0  ;;  %1188 = vmatpush1.msra.mxu0 %v6422_v62  ;;  %v777_v0 = vsel %vm754_vm0, %v705_v33, 0  ;;  %8604 = vst [vmem:[#allocation28_spill] sm:$0xff] %v6625_v17  ;;  %8605 = vst [vmem:[#allocation29_spill] sm:$0xff] %v6634_v26  ;;  %v918_v13 = vsub.f32 %v6616_v9, %v6634_v26  ;;  %v8622_v62 = vand.u32 4294901760, %v6505_v45 }
  0xee   : > { %887 = vmatmul.mubr.f32.gmra.mxu0 %v6593_v5  ;;  %1094 = vmatmul.mubr.f32.vlgmr.msra.gmra.mxu1 %v6430_v43  ;;  %8606 = vst [vmem:[#allocation30_spill] sm:$0xff] %v6637_v27  ;;  %v6639_v33 = vand.u32 4294901760, %v777_v0  ;;  %v6649_v56 = vand.u32 4294901760, %v907_v47  ;;  %v6654_v5 = vand.u32 4294901760, %v6637_v27 }
  0xef   : > { %1191 = vmatprep.subr.mxu0 %v6469_v54  ;;  %1327 = vmatprep.subr.mxu1 %v6309_v28  ;;  %v6667_v47 = vand.u32 4294901760, %v918_v13 }
  0xf0   : > { %1194 = vmatpush1.msra.mxu0 %v6460_v63  ;;  %1329 = vmatpush1.msra.mxu1 %v6289_v61  ;;  %8607 = vst [vmem:[#allocation31_spill] sm:$0xff] %v6649_v56  ;;  %8608 = vst [vmem:[#allocation32_spill] sm:$0xff] %v6654_v5 }
  0xf1   : > { %1197 = vmatprep.subr.mxu0 %v6512_v11  ;;  %1331 = vmatprep.subr.mxu1 %v6334_v44 }
  0xf2   : > { %892 = vmatprep.mubr.f32.mxu0 %v8599_v30  ;;  %1099 = vmatprep.mubr.f32.mxu1 %v8599_v30 }
  0xf3   : > { %1200 = vmatpush1.msra.mxu0 %v6505_v45  ;;  %1333 = vmatpush1.msra.mxu1 %v6319_v1  ;;  %v8628_v45 = vld [vmem:[#allocation8_spill] sm:$0xff] }
  0xf4   : > { %898 = vmatmul.mubr.f32.gmra.mxu0 %v6625_v17  ;;  %1101 = vmatmul.mubr.f32.gmra.mxu1 %v6450_v42  ;;  %v6657_v17 = vsub.f32 %v777_v0, %v6639_v33  ;;  %v929_v0 = vsub.f32 %v6637_v27, %v6654_v5  ;;  %v8611_v42 = vand.u32 4294901760, %v6322_v31  ;;  %5753 = vtanh.f32 %v8628_v45 }
  0xf5   : > { %1203 = vmatprep.subr.mxu0 %v6483_v59  ;;  %1335 = vmatprep.subr.mxu1 %v6367_v16 }
  0xf6   : > { %1206 = vmatpush1.msra.mxu0 %v6493_v21  ;;  %1337 = vmatpush1.msra.mxu1 %v6369_v34  ;;  %8609 = vst [vmem:[#allocation33_spill] sm:$0xff] %v6657_v17  ;;  %v6672_v52 = vand.u32 4294901760, %v6657_v17  ;;  %v6683_v13 = vand.u32 4294901760, %v929_v0  ;;  %v5744_v0 = vpop.eup %5743  ;;  %v8630_v21 = vld [vmem:[#allocation10_spill] sm:$0xff] }
  0xf7   : > { %1209 = vmatprep.subr.mxu0 %v6551_v36  ;;  %1339 = vmatprep.subr.mxu1 %v6402_v2 }
  0xf8   : > { %903 = vmatprep.mubr.f32.mxu0 %v8599_v30  ;;  %1106 = vmatprep.mubr.f32.mxu1 %v8599_v30  ;;  %8610 = vst [vmem:[#allocation34_spill] sm:$0xff] %v6672_v52 }
  0xf9   : > { %1212 = vmatpush1.msra.mxu0 %v6538_v7  ;;  %1341 = vmatpush1.msra.mxu1 %v6397_v20  ;;  %v8636_v7 = vld [vmem:[#allocation13_spill] sm:$0xff] }
  0xfa   : > { %909 = vmatmul.mubr.f32.gmra.mxu0 %v6649_v56  ;;  %1108 = vmatmul.mubr.f32.gmra.mxu1 %v6476_v23  ;;  %v940_v56 = vsub.f32 %v6657_v17, %v6672_v52 }
  0xfb   : > { %1343 = vmatprep.subr.mxu1 %v6454_v48  ;;  %1482 = vmatprep.subr.mxu0 %v8611_v42  ;;  %v8613_v42 = vand.u32 4294901760, %v6347_v50  ;;  %v8617_v50 = vand.u32 4294901760, %v6419_v39  ;;  %v8621_v39 = vand.u32 4294901760, %v6512_v11  ;;  %v8635_v11 = vld [vmem:[#allocation16_spill] sm:$0xff] }
  0xfc   : > { %1345 = vmatpush1.msra.mxu1 %v6452_v57  ;;  %914 = vmatprep.mubr.f32.mxu0 %v8599_v30  ;;  %v6695_v31 = vand.u32 4294901760, %v940_v56  ;;  %v8615_v56 = vand.u32 4294901760, %v6377_v38  ;;  %v8619_v38 = vand.u32 4294901760, %v6469_v54  ;;  %v6741_v54 = vand.u32 4294901760, %v5744_v0 }
  0xfd   : > { %1347 = vmatprep.subr.mxu1 %v6498_v46  ;;  %1113 = vmatprep.mubr.f32.mxu1 %v8599_v30 }
  0xfe   : > { %1349 = vmatpush1.msra.mxu1 %v6488_v55  ;;  %920 = vmatmul.mubr.f32.gmra.mxu0 %v6667_v47 }
  0xff   : > { %1115 = vmatmul.mubr.f32.gmra.mxu1 %v6520_v51  ;;  %1351 = vmatprep.subr.mxu1 %v6456_v41 }
 0x100   : > { %1353 = vmatpush1.msra.mxu1 %v6462_v6  ;;  %925 = vmatprep.mubr.f32.mxu0 %v8599_v30 }
 0x101   : > { %1355 = vmatprep.subr.mxu1 %v6526_v37  ;;  %1120 = vmatprep.mubr.f32.mxu1 %v8599_v30 }
 0x102   : > { %1357 = vmatpush1.msra.mxu1 %v6516_v22  ;;  %931 = vmatmul.mubr.f32.gmra.mxu0 %v6683_v13 }
 0x103   : > { %1122 = vmatmul.mubr.f32.gmra.mxu1 %v6577_v32  ;;  %1649 = vmatprep.subr.mxu1 %v6309_v28  ;;  %v8612_v28 = vand.u32 4294901760, %v6312_v3  ;;  %v8616_v3 = vand.u32 4294901760, %v6380_v29  ;;  %v8620_v29 = vand.u32 4294901760, %v6460_v63  ;;  %v8634_v63 = vld [vmem:[#allocation17_spill] sm:$0xff] }
 0x104   : > { %936 = vmatprep.mubr.f32.mxu0 %v8599_v30  ;;  %1127 = vmatprep.mubr.f32.mxu1 %v8599_v30 }
 0x106   : > { %942 = vmatmul.mubr.f32.gmra.mxu0 %v6695_v31 }
 0x107   : > { %1129 = vmatmul.mubr.f32.gmra.mxu1 %v6598_v4  ;;  %1245 = vmatprep.mubr.f32.mxu0 %v8599_v30 }
 0x108   : > { %1134 = vmatprep.mubr.f32.mxu1 %v8599_v30 }
 0x10a   : > { %1248 = vmatmul.mubr.f32.vlgmr.msra.gmra.mxu0 %v6445_v14 }
 0x10b   : > { %1136 = vmatmul.mubr.f32.gmra.mxu1 %v6618_v35  ;;  %1486 = vmatpush1.msra.mxu0 %v8612_v28 }
 0x10c   : > { %1490 = vmatprep.subr.mxu0 %v8613_v42  ;;  %1141 = vmatprep.mubr.f32.mxu1 %v8599_v30 }
 0x10d   : > { %1494 = vmatpush1.msra.mxu0 %v8614_v58  ;;  %1253 = vmatprep.mubr.f32.mxu0 %v8599_v30 }
 0x10e   : > { %1498 = vmatprep.subr.mxu0 %v8615_v56  ;;  %1256 = vmatmul.mubr.f32.gmra.mxu0 %v6472_v60 }
 0x10f   : > { %1143 = vmatmul.mubr.f32.gmra.mxu1 %v6639_v33  ;;  %1502 = vmatpush1.msra.mxu0 %v8616_v3 }
 0x110   : > { %1506 = vmatprep.subr.mxu0 %v8617_v50  ;;  %1261 = vmatprep.mubr.f32.mxu0 %v8599_v30 }
 0x111   : > { %1510 = vmatpush1.msra.mxu0 %v8618_v19  ;;  %1390 = vmatprep.mubr.f32.mxu1 %v8599_v30 }
 0x112   : > { %1514 = vmatprep.subr.mxu0 %v8619_v38  ;;  %1264 = vmatmul.mubr.f32.gmra.mxu0 %v6508_v40 }
 0x113   : > { %1394 = vmatmul.mubr.f32.vlgmr.msra.gmra.mxu1 %v6465_v24  ;;  %1518 = vmatpush1.msra.mxu0 %v8620_v29 }
 0x114   : > { %1651 = vmatpush1.msra.mxu1 %v6289_v61  ;;  %1522 = vmatprep.subr.mxu0 %v8621_v39  ;;  %v8623_v61 = vand.u32 4294901760, %v6483_v59  ;;  %v5746_v59 = vpop.eup %5745 }
 0x115   : > { %1653 = vmatprep.subr.mxu1 %v6334_v44  ;;  %1526 = vmatpush1.msra.mxu0 %v8622_v62  ;;  %v8626_v44 = vand.u32 4294901760, %v6551_v36  ;;  %v8632_v36 = vld [vmem:[#allocation22_spill] sm:$0xff]  ;;  %v6796_v28 = vand.u32 4294901760, %v5746_v59 }
 0x116   : > { %1655 = vmatpush1.msra.mxu1 %v6319_v1  ;;  %1269 = vmatprep.mubr.f32.mxu0 %v8599_v30  ;;  %v6756_v1 = vsub.f32 %v5744_v0, %v6741_v54 }
 0x117   : > { %1399 = vmatprep.mubr.f32.mxu1 %v8599_v30  ;;  %1530 = vmatprep.subr.mxu0 %v8623_v61 }
 0x118   : > { %1657 = vmatprep.subr.mxu1 %v6367_v16  ;;  %1272 = vmatmul.mubr.f32.gmra.mxu0 %v6560_v25  ;;  %v8629_v16 = vld [vmem:[#allocation11_spill] sm:$0xff] }
 0x119   : > { %1403 = vmatmul.mubr.f32.gmra.mxu1 %v6501_v18  ;;  %1534 = vmatpush1.msra.mxu0 %v8624_v53  ;;  %5755 = vtanh.f32 %v8629_v16 }
 0x11a   : > { %1659 = vmatpush1.msra.mxu1 %v6369_v34  ;;  %1538 = vmatprep.subr.mxu0 %v8626_v44  ;;  %v8536_v34 = vand.u32 4294901760, %v6756_v1  ;;  %5757 = vtanh.f32 %v8630_v21 }
 0x11b   : > { %1661 = vmatprep.subr.mxu1 %v6402_v2  ;;  %1542 = vmatpush1.msra.mxu0 %v8627_v8  ;;  %v8631_v2 = vld [vmem:[#allocation15_spill] sm:$0xff] }
 0x11c   : > { %1663 = vmatpush1.msra.mxu1 %v6397_v20  ;;  %1277 = vmatprep.mubr.f32.mxu0 %v8599_v30  ;;  %5759 = vtanh.f32 %v8631_v2  ;;  %v1957_v20 = vsub.f32 %v6756_v1, %v8536_v34 }
 0x11d   : > { %1408 = vmatprep.mubr.f32.mxu1 %v8599_v30  ;;  %1665 = vmatprep.subr.mxu1 %v6454_v48  ;;  %v8633_v48 = vld [vmem:[#allocation14_spill] sm:$0xff] }
 0x11e   : > { %1786 = vmatprep.subr.mxu0 %v6741_v54  ;;  %1280 = vmatmul.mubr.f32.gmra.mxu0 %v6596_v49  ;;  %5761 = vtanh.f32 %v8633_v48 }
 0x11f   : > { %1412 = vmatmul.mubr.f32.gmra.mxu1 %v8632_v36  ;;  %1285 = vmatprep.mubr.f32.mxu0 %v8599_v30  ;;  %5763 = vtanh.f32 %v8634_v63 }
 0x120   : > { %1667 = vmatpush1.msra.mxu1 %v6452_v57  ;;  %1417 = vmatprep.mubr.f32.mxu1 %v8599_v30  ;;  %v5748_v57 = vpop.eup %5747  ;;  %5765 = vtanh.f32 %v8635_v11  ;;  %v8640_v11 = vld [vmem:[#allocation20_spill] sm:$0xff] }
 0x121   : > { %1669 = vmatprep.subr.mxu1 %v6498_v46  ;;  %v5750_v46 = vpop.eup %5749  ;;  %5767 = vtanh.f32 %v8636_v7  ;;  %v6803_v58 = vand.u32 4294901760, %v5748_v57 }
 0x122   : > { %1671 = vmatpush1.msra.mxu1 %v6488_v55  ;;  %1288 = vmatmul.mubr.f32.gmra.mxu0 %v6616_v9  ;;  %v1958_v55 = vand.u32 4294901760, %v1957_v20  ;;  %v5752_v42 = vpop.eup %5751  ;;  %v6808_v56 = vand.u32 4294901760, %v5750_v46 }
 0x123   : > { %1673 = vmatprep.subr.mxu1 %v6456_v41  ;;  %1421 = vmatmul.mubr.f32.gmra.mxu1 %v6586_v15  ;;  %v8637_v41 = vld [vmem:[#allocation12_spill] sm:$0xff]  ;;  %v5754_v3 = vpop.eup %5753  ;;  %v6814_v19 = vand.u32 4294901760, %v5752_v42  ;;  %v6819_v38 = vsub.f32 %v5748_v57, %v6803_v58 }
 0x124   : > { %1675 = vmatpush1.msra.mxu1 %v6462_v6  ;;  %1293 = vmatprep.mubr.f32.mxu0 %v8599_v30  ;;  %5769 = vtanh.f32 %v8637_v41  ;;  %v8638_v6 = vld [vmem:[#allocation19_spill] sm:$0xff]  ;;  %v6822_v39 = vand.u32 4294901760, %v5754_v3  ;;  %v6825_v62 = vsub.f32 %v5750_v46, %v6808_v56 }
 0x125   : > { %1677 = vmatprep.subr.mxu1 %v6526_v37  ;;  %1426 = vmatprep.mubr.f32.mxu1 %v8599_v30  ;;  %5771 = vtanh.f32 %v8638_v6  ;;  %v8639_v37 = vld [vmem:[#allocation18_spill] sm:$0xff]  ;;  %v6834_v44 = vsub.f32 %v5752_v42, %v6814_v19  ;;  %v8537_v16 = vand.u32 4294901760, %v6819_v38 }
 0x126   : > { %1679 = vmatpush1.msra.mxu1 %v6516_v22  ;;  %1296 = vmatmul.mubr.f32.gmra.mxu0 %v6637_v27  ;;  %5773 = vtanh.f32 %v8639_v37  ;;  %v6811_v22 = vsub.f32 %v5746_v59, %v6796_v28  ;;  %v5756_v50 = vpop.eup %5755  ;;  %v8539_v2 = vand.u32 4294901760, %v6825_v62  ;;  %v6845_v20 = vsub.f32 %v5754_v3, %v6822_v39 }
 0x127   : > { %1959 = vmatprep.subr.mxu1 %v1958_v55  ;;  %1430 = vmatmul.mubr.f32.gmra.mxu1 %v6613_v10  ;;  %v5758_v0 = vpop.eup %5757  ;;  %v6827_v61 = vand.u32 4294901760, %v5756_v50  ;;  %v1969_v6 = vsub.f32 %v6819_v38, %v8537_v16 }
 0x128   : > { %1301 = vmatprep.mubr.f32.mxu0 %v8599_v30  ;;  %1435 = vmatprep.mubr.f32.mxu1 %v8599_v30  ;;  %v8535_v53 = vand.u32 4294901760, %v6811_v22  ;;  %v6831_v12 = vand.u32 4294901760, %v5758_v0 }
 0x129   : > { %v5760_v29 = vpop.eup %5759  ;;  %v6853_v63 = vsub.f32 %v5756_v50, %v6827_v61 }
 0x12a   : > { %1304 = vmatmul.mubr.f32.gmra.mxu0 %v6657_v17  ;;  %v6838_v45 = vand.u32 4294901760, %v5760_v29  ;;  %v1963_v48 = vsub.f32 %v6811_v22, %v8535_v53  ;;  %v6861_v55 = vsub.f32 %v5758_v0, %v6831_v12  ;;  %v1975_v0 = vsub.f32 %v6825_v62, %v8539_v2 }
 0x12b   : > { %1439 = vmatmul.mubr.f32.gmra.mxu1 %v6634_v26  ;;  %1575 = vmatprep.mubr.f32.mxu0 %v8599_v30  ;;  %v5762_v8 = vpop.eup %5761  ;;  %v8642_v53 = vand.u32 4294901760, %v6845_v20 }
 0x12c   : > { %1444 = vmatprep.mubr.f32.mxu1 %v8599_v30  ;;  %v5764_v21 = vpop.eup %5763  ;;  %v6857_v46 = vand.u32 4294901760, %v5762_v8  ;;  %v6871_v37 = vsub.f32 %v5760_v29, %v6838_v45  ;;  %v1964_v29 = vand.u32 4294901760, %v1963_v48  ;;  %v1970_v48 = vand.u32 4294901760, %v1969_v6 }
 0x12d   : > { %v5766_v59 = vpop.eup %5765  ;;  %v6865_v42 = vand.u32 4294901760, %v5764_v21  ;;  %v8643_v6 = vand.u32 4294901760, %v6853_v63 }
 0x12e   : > { %1577 = vmatmul.mubr.f32.vlgmr.msra.gmra.mxu0 %v6430_v43  ;;  %v5768_v57 = vpop.eup %5767  ;;  %v6875_v50 = vand.u32 4294901760, %v5766_v59  ;;  %v6895_v26 = vsub.f32 %v5762_v8, %v6857_v46  ;;  %v1987_v8 = vsub.f32 %v6845_v20, %v8642_v53  ;;  %v8644_v53 = vand.u32 4294901760, %v6861_v55 }
 0x12f   : > { %1448 = vmatmul.mubr.f32.gmra.mxu1 %v6654_v5  ;;  %1788 = vmatpush1.msra.mxu0 %v6796_v28  ;;  %v6883_v16 = vand.u32 4294901760, %v5768_v57  ;;  %v6903_v10 = vsub.f32 %v5764_v21, %v6865_v42  ;;  %v1993_v21 = vsub.f32 %v6853_v63, %v8643_v6 }
 0x130   : > { %1790 = vmatprep.subr.mxu0 %v6803_v58  ;;  %1453 = vmatprep.mubr.f32.mxu1 %v8599_v30  ;;  %v6912_v15 = vsub.f32 %v5766_v59, %v6875_v50  ;;  %v1999_v17 = vsub.f32 %v6861_v55, %v8644_v53  ;;  %v1988_v53 = vand.u32 4294901760, %v1987_v8 }
 0x131   : > { %1792 = vmatpush1.msra.mxu0 %v6808_v56  ;;  %1582 = vmatprep.mubr.f32.mxu0 %v8599_v30  ;;  %v5770_v41 = vpop.eup %5769  ;;  %v8547_v6 = vand.u32 4294901760, %v6903_v10  ;;  %v1994_v9 = vand.u32 4294901760, %v1993_v21 }
 0x132   : > { %1794 = vmatprep.subr.mxu0 %v6814_v19  ;;  %1584 = vmatmul.mubr.f32.gmra.mxu0 %v8640_v11  ;;  %v5772_v3 = vpop.eup %5771  ;;  %v6891_v5 = vand.u32 4294901760, %v5770_v41 }
 0x133   : > { %1457 = vmatmul.mubr.f32.gmra.mxu1 %v6672_v52  ;;  %1796 = vmatpush1.msra.mxu0 %v6822_v39  ;;  %v5774_v34 = vpop.eup %5773  ;;  %v8641_v52 = vand.u32 4294901760, %v6834_v44  ;;  %v6899_v7 = vand.u32 4294901760, %v5772_v3  ;;  %v2017_v21 = vsub.f32 %v6903_v10, %v8547_v6 }
 0x134   : > { %1798 = vmatprep.subr.mxu0 %v6827_v61  ;;  %1589 = vmatprep.mubr.f32.mxu0 %v8599_v30  ;;  %v6909_v27 = vand.u32 4294901760, %v5774_v34 }
 0x135   : > { %1800 = vmatpush1.msra.mxu0 %v6831_v12  ;;  %1712 = vmatprep.mubr.f32.mxu1 %v8599_v30  ;;  %v1981_v2 = vsub.f32 %v6834_v44, %v8641_v52  ;;  %v1976_v52 = vand.u32 4294901760, %v1975_v0 }
 0x136   : > { %1802 = vmatprep.subr.mxu0 %v6838_v45  ;;  %1591 = vmatmul.mubr.f32.gmra.mxu0 %v6476_v23  ;;  %v6941_v59 = vsub.f32 %v5774_v34, %v6909_v27 }
 0x137   : > { %1714 = vmatmul.mubr.f32.vlgmr.msra.gmra.mxu1 %v6430_v43  ;;  %1804 = vmatpush1.msra.mxu0 %v6857_v46  ;;  %v1982_v0 = vand.u32 4294901760, %v1981_v2  ;;  %v6936_v2 = vsub.f32 %v5772_v3, %v6899_v7  ;;  %v2000_v3 = vand.u32 4294901760, %v1999_v17  ;;  %v8647_v17 = vand.u32 4294901760, %v6912_v15 }
 0x138   : > { %1965 = vmatpush1.msra.mxu1 %v1964_v29  ;;  %1806 = vmatprep.subr.mxu0 %v6865_v42  ;;  %v6919_v29 = vsub.f32 %v5768_v57, %v6883_v16  ;;  %v8645_v57 = vand.u32 4294901760, %v6871_v37 }
 0x139   : > { %1971 = vmatprep.subr.mxu1 %v1970_v48  ;;  %1808 = vmatpush1.msra.mxu0 %v6875_v50  ;;  %v6927_v48 = vsub.f32 %v5770_v41, %v6891_v5 }
 0x13a   : > { %1977 = vmatpush1.msra.mxu1 %v1976_v52  ;;  %1596 = vmatprep.mubr.f32.mxu0 %v8599_v30  ;;  %v2005_v52 = vsub.f32 %v6871_v37, %v8645_v57  ;;  %v8549_v57 = vand.u32 4294901760, %v6936_v2 }
 0x13b   : > { %1719 = vmatprep.mubr.f32.mxu1 %v8599_v30  ;;  %1810 = vmatprep.subr.mxu0 %v6883_v16  ;;  %v8548_v41 = vand.u32 4294901760, %v6927_v48 }
 0x13c   : > { %1983 = vmatprep.subr.mxu1 %v1982_v0  ;;  %1598 = vmatmul.mubr.f32.gmra.mxu0 %v6520_v51  ;;  %v8646_v0 = vand.u32 4294901760, %v6895_v26  ;;  %v2006_v34 = vand.u32 4294901760, %v2005_v52 }
 0x13d   : > { %1721 = vmatmul.mubr.f32.gmra.mxu1 %v8640_v11  ;;  %1812 = vmatpush1.msra.mxu0 %v6891_v5  ;;  %v2035_v6 = vsub.f32 %v6927_v48, %v8548_v41 }
 0x13e   : > { %1989 = vmatpush1.msra.mxu1 %v1988_v53  ;;  %1814 = vmatprep.subr.mxu0 %v6899_v7  ;;  %v2011_v8 = vsub.f32 %v6895_v26, %v8646_v0  ;;  %v2023_v53 = vsub.f32 %v6912_v15, %v8647_v17  ;;  %v2046_v0 = vand.u32 4294901760, %v6941_v59  ;;  %v2018_v17 = vand.u32 4294901760, %v2017_v21 }
 0x13f   : > { %1995 = vmatprep.subr.mxu1 %v1994_v9  ;;  %1816 = vmatpush1.msra.mxu0 %v6909_v27  ;;  %v8648_v9 = vand.u32 4294901760, %v6919_v29  ;;  %v2036_v21 = vand.u32 4294901760, %v2035_v6  ;;  %v8650_v6 = vld [vmem:[#allocation23_spill] sm:$0xff] }
 0x140   : > { %2001 = vmatpush1.msra.mxu1 %v2000_v3  ;;  %1603 = vmatprep.mubr.f32.mxu0 %v8599_v30  ;;  %v2012_v3 = vand.u32 4294901760, %v2011_v8  ;;  %v2047_v8 = vsub.f32 %v6941_v59, %v2046_v0 }
 0x141   : > { %1726 = vmatprep.mubr.f32.mxu1 %v8599_v30  ;;  %2007 = vmatprep.subr.mxu1 %v2006_v34  ;;  %v2029_v52 = vsub.f32 %v6919_v29, %v8648_v9  ;;  %v2041_v34 = vsub.f32 %v6936_v2, %v8549_v57  ;;  %v2024_v9 = vand.u32 4294901760, %v2023_v53  ;;  %v8653_v53 = vand.u32 4294901760, %v6756_v1 }
 0x142   : > { %2157 = vmatprep.subr.mxu0 %v6756_v1  ;;  %1605 = vmatmul.mubr.f32.gmra.mxu0 %v6577_v32  ;;  %v2048_v57 = vand.u32 4294901760, %v2047_v8  ;;  %v8660_v1 = vand.u32 4294901760, %v6853_v63 }
 0x143   : > { %1728 = vmatmul.mubr.f32.gmra.mxu1 %v6476_v23  ;;  %1610 = vmatprep.mubr.f32.mxu0 %v8599_v30  ;;  %v2030_v36 = vand.u32 4294901760, %v2029_v52  ;;  %v2042_v41 = vand.u32 4294901760, %v2041_v34  ;;  %v8654_v52 = vld [vmem:[#allocation31_spill] sm:$0xff] }
 0x144   : > { %2013 = vmatpush1.msra.mxu1 %v2012_v3  ;;  %1733 = vmatprep.mubr.f32.mxu1 %v8599_v30 }
 0x145   : > { %2019 = vmatprep.subr.mxu1 %v2018_v17 }
 0x146   : > { %2025 = vmatpush1.msra.mxu1 %v2024_v9  ;;  %1612 = vmatmul.mubr.f32.gmra.mxu0 %v6598_v4 }
 0x147   : > { %2031 = vmatprep.subr.mxu1 %v2030_v36  ;;  %1735 = vmatmul.mubr.f32.gmra.mxu1 %v6520_v51  ;;  %v8649_v36 = vld [vmem:[#allocation21_spill] sm:$0xff] }
 0x148   : > { %2037 = vmatpush1.msra.mxu1 %v2036_v21  ;;  %1617 = vmatprep.mubr.f32.mxu0 %v8599_v30 }
 0x149   : > { %2043 = vmatprep.subr.mxu1 %v2042_v41  ;;  %1740 = vmatprep.mubr.f32.mxu1 %v8599_v30  ;;  %v8651_v41 = vld [vmem:[#allocation25_spill] sm:$0xff] }
 0x14a   : > { %2049 = vmatpush1.msra.mxu1 %v2048_v57  ;;  %1619 = vmatmul.mubr.f32.gmra.mxu0 %v6618_v35  ;;  %v8652_v57 = vld [vmem:[#allocation28_spill] sm:$0xff] }
 0x14b   : > { %2317 = vmatprep.subr.mxu1 %v6741_v54  ;;  %1742 = vmatmul.mubr.f32.gmra.mxu1 %v6577_v32 }
 0x14c   : > { %1624 = vmatprep.mubr.f32.mxu0 %v8599_v30  ;;  %1747 = vmatprep.mubr.f32.mxu1 %v8599_v30 }
 0x14e   : > { %1626 = vmatmul.mubr.f32.gmra.mxu0 %v6639_v33 }
 0x14f   : > { %1749 = vmatmul.mubr.f32.gmra.mxu1 %v6598_v4  ;;  %1849 = vmatprep.mubr.f32.mxu0 %v8599_v30 }
 0x150   : > { %1754 = vmatprep.mubr.f32.mxu1 %v8599_v30 }
 0x152   : > { %1855 = vmatmul.mubr.f32.vlgmr.msra.gmra.mxu0 %v8649_v36 }
 0x153   : > { %1756 = vmatmul.mubr.f32.gmra.mxu1 %v6618_v35  ;;  %2160 = vmatpush1.msra.mxu0 %v6811_v22 }
 0x154   : > { %2163 = vmatprep.subr.mxu0 %v6819_v38  ;;  %1761 = vmatprep.mubr.f32.mxu1 %v8599_v30 }
 0x155   : > { %2166 = vmatpush1.msra.mxu0 %v6825_v62  ;;  %1860 = vmatprep.mubr.f32.mxu0 %v8599_v30 }
 0x156   : > { %2169 = vmatprep.subr.mxu0 %v6834_v44  ;;  %1866 = vmatmul.mubr.f32.gmra.mxu0 %v8650_v6 }
 0x157   : > { %1763 = vmatmul.mubr.f32.gmra.mxu1 %v6639_v33  ;;  %2172 = vmatpush1.msra.mxu0 %v6845_v20 }
 0x158   : > { %2175 = vmatprep.subr.mxu0 %v6853_v63  ;;  %1871 = vmatprep.mubr.f32.mxu0 %v8599_v30 }
 0x159   : > { %2178 = vmatpush1.msra.mxu0 %v6861_v55  ;;  %2082 = vmatprep.mubr.f32.mxu1 %v8599_v30 }
 0x15a   : > { %2181 = vmatprep.subr.mxu0 %v6871_v37  ;;  %1877 = vmatmul.mubr.f32.gmra.mxu0 %v8651_v41 }
 0x15b   : > { %2084 = vmatmul.mubr.f32.vlgmr.msra.gmra.mxu1 %v6430_v43  ;;  %2184 = vmatpush1.msra.mxu0 %v6895_v26 }
 0x15c   : > { %2319 = vmatpush1.msra.mxu1 %v6796_v28  ;;  %2187 = vmatprep.subr.mxu0 %v6903_v10 }
 0x15d   : > { %2321 = vmatprep.subr.mxu1 %v6803_v58  ;;  %2190 = vmatpush1.msra.mxu0 %v6912_v15 }
 0x15e   : > { %2323 = vmatpush1.msra.mxu1 %v6808_v56  ;;  %1882 = vmatprep.mubr.f32.mxu0 %v8599_v30 }
 0x15f   : > { %2089 = vmatprep.mubr.f32.mxu1 %v8599_v30  ;;  %2193 = vmatprep.subr.mxu0 %v6919_v29 }
 0x160   : > { %2325 = vmatprep.subr.mxu1 %v6814_v19  ;;  %1888 = vmatmul.mubr.f32.gmra.mxu0 %v8652_v57 }
 0x161   : > { %2091 = vmatmul.mubr.f32.gmra.mxu1 %v8640_v11  ;;  %2196 = vmatpush1.msra.mxu0 %v6927_v48 }
 0x162   : > { %2327 = vmatpush1.msra.mxu1 %v6822_v39  ;;  %2199 = vmatprep.subr.mxu0 %v6936_v2 }
 0x163   : > { %2329 = vmatprep.subr.mxu1 %v6827_v61  ;;  %2202 = vmatpush1.msra.mxu0 %v6941_v59 }
 0x164   : > { %2331 = vmatpush1.msra.mxu1 %v6831_v12  ;;  %1893 = vmatprep.mubr.f32.mxu0 %v8599_v30 }
 0x165   : > { %2096 = vmatprep.mubr.f32.mxu1 %v8599_v30  ;;  %2333 = vmatprep.subr.mxu1 %v6838_v45 }
 0x166   : > { %2472 = vmatprep.subr.mxu0 %v8653_v53  ;;  %1899 = vmatmul.mubr.f32.gmra.mxu0 %v8654_v52 }
 0x167   : > { %2098 = vmatmul.mubr.f32.gmra.mxu1 %v6476_v23  ;;  %1904 = vmatprep.mubr.f32.mxu0 %v8599_v30 }
 0x168   : > { %2335 = vmatpush1.msra.mxu1 %v6857_v46  ;;  %2103 = vmatprep.mubr.f32.mxu1 %v8599_v30 }
 0x169   : > { %2337 = vmatprep.subr.mxu1 %v6865_v42 }
 0x16a   : > { %2339 = vmatpush1.msra.mxu1 %v6875_v50  ;;  %1910 = vmatmul.mubr.f32.gmra.mxu0 %v6667_v47  ;;  %v8655_v47 = vand.u32 4294901760, %v6811_v22  ;;  %v8661_v22 = vand.u32 4294901760, %v6861_v55 }
 0x16b   : > { %2341 = vmatprep.subr.mxu1 %v6883_v16  ;;  %2105 = vmatmul.mubr.f32.gmra.mxu1 %v6520_v51 }
 0x16c   : > { %2343 = vmatpush1.msra.mxu1 %v6891_v5  ;;  %1915 = vmatprep.mubr.f32.mxu0 %v8599_v30 }
 0x16d   : > { %2345 = vmatprep.subr.mxu1 %v6899_v7  ;;  %2110 = vmatprep.mubr.f32.mxu1 %v8599_v30 }
 0x16e   : > { %2347 = vmatpush1.msra.mxu1 %v6909_v27  ;;  %1921 = vmatmul.mubr.f32.gmra.mxu0 %v6683_v13  ;;  %v8656_v13 = vand.u32 4294901760, %v6819_v38  ;;  %v8662_v38 = vand.u32 4294901760, %v6871_v37 }
 0x16f   : > { %2639 = vmatprep.subr.mxu1 %v6741_v54  ;;  %2112 = vmatmul.mubr.f32.gmra.mxu1 %v6577_v32  ;;  %v8658_v54 = vand.u32 4294901760, %v6834_v44  ;;  %v8665_v44 = vand.u32 4294901760, %v6912_v15  ;;  %v8668_v15 = vand.u32 4294901760, %v6936_v2 }
 0x170   : > { %1926 = vmatprep.mubr.f32.mxu0 %v8599_v30  ;;  %2117 = vmatprep.mubr.f32.mxu1 %v8599_v30 }
 0x172   : > { %1932 = vmatmul.mubr.f32.gmra.mxu0 %v6695_v31  ;;  %v8657_v31 = vand.u32 4294901760, %v6825_v62  ;;  %v8664_v62 = vand.u32 4294901760, %v6903_v10  ;;  %v8671_v10 = vld [vmem:[#allocation24_spill] sm:$0xff] }
 0x173   : > { %2119 = vmatmul.mubr.f32.gmra.mxu1 %v6598_v4  ;;  %2235 = vmatprep.mubr.f32.mxu0 %v8599_v30 }
 0x174   : > { %2124 = vmatprep.mubr.f32.mxu1 %v8599_v30 }
 0x176   : > { %2238 = vmatmul.mubr.f32.vlgmr.msra.gmra.mxu0 %v6445_v14  ;;  %v8659_v14 = vand.u32 4294901760, %v6845_v20 }
 0x177   : > { %2126 = vmatmul.mubr.f32.gmra.mxu1 %v6618_v35  ;;  %2476 = vmatpush1.msra.mxu0 %v8655_v47 }
 0x178   : > { %2480 = vmatprep.subr.mxu0 %v8656_v13  ;;  %2131 = vmatprep.mubr.f32.mxu1 %v8599_v30 }
 0x179   : > { %2484 = vmatpush1.msra.mxu0 %v8657_v31  ;;  %2243 = vmatprep.mubr.f32.mxu0 %v8599_v30 }
 0x17a   : > { %2488 = vmatprep.subr.mxu0 %v8658_v54  ;;  %2246 = vmatmul.mubr.f32.gmra.mxu0 %v6472_v60  ;;  %v8663_v60 = vand.u32 4294901760, %v6895_v26  ;;  %v8673_v26 = vld [vmem:[#allocation26_spill] sm:$0xff] }
 0x17b   : > { %2133 = vmatmul.mubr.f32.gmra.mxu1 %v6639_v33  ;;  %2492 = vmatpush1.msra.mxu0 %v8659_v14 }
 0x17c   : > { %2496 = vmatprep.subr.mxu0 %v8660_v1  ;;  %2251 = vmatprep.mubr.f32.mxu0 %v8599_v30 }
 0x17d   : > { %2500 = vmatpush1.msra.mxu0 %v8661_v22  ;;  %2380 = vmatprep.mubr.f32.mxu1 %v8599_v30 }
 0x17e   : > { %2504 = vmatprep.subr.mxu0 %v8662_v38  ;;  %2254 = vmatmul.mubr.f32.gmra.mxu0 %v6508_v40  ;;  %v8666_v40 = vand.u32 4294901760, %v6919_v29 }
 0x17f   : > { %2384 = vmatmul.mubr.f32.vlgmr.msra.gmra.mxu1 %v6465_v24  ;;  %2508 = vmatpush1.msra.mxu0 %v8663_v60  ;;  %v8667_v24 = vand.u32 4294901760, %v6927_v48 }
 0x180   : > { %2641 = vmatpush1.msra.mxu1 %v6796_v28  ;;  %2512 = vmatprep.subr.mxu0 %v8664_v62  ;;  %v8674_v28 = vld [vmem:[#allocation33_spill] sm:$0xff] }
 0x181   : > { %2643 = vmatprep.subr.mxu1 %v6803_v58  ;;  %2516 = vmatpush1.msra.mxu0 %v8665_v44  ;;  %v8675_v58 = vld [vmem:[#allocation29_spill] sm:$0xff] }
 0x182   : > { %2645 = vmatpush1.msra.mxu1 %v6808_v56  ;;  %2259 = vmatprep.mubr.f32.mxu0 %v8599_v30  ;;  %v8678_v56 = vld [vmem:[#allocation34_spill] sm:$0xff] }
 0x183   : > { %2389 = vmatprep.mubr.f32.mxu1 %v8599_v30  ;;  %2520 = vmatprep.subr.mxu0 %v8666_v40 }
 0x184   : > { %2647 = vmatprep.subr.mxu1 %v6814_v19  ;;  %2262 = vmatmul.mubr.f32.gmra.mxu0 %v6560_v25  ;;  %v8669_v25 = vld [vmem:[#allocation22_spill] sm:$0xff]  ;;  %v7143_v19 = vpop.permute.xlu0 %751 }
 0x185   : > { %2393 = vmatmul.mubr.f32.gmra.mxu1 %v6501_v18  ;;  %2524 = vmatpush1.msra.mxu0 %v8667_v24  ;;  %v8670_v18 = vld [vmem:[#allocation27_spill] sm:$0xff]  ;;  %8679 = vst [vmem:[#allocation8_spill] sm:$0xff] %v7143_v19 }
 0x186   : > { %2649 = vmatpush1.msra.mxu1 %v6822_v39  ;;  %2528 = vmatprep.subr.mxu0 %v8668_v15 }
 0x187   : > { %2651 = vmatprep.subr.mxu1 %v6827_v61  ;;  %2532 = vmatpush1.msra.mxu0 %v2046_v0 }
 0x188   : > { %2653 = vmatpush1.msra.mxu1 %v6831_v12  ;;  %2267 = vmatprep.mubr.f32.mxu0 %v8599_v30  ;;  %v7152_v12 = vpop.permute.xlu0 %741 }
 0x189   : > { %2398 = vmatprep.mubr.f32.mxu1 %v8599_v30  ;;  %2655 = vmatprep.subr.mxu1 %v6838_v45 }
 0x18a   : > { %2270 = vmatmul.mubr.f32.gmra.mxu0 %v6596_v49  ;;  %2402 = vmatmul.mubr.f32.gmra.mxu1 %v8669_v25  ;;  %v8672_v49 = vld [vmem:[#allocation30_spill] sm:$0xff] }
 0x18b   : > { %2657 = vmatpush1.msra.mxu1 %v6857_v46  ;;  %2275 = vmatprep.mubr.f32.mxu0 %v8599_v30 }
 0x18c   : > { %2659 = vmatprep.subr.mxu1 %v6865_v42  ;;  %2407 = vmatprep.mubr.f32.mxu1 %v8599_v30  ;;  %v7167_v63 = vpop.permute.xlu0 %731 }
 0x18d   : > { %2661 = vmatpush1.msra.mxu1 %v6875_v50 }
 0x18e   : > { %2663 = vmatprep.subr.mxu1 %v6883_v16  ;;  %2278 = vmatmul.mubr.f32.gmra.mxu0 %v8670_v18 }
 0x18f   : > { %2411 = vmatmul.mubr.f32.gmra.mxu1 %v8671_v10  ;;  %2283 = vmatprep.mubr.f32.mxu0 %v8599_v30 }
 0x190   : > { %2665 = vmatpush1.msra.mxu1 %v6891_v5  ;;  %2416 = vmatprep.mubr.f32.mxu1 %v8599_v30  ;;  %v7134_v5 = vpop.permute.xlu1 %746  ;;  %v7181_v50 = vpop.permute.xlu0 %721 }
 0x191   : > { %2667 = vmatprep.subr.mxu1 %v6899_v7  ;;  %8676 = vst [vmem:[#allocation9_spill] sm:$0xff] %v7134_v5 }
 0x192   : > { %2669 = vmatpush1.msra.mxu1 %v6909_v27  ;;  %2286 = vmatmul.mubr.f32.gmra.mxu0 %v8672_v49  ;;  %v8677_v27 = vld [vmem:[#allocation32_spill] sm:$0xff] }
 0x193   : > { %2420 = vmatmul.mubr.f32.gmra.mxu1 %v8673_v26  ;;  %2291 = vmatprep.mubr.f32.mxu0 %v8599_v30 }
 0x194   : > { %2425 = vmatprep.mubr.f32.mxu1 %v8599_v30  ;;  %v7145_v39 = vpop.permute.xlu1 %736 }
 0x196   : > { %2294 = vmatmul.mubr.f32.gmra.mxu0 %v8674_v28 }
 0x197   : > { %2429 = vmatmul.mubr.f32.gmra.mxu1 %v8675_v58  ;;  %2565 = vmatprep.mubr.f32.mxu0 %v8599_v30 }
 0x198   : > { %2434 = vmatprep.mubr.f32.mxu1 %v8599_v30  ;;  %v7154_v45 = vpop.permute.xlu1 %726 }
 0x199   : > { %8680 = vst [vmem:[#allocation11_spill] sm:$0xff] %v7154_v45 }
 0x19a   : > { %2567 = vmatmul.mubr.f32.vlgmr.msra.gmra.mxu0 %v6430_v43 }
 0x19b   : > { %2438 = vmatmul.mubr.f32.gmra.mxu1 %v8677_v27  ;;  %2572 = vmatprep.mubr.f32.mxu0 %v8599_v30 }
 0x19c   : > { %2443 = vmatprep.mubr.f32.mxu1 %v8599_v30  ;;  %v7169_v46 = vpop.permute.xlu1 %716 }
 0x19e   : > { %2574 = vmatmul.mubr.f32.gmra.mxu0 %v8640_v11 }
 0x19f   : > { %2447 = vmatmul.mubr.f32.gmra.mxu1 %v8678_v56  ;;  %2579 = vmatprep.mubr.f32.mxu0 %v8599_v30 }
 0x1a0   : > { %2702 = vmatprep.mubr.f32.mxu1 %v8599_v30 }
 0x1a2   : > { %2581 = vmatmul.mubr.f32.gmra.mxu0 %v6476_v23 }
 0x1a3   : > { %2704 = vmatmul.mubr.f32.vlgmr.msra.gmra.mxu1 %v6430_v43  ;;  %2586 = vmatprep.mubr.f32.mxu0 %v8599_v30 }
 0x1a4   : > { %2709 = vmatprep.mubr.f32.mxu1 %v8599_v30 }
 0x1a5   : > { %v866_v61 = vpop.f32.mrf.mxu0 }
 0x1a6   : > { %2588 = vmatmul.mubr.f32.gmra.mxu0 %v6520_v51 }
 0x1a7   : > { %2711 = vmatmul.mubr.f32.gmra.mxu1 %v8640_v11  ;;  %2593 = vmatprep.mubr.f32.mxu0 %v8599_v30  ;;  %v7159_v16 = vpop.f32.mrf.mxu0  ;;  %v867_v11 = vadd.f32 %v866_v61, %v7169_v46 }
 0x1a8   : > { %2716 = vmatprep.mubr.f32.mxu1 %v8599_v30 }
 0x1a9   : > { %v877_v43 = vpop.f32.mrf.mxu0 }
 0x1aa   : > { %2595 = vmatmul.mubr.f32.gmra.mxu0 %v6577_v32  ;;  %v878_v29 = vadd.f32 %v877_v43, %v7181_v50 }
 0x1ab   : > { %2718 = vmatmul.mubr.f32.gmra.mxu1 %v6476_v23  ;;  %2600 = vmatprep.mubr.f32.mxu0 %v8599_v30  ;;  %v7165_v20 = vpop.f32.mrf.mxu0 }
 0x1ac   : > { %2723 = vmatprep.mubr.f32.mxu1 %v8599_v30 }
 0x1ae   : > { %2602 = vmatmul.mubr.f32.gmra.mxu0 %v6598_v4  ;;  %v888_v7 = vpop.f32.mrf.mxu0  ;;  %v1095_v55 = vpop.f32.mrf.mxu1 }
 0x1af   : > { %2725 = vmatmul.mubr.f32.gmra.mxu1 %v6520_v51  ;;  %2607 = vmatprep.mubr.f32.mxu0 %v8599_v30  ;;  %v1096_v23 = vadd.f32 %v1095_v55, %v867_v11 }
 0x1b0   : > { %2730 = vmatprep.mubr.f32.mxu1 %v8599_v30  ;;  %v7177_v42 = vpop.f32.mrf.mxu0  ;;  %v7179_v37 = vpop.f32.mrf.mxu1 }
 0x1b2   : > { %2609 = vmatmul.mubr.f32.gmra.mxu0 %v6618_v35 }
 0x1b3   : > { %2732 = vmatmul.mubr.f32.gmra.mxu1 %v6577_v32  ;;  %2614 = vmatprep.mubr.f32.mxu0 %v8599_v30  ;;  %v889_v32 = vadd.f32 %v888_v7, %v7154_v45 }
 0x1b4   : > { %2737 = vmatprep.mubr.f32.mxu1 %v8599_v30  ;;  %v899_v51 = vpop.f32.mrf.mxu0  ;;  %v1102_v59 = vpop.f32.mrf.mxu1 }
 0x1b5   : > { %v1103_v48 = vadd.f32 %v1102_v59, %v878_v29 }
 0x1b6   : > { %2616 = vmatmul.mubr.f32.gmra.mxu0 %v6639_v33  ;;  %v7189_v2 = vpop.f32.mrf.mxu0  ;;  %v7191_v0 = vpop.f32.mrf.mxu1 }
 0x1b7   : > { %2739 = vmatmul.mubr.f32.gmra.mxu1 %v6598_v4  ;;  %2911 = vmatprep.mubr.f32.mxu0 %v8599_v30  ;;  %v900_v4 = vadd.f32 %v899_v51, %v7167_v63 }
 0x1b8   : > { %2744 = vmatprep.mubr.f32.mxu1 %v8599_v30 }
 0x1ba   : > { %v910_v3 = vpop.f32.mrf.mxu0  ;;  %v1109_v17 = vpop.f32.mrf.mxu1 }
 0x1bb   : > { %2746 = vmatmul.mubr.f32.gmra.mxu1 %v6618_v35  ;;  %v7198_v34 = vadd.f32 %v1109_v17, %v889_v32  ;;  %v911_v57 = vadd.f32 %v910_v3, %v7145_v39 }
 0x1bc   : > { %2751 = vmatprep.mubr.f32.mxu1 %v8599_v30  ;;  %v7201_v9 = vpop.f32.mrf.mxu0  ;;  %v7203_v8 = vpop.f32.mrf.mxu1 }
 0x1be   : > { %v921_v21 = vpop.f32.mrf.mxu0 }
 0x1bf   : > { %2753 = vmatmul.mubr.f32.gmra.mxu1 %v6639_v33  ;;  %v1116_v36 = vpop.f32.mrf.mxu1  ;;  %v922_v33 = vadd.f32 %v921_v21, %v7152_v12 }
 0x1c0   : > { %v7207_v6 = vadd.f32 %v1116_v36, %v900_v4  ;;  %v7209_v41 = vpop.f32.mrf.mxu0  ;;  %3100 = vmatprep.mubr.f32.mxu1 %v8599_v30 }
 0x1c1   : > { %v7212_v35 = vpop.f32.mrf.mxu1 }
 0x1c2   : > { %v932_v53 = vpop.f32.mrf.mxu0 }
 0x1c3   : > { %v1123_v52 = vpop.f32.mrf.mxu1  ;;  %v933_v60 = vadd.f32 %v932_v53, %v7134_v5 }
 0x1c4   : > { %v7215_v47 = vadd.f32 %v1123_v52, %v911_v57  ;;  %v7217_v13 = vpop.f32.mrf.mxu0 }
 0x1c5   : > { %v7219_v31 = vpop.f32.mrf.mxu1 }
 0x1c6   : > { %v7222_v54 = vpop.f32.mrf.mxu0 }
 0x1c7   : > { %v1130_v14 = vpop.f32.mrf.mxu1 }
 0x1c8   : > { %v7224_v1 = vadd.f32 %v1130_v14, %v922_v33  ;;  %v7226_v22 = vpop.f32.mrf.mxu0 }
 0x1c9   : > { %v7228_v38 = vpop.f32.mrf.mxu1 }
 0x1ca   : > { %v1249_v62 = vpop.f32.mrf.mxu0 }
 0x1cb   : > { %v1137_v44 = vpop.f32.mrf.mxu1  ;;  %v1250_v40 = vadd.f32 %v1249_v62, %v1096_v23 }
 0x1cc   : > { %v7231_v24 = vadd.f32 %v1137_v44, %v933_v60  ;;  %v7233_v15 = vpop.f32.mrf.mxu0 }
 0x1cd   : > { %v7235_v25 = vpop.f32.mrf.mxu1 }
 0x1ce   : > { %8681 = vst [vmem:[#allocation10_spill] sm:$0xff] %v7231_v24  ;;  %v1257_v18 = vpop.f32.mrf.mxu0 }
 0x1cf   : > { %v7237_v10 = vpop.f32.mrf.mxu1  ;;  %v1258_v49 = vadd.f32 %v1257_v18, %v1103_v48 }
 0x1d0   : > { %v7239_v26 = vpop.f32.mrf.mxu0 }
 0x1d1   : > { %v7241_v28 = vpop.f32.mrf.mxu1 }
 0x1d2   : > { %v7243_v58 = vpop.f32.mrf.mxu0 }
 0x1d3   : > { %v1395_v27 = vpop.f32.mrf.mxu1 }
 0x1d4   : > { %v7245_v56 = vadd.f32 %v1395_v27, %v1250_v40  ;;  %v7247_v61 = vpop.f32.mrf.mxu0 }
 0x1d5   : > { %v7249_v43 = vpop.f32.mrf.mxu1 }
 0x1d8   : > { %v7251_v11 = vpop.f32.mrf.mxu0 }
 0x1d9   : > { %v1404_v7 = vpop.f32.mrf.mxu1 }
 0x1da   : > { %v7253_v55 = vadd.f32 %v1404_v7, %v1258_v49  ;;  %v7255_v23 = vpop.f32.mrf.mxu0 }
 0x1db   : > { %v7257_v29 = vpop.f32.mrf.mxu1 }
 0x1de   : > { %v7259_v51 = vpop.f32.mrf.mxu0 }
 0x1df   : > { %v7261_v59 = vpop.f32.mrf.mxu1 }
 0x1e0   : > { %v7263_v48 = vpop.f32.mrf.mxu0 }
 0x1e1   : > { %v7265_v32 = vpop.f32.mrf.mxu1 }
 0x1e2   : > { %v7267_v3 = vpop.f32.mrf.mxu0 }
 0x1e3   : > { %v7269_v17 = vpop.f32.mrf.mxu1 }
 0x1e4   : > { %8682 = vst [vmem:[#allocation15_spill] sm:$0xff] %v7269_v17  ;;  %v7271_v4 = vpop.f32.mrf.mxu0 }
 0x1e5   : > { %8683 = vst [vmem:[#allocation14_spill] sm:$0xff] %v7271_v4  ;;  %v7273_v21 = vpop.f32.mrf.mxu1 }
 0x1e6   : > { %8684 = vst [vmem:[#allocation17_spill] sm:$0xff] %v7273_v21  ;;  %v7275_v36 = vpop.f32.mrf.mxu0 }
 0x1e7   : > { %8685 = vst [vmem:[#allocation16_spill] sm:$0xff] %v7275_v36  ;;  %v7277_v57 = vpop.f32.mrf.mxu1 }
 0x1e8   : > { %8686 = vst [vmem:[#allocation13_spill] sm:$0xff] %v7277_v57  ;;  %v7279_v53 = vpop.f32.mrf.mxu0 }
 0x1e9   : > { %8687 = vst [vmem:[#allocation12_spill] sm:$0xff] %v7279_v53  ;;  %v7281_v52 = vpop.f32.mrf.mxu1 }
 0x1ea   : > { %8688 = vst [vmem:[#allocation19_spill] sm:$0xff] %v7281_v52  ;;  %v7283_v33 = vpop.f32.mrf.mxu0  ;;  %v891_v52 = vadd.f32 %v7177_v42, %v7154_v45  ;;  %v924_v42 = vadd.f32 %v7209_v41, %v7152_v12 }
 0x1eb   : > { %8689 = vst [vmem:[#allocation18_spill] sm:$0xff] %v7283_v33  ;;  %v7285_v14 = vpop.f32.mrf.mxu1 }
 0x1ec   : > { %8690 = vst [vmem:[#allocation20_spill] sm:$0xff] %v7285_v14  ;;  %v7287_v60 = vpop.f32.mrf.mxu0 }
 0x1ed   : > { %8691 = vst [vmem:[#allocation21_spill] sm:$0xff] %v7287_v60  ;;  %v7289_v62 = vpop.f32.mrf.mxu1 }
 0x1ee   : > { %8692 = vst [vmem:[#allocation23_spill] sm:$0xff] %v7289_v62  ;;  %v1578_v44 = vpop.f32.mrf.mxu0 }
 0x1ef   : > { %v7291_v40 = vpop.f32.mrf.mxu1 }
 0x1f0   : > { %8693 = vst [vmem:[#allocation25_spill] sm:$0xff] %v7291_v40  ;;  %v1580_v18 = vpop.f32.mrf.mxu0  ;;  %v2791_v40 = vld [vmem:[%s8503_s5] sm:$0xff] }
 0x1f1   : > { %v7293_v49 = vpop.f32.mrf.mxu1  ;;  %v7313_v4 = vsel %vm754_vm0, %v2791_v40, 0  ;;  %v935_v40 = vadd.f32 %v7217_v13, %v7134_v5 }
 0x1f2   : > { %8694 = vst [vmem:[#allocation28_spill] sm:$0xff] %v7293_v49  ;;  %v1585_v27 = vpop.f32.mrf.mxu0 }
 0x1f3   : > { %v7295_v7 = vpop.f32.mrf.mxu1  ;;  %v1140_v13 = vadd.f32 %v7235_v25, %v935_v40  ;;  %v1579_v25 = vadd.f32 %v1578_v44, %v7245_v56 }
 0x1f4   : > { %8695 = vst [vmem:[#allocation31_spill] sm:$0xff] %v7295_v7  ;;  %v1587_v30 = vpop.f32.mrf.mxu0  ;;  %v869_v7 = vadd.f32 %v7159_v16, %v7169_v46  ;;  %v913_v16 = vadd.f32 %v7201_v9, %v7145_v39  ;;  %v7334_v9 = vand.u32 4294901760, %v7313_v4 }
 0x1f5   : > { %v7297_v57 = vpop.f32.mrf.mxu1 }
 0x1f6   : > { %8696 = vst [vmem:[#allocation22_spill] sm:$0xff] %v7297_v57  ;;  %v1592_v53 = vpop.f32.mrf.mxu0  ;;  %v880_v57 = vadd.f32 %v7165_v20, %v7181_v50  ;;  %v1112_v20 = vadd.f32 %v7203_v8, %v891_v52  ;;  %v1126_v41 = vadd.f32 %v7219_v31, %v913_v16  ;;  %v1133_v52 = vadd.f32 %v7228_v38, %v924_v42 }
 0x1f7   : > { %v1715_v33 = vpop.f32.mrf.mxu1  ;;  %v1274_v38 = vadd.f32 %v7251_v11, %v7207_v6 }
 0x1f8   : > { %v1594_v36 = vpop.f32.mrf.mxu0  ;;  %v1105_v21 = vadd.f32 %v7191_v0, %v880_v57  ;;  %v1268_v31 = vadd.f32 %v7247_v61, %v1112_v20  ;;  %v1586_v61 = vadd.f32 %v1585_v27, %v7253_v55  ;;  %v1716_v6 = vadd.f32 %v1715_v33, %v1579_v25  ;;  %v8699_v20 = vld [vmem:[#allocation15_spill] sm:$0xff] }
 0x1f9   : > { %v1717_v14 = vpop.f32.mrf.mxu1  ;;  %v8702_v55 = vld [vmem:[#allocation19_spill] sm:$0xff] }
 0x1fa   : > { %v1416_v56 = vadd.f32 %v7265_v32, %v1268_v31  ;;  %5775 = vtanh.f32 %v1716_v6  ;;  %v8711_v6 = vld [vmem:[#allocation18_spill] sm:$0xff] }
 0x1fc   : > { %v7299_v24 = vpop.f32.mrf.mxu0  ;;  %v1595_v27 = vadd.f32 %v1594_v36, %v1416_v56 }
 0x1fd   : > { %8697 = vst [vmem:[#allocation27_spill] sm:$0xff] %v7299_v24  ;;  %v1722_v60 = vpop.f32.mrf.mxu1  ;;  %v1098_v24 = vadd.f32 %v7179_v37, %v869_v7  ;;  %v944_v37 = vadd.f32 %v7222_v54, %v7143_v19 }
 0x1fe   : > { %v7301_v62 = vpop.f32.mrf.mxu0 }
 0x1ff   : > { %8698 = vst [vmem:[#allocation24_spill] sm:$0xff] %v7301_v62  ;;  %v1724_v49 = vpop.f32.mrf.mxu1  ;;  %v902_v62 = vadd.f32 %v7189_v2, %v7167_v63  ;;  %v946_v2 = vadd.f32 %v7226_v22, %v7143_v19  ;;  %v1252_v0 = vadd.f32 %v7233_v15, %v1098_v24  ;;  %v1145_v54 = vadd.f32 %v7237_v10, %v944_v37 }
 0x200   : > { %v1260_v22 = vadd.f32 %v7239_v26, %v1105_v21  ;;  %v1282_v26 = vadd.f32 %v7259_v51, %v7215_v47  ;;  %v1423_v47 = vadd.f32 %v8699_v20, %v1274_v38  ;;  %v8700_v51 = vld [vmem:[#allocation17_spill] sm:$0xff]  ;;  %v8708_v38 = vld [vmem:[#allocation20_spill] sm:$0xff] }
 0x201   : > { %v1119_v8 = vadd.f32 %v7212_v35, %v902_v62  ;;  %v7342_v5 = vadd.f32 %v7241_v28, %v946_v2  ;;  %v1398_v24 = vadd.f32 %v7249_v43, %v1252_v0  ;;  %v1266_v35 = vadd.f32 %v7243_v58, %v7198_v34  ;;  %v8703_v0 = vld [vmem:[#allocation10_spill] sm:$0xff]  ;;  %v8713_v20 = vld [vmem:[#allocation21_spill] sm:$0xff] }
 0x202   : > { %v7319_v17 = vpop.f32.mrf.mxu0  ;;  %v1407_v28 = vadd.f32 %v7257_v29, %v1260_v22  ;;  %v1284_v58 = vadd.f32 %v7263_v48, %v1126_v41  ;;  %v8701_v48 = vld [vmem:[#allocation14_spill] sm:$0xff]  ;;  %v8706_v22 = vld [vmem:[#allocation23_spill] sm:$0xff]  ;;  %v1306_v56 = vadd.f32 %v8711_v6, %v1145_v54 }
 0x203   : > { %v1729_v45 = vpop.f32.mrf.mxu1  ;;  %v1276_v10 = vadd.f32 %v7255_v23, %v1119_v8  ;;  %v1581_v43 = vadd.f32 %v1580_v18, %v1398_v24  ;;  %v1414_v34 = vadd.f32 %v7261_v59, %v1266_v35  ;;  %v1290_v23 = vadd.f32 %v7267_v3, %v7224_v1  ;;  %v8704_v8 = vld [vmem:[#allocation16_spill] sm:$0xff] }
 0x204   : > { %v1608_v57 = vpop.f32.mrf.mxu0  ;;  %v1588_v44 = vadd.f32 %v1587_v30, %v1407_v28  ;;  %v1723_v59 = vadd.f32 %v1722_v60, %v1586_v61  ;;  %v1292_v37 = vadd.f32 %v8701_v48, %v1133_v52  ;;  %v1434_v33 = vadd.f32 %v8702_v55, %v1284_v58  ;;  %v8707_v52 = vld [vmem:[#allocation12_spill] sm:$0xff]  ;;  %v8710_v58 = vld [vmem:[#allocation13_spill] sm:$0xff] }
 0x205   : > { %v1731_v7 = vpop.f32.mrf.mxu1  ;;  %v1718_v29 = vadd.f32 %v1717_v14, %v1581_v43  ;;  %v1425_v18 = vadd.f32 %v8700_v51, %v1276_v10  ;;  %v1593_v42 = vadd.f32 %v1592_v53, %v1414_v34  ;;  %v1298_v1 = vadd.f32 %v8704_v8, %v8703_v0  ;;  %v8709_v10 = vld [vmem:[#allocation25_spill] sm:$0xff] }
 0x206   : > { %v1613_v15 = vpop.f32.mrf.mxu0  ;;  %v1725_v2 = vadd.f32 %v1724_v49, %v1588_v44  ;;  %v8705_v30 = vld [vmem:[#allocation24_spill] sm:$0xff]  ;;  %v1443_v24 = vadd.f32 %v8706_v22, %v1292_v37  ;;  %v1609_v53 = vadd.f32 %v1608_v57, %v1434_v33  ;;  %v1732_v60 = vadd.f32 %v1731_v7, %v1595_v27  ;;  %v8715_v37 = vld [vmem:[#allocation27_spill] sm:$0xff]  ;;  %v8716_v27 = vld [vmem:[#allocation22_spill] sm:$0xff] }
 0x207   : > { %v7352_v62 = vpop.f32.mrf.mxu1  ;;  %v1602_v3 = vadd.f32 %v8705_v30, %v1425_v18  ;;  %v1730_v14 = vadd.f32 %v1729_v45, %v1593_v42  ;;  %5777 = vtanh.f32 %v1718_v29  ;;  %v1300_v31 = vadd.f32 %v8707_v52, %v1140_v13  ;;  %v8712_v44 = vld [vmem:[#allocation28_spill] sm:$0xff]  ;;  %v2792_v8 = vld [vmem:[%s8503_s5 + $0x8] sm:$0xff]  ;;  %v5776_v22 = vpop.eup %5775 }
 0x208   : > { %v1615_v21 = vpop.f32.mrf.mxu0  ;;  %v1441_v36 = vadd.f32 %v8708_v38, %v1290_v23  ;;  %5779 = vtanh.f32 %v1723_v59  ;;  %v1450_v28 = vadd.f32 %v8709_v10, %v1298_v1  ;;  %v1432_v61 = vadd.f32 %v8710_v58, %v1282_v26  ;;  %v8714_v26 = vld [vmem:[#allocation31_spill] sm:$0xff] }
 0x209   : > { %v1738_v11 = vpop.f32.mrf.mxu1  ;;  %5781 = vtanh.f32 %v1725_v2  ;;  %v1616_v43 = vadd.f32 %v1615_v21, %v1443_v24  ;;  %v1452_v13 = vadd.f32 %v8712_v44, %v1300_v31  ;;  %v1308_v51 = vadd.f32 %v8713_v20, %v7342_v5  ;;  %v2794_v58 = vld [vmem:[%s8503_s5 + $0x18] sm:$0xff] }
 0x20a   : > { %v1620_v16 = vpop.f32.mrf.mxu0  ;;  %v1739_v49 = vadd.f32 %v1738_v11, %v1602_v3  ;;  %5783 = vtanh.f32 %v1730_v14  ;;  %v1614_v57 = vadd.f32 %v1613_v15, %v1441_v36  ;;  %v1607_v21 = vadd.f32 %v7319_v17, %v1432_v61 }
 0x20b   : > { %v1743_v40 = vpop.f32.mrf.mxu1  ;;  %5785 = vtanh.f32 %v1732_v60  ;;  %v1621_v23 = vadd.f32 %v1620_v16, %v1450_v28  ;;  %v1459_v59 = vadd.f32 %v8714_v26, %v1306_v56  ;;  %v1600_v55 = vadd.f32 %v8715_v37, %v1423_v47  ;;  %v2793_v60 = vld [vmem:[%s8503_s5 + $0x10] sm:$0xff] }
 0x20c   : > { %v1622_v32 = vpop.f32.mrf.mxu0  ;;  %5787 = vtanh.f32 %v1739_v49  ;;  %v1744_v33 = vadd.f32 %v1743_v40, %v1607_v21  ;;  %v1461_v2 = vadd.f32 %v8716_v27, %v1308_v51  ;;  %v7390_v47 = vsub.f32 %v7313_v4, %v7334_v9 }
 0x20d   : > { %v1745_v41 = vpop.f32.mrf.mxu1  ;;  %v1623_v54 = vadd.f32 %v1622_v32, %v1452_v13  ;;  %v1737_v32 = vadd.f32 %v7352_v62, %v1600_v55  ;;  %v7432_v20 = vsel %vm754_vm0, %v2794_v58, 0 }
 0x20e   : > { %v1627_v35 = vpop.f32.mrf.mxu0  ;;  %v1746_v34 = vadd.f32 %v1745_v41, %v1609_v53  ;;  %8717 = vst [vmem:[#allocation30_spill] sm:$0xff] %v7390_v47  ;;  %v2823_v41 = vsel %vm754_vm0, %v2792_v8, 0  ;;  %v7400_v52 = vand.u32 4294901760, %v7390_v47  ;;  %v8723_v8 = vld [vmem:[#allocation11_spill] sm:$0xff] }
 0x20f   : > { %v1750_v25 = vpop.f32.mrf.mxu1  ;;  %v1628_v0 = vadd.f32 %v1627_v35, %v1459_v59 }
 0x210   : > { %v1629_v45 = vpop.f32.mrf.mxu0  ;;  %v1751_v18 = vadd.f32 %v1750_v25, %v1614_v57  ;;  %5789 = vtanh.f32 %v1746_v34  ;;  %8718 = vst [vmem:[#allocation26_spill] sm:$0xff] %v7400_v52  ;;  %v7405_v25 = vand.u32 4294901760, %v2823_v41 }
 0x211   : > { %v1752_v7 = vpop.f32.mrf.mxu1  ;;  %v1630_v40 = vadd.f32 %v1629_v45, %v1461_v2 }
 0x212   : > { %v1753_v29 = vadd.f32 %v1752_v7, %v1616_v43  ;;  %v1856_v11 = vpop.f32.mrf.mxu0  ;;  %v2826_v43 = vsel %vm754_vm0, %v2793_v60, 0  ;;  %v7423_v7 = vsub.f32 %v2823_v41, %v7405_v25 }
 0x213   : > { %v1757_v42 = vpop.f32.mrf.mxu1  ;;  %v1857_v24 = vadd.f32 %v1856_v11, %v7169_v46  ;;  %v7425_v44 = vand.u32 4294901760, %v2826_v43  ;;  %v7429_v11 = vand.u32 4294901760, %v5776_v22 }
 0x214   : > { %v1758_v15 = vadd.f32 %v1757_v42, %v1621_v23  ;;  %v1858_v48 = vpop.f32.mrf.mxu0  ;;  %5791 = vtanh.f32 %v1753_v29  ;;  %v7397_v4 = vpop.eup %5777  ;;  %8719 = vst [vmem:[#allocation33_spill] sm:$0xff] %v7423_v7  ;;  %v7444_v55 = vand.u32 4294901760, %v7423_v7 }
 0x215   : > { %v1759_v16 = vpop.f32.mrf.mxu1  ;;  %v5780_v31 = vpop.eup %5779  ;;  %v1859_v38 = vadd.f32 %v1858_v48, %v7169_v46  ;;  %v2915_v46 = vsub.f32 %v7390_v47, %v7400_v52  ;;  %8720 = vst [vmem:[#allocation29_spill] sm:$0xff] %v7425_v44  ;;  %v7455_v2 = vand.u32 4294901760, %v7397_v4 }
 0x216   : > { %5793 = vtanh.f32 %v1758_v15  ;;  %v1760_v5 = vadd.f32 %v1759_v16, %v1623_v54  ;;  %v1867_v17 = vpop.f32.mrf.mxu0  ;;  %v5782_v10 = vpop.eup %5781  ;;  %v7427_v29 = vand.u32 4294901760, %v5780_v31  ;;  %8722 = vst [vmem:[#allocation34_spill] sm:$0xff] %v7444_v55 }
 0x217   : > { %5795 = vtanh.f32 %v1751_v18  ;;  %v1764_v1 = vpop.f32.mrf.mxu1  ;;  %v7408_v34 = vpop.eup %5783  ;;  %v1868_v56 = vadd.f32 %v1867_v17, %v7181_v50  ;;  %v7437_v26 = vand.u32 4294901760, %v5782_v10  ;;  %v7439_v15 = vand.u32 4294901760, %v2915_v46 }
 0x218   : > { %5797 = vtanh.f32 %v1760_v5  ;;  %v1765_v30 = vadd.f32 %v1764_v1, %v1628_v0  ;;  %v1869_v3 = vpop.f32.mrf.mxu0  ;;  %v7415_v61 = vpop.eup %5785  ;;  %v7458_v0 = vsub.f32 %v5780_v31, %v7427_v29  ;;  %v7461_v5 = vsub.f32 %v5776_v22, %v7429_v11 }
 0x219   : > { %5799 = vtanh.f32 %v1744_v33  ;;  %v1766_v14 = vpop.f32.mrf.mxu1  ;;  %v7419_v6 = vpop.eup %5787  ;;  %v1870_v21 = vadd.f32 %v1869_v3, %v7181_v50  ;;  %8721 = vst [vmem:[#allocation32_spill] sm:$0xff] %v7439_v15  ;;  %v7447_v33 = vsub.f32 %v2826_v43, %v7425_v44  ;;  %v7450_v50 = vand.u32 4294901760, %v7432_v20 }
 0x21a   : > { %5801 = vtanh.f32 %v1765_v30  ;;  %v1767_v53 = vadd.f32 %v1766_v14, %v1630_v40  ;;  %v1878_v62 = vpop.f32.mrf.mxu0  ;;  %v7469_v3 = vsub.f32 %v5782_v10, %v7437_v26  ;;  %v7476_v22 = vand.u32 4294901760, %v7415_v61 }
 0x21b   : > { %5803 = vtanh.f32 %v1737_v32  ;;  %v2085_v35 = vpop.f32.mrf.mxu1  ;;  %v1879_v32 = vadd.f32 %v1878_v62, %v8723_v8  ;;  %v7479_v60 = vand.u32 4294901760, %v7408_v34 }
 0x21c   : > { %5805 = vtanh.f32 %v1767_v53  ;;  %v7403_v36 = vadd.f32 %v2085_v35, %v1857_v24  ;;  %v1880_v49 = vpop.f32.mrf.mxu0 }
 0x21d   : > { %v2087_v28 = vpop.f32.mrf.mxu1  ;;  %v5790_v13 = vpop.eup %5789  ;;  %v1881_v35 = vadd.f32 %v1880_v49, %v8723_v8 }
 0x21e   : > { %v7410_v45 = vadd.f32 %v2087_v28, %v1859_v38  ;;  %v7473_v53 = vand.u32 4294901760, %v5790_v13 }
 0x220   : > { %v1889_v57 = vpop.f32.mrf.mxu0 }
 0x221   : > { %v2092_v23 = vpop.f32.mrf.mxu1  ;;  %v5792_v51 = vpop.eup %5791  ;;  %v1890_v58 = vadd.f32 %v1889_v57, %v7167_v63 }
 0x222   : > { %v7435_v18 = vadd.f32 %v2092_v23, %v1868_v56  ;;  %v1891_v42 = vpop.f32.mrf.mxu0  ;;  %v7466_v30 = vand.u32 4294901760, %v5792_v51  ;;  %v7493_v23 = vand.u32 4294901760, %v7419_v6 }
 0x223   : > { %v5794_v59 = vpop.eup %5793  ;;  %v2094_v54 = vpop.f32.mrf.mxu1  ;;  %v1892_v57 = vadd.f32 %v1891_v42, %v7167_v63 }
 0x224   : > { %v5796_v48 = vpop.eup %5795  ;;  %v7441_v37 = vadd.f32 %v2094_v54, %v1870_v21  ;;  %v7452_v27 = vand.u32 4294901760, %v5794_v59 }
 0x225   : > { %v5798_v16 = vpop.eup %5797  ;;  %v7471_v24 = vand.u32 4294901760, %v5796_v48 }
 0x226   : > { %v5800_v17 = vpop.eup %5799  ;;  %v1900_v1 = vpop.f32.mrf.mxu0  ;;  %v7464_v40 = vand.u32 4294901760, %v5798_v16  ;;  %v7496_v21 = vsub.f32 %v5794_v59, %v7452_v27  ;;  %v7515_v59 = vsub.f32 %v5790_v13, %v7473_v53 }
 0x227   : > { %v5802_v14 = vpop.eup %5801  ;;  %v2099_v41 = vpop.f32.mrf.mxu1  ;;  %v7490_v56 = vand.u32 4294901760, %v5800_v17  ;;  %v7512_v19 = vsub.f32 %v5796_v48, %v7471_v24 }
 0x228   : > { %v5804_v62 = vpop.eup %5803  ;;  %v7482_v31 = vadd.f32 %v2099_v41, %v1879_v32  ;;  %v1902_v38 = vpop.f32.mrf.mxu0  ;;  %v7484_v10 = vand.u32 4294901760, %v5802_v14  ;;  %v7487_v28 = vsub.f32 %v5798_v16, %v7464_v40  ;;  %v7506_v32 = vsub.f32 %v5792_v51, %v7466_v30 }
 0x229   : > { %v5806_v43 = vpop.eup %5805  ;;  %v2101_v46 = vpop.f32.mrf.mxu1  ;;  %8725 = vst [vmem:[#allocation17_spill] sm:$0xff] %v7490_v56  ;;  %v7528_v13 = vsub.f32 %v5800_v17, %v7490_v56 }
 0x22a   : > { %8724 = vst [vmem:[#allocation15_spill] sm:$0xff] %v7482_v31  ;;  %v7498_v49 = vadd.f32 %v2101_v46, %v1881_v35  ;;  %v1911_v54 = vpop.f32.mrf.mxu0  ;;  %v7500_v8 = vand.u32 4294901760, %v5806_v43  ;;  %v7503_v16 = vsub.f32 %v5802_v14, %v7484_v10  ;;  %v7509_v31 = vand.u32 4294901760, %v5804_v62 }
 0x22b   : > { %v2106_v41 = vpop.f32.mrf.mxu1  ;;  %v8737_v47 = vand.u32 4294901760, %v7506_v32 }
 0x22c   : > { %8726 = vst [vmem:[#allocation14_spill] sm:$0xff] %v7498_v49  ;;  %v7517_v35 = vadd.f32 %v2106_v41, %v1890_v58  ;;  %v1913_v46 = vpop.f32.mrf.mxu0  ;;  %2848 = vmatprep.subr.mxu0 %v7500_v8  ;;  %v7521_v14 = vsub.f32 %v5806_v43, %v7500_v8  ;;  %v7532_v58 = vsub.f32 %v7419_v6, %v7493_v23  ;;  %v8729_v6 = vand.u32 4294901760, %v7503_v16 }
 0x22d   : > { %v2108_v42 = vpop.f32.mrf.mxu1  ;;  %2850 = vmatpush1.msra.mxu0 %v7484_v10  ;;  %v7536_v43 = vsub.f32 %v7415_v61, %v7476_v22  ;;  %v1901_v41 = vadd.f32 %v1900_v1, %v7145_v39 }
 0x22e   : > { %8727 = vst [vmem:[#allocation19_spill] sm:$0xff] %v7517_v35  ;;  %v7539_v51 = vadd.f32 %v2108_v42, %v1892_v57  ;;  %v1922_v63 = vpop.f32.mrf.mxu0  ;;  %2852 = vmatprep.subr.mxu0 %v7464_v40  ;;  %v2981_v49 = vsub.f32 %v7503_v16, %v8729_v6  ;;  %v7551_v57 = vsub.f32 %v5804_v62, %v7509_v31  ;;  %v8732_v17 = vand.u32 4294901760, %v7521_v14 }
 0x22f   : > { %v2113_v35 = vpop.f32.mrf.mxu1  ;;  %2854 = vmatpush1.msra.mxu0 %v7452_v27  ;;  %v1903_v42 = vadd.f32 %v1902_v38, %v7145_v39  ;;  %v8733_v6 = vand.u32 4294901760, %v7487_v28  ;;  %v8734_v62 = vand.u32 4294901760, %v7496_v21 }
 0x230   : > { %8728 = vst [vmem:[#allocation10_spill] sm:$0xff] %v7539_v51  ;;  %v7554_v51 = vadd.f32 %v2113_v35, %v1901_v41  ;;  %v7556_v48 = vpop.f32.mrf.mxu0  ;;  %2856 = vmatprep.subr.mxu0 %v7466_v30  ;;  %v2975_v52 = vsub.f32 %v7521_v14, %v8732_v17  ;;  %v7573_v41 = vsub.f32 %v7408_v34, %v7479_v60  ;;  %v2982_v35 = vand.u32 4294901760, %v2981_v49 }
 0x231   : > { %8731 = vst [vmem:[#allocation24_spill] sm:$0xff] %v7556_v48  ;;  %v2987_v61 = vsub.f32 %v7487_v28, %v8733_v6  ;;  %v2115_v1 = vpop.f32.mrf.mxu1  ;;  %2858 = vmatpush1.msra.mxu0 %v7471_v24  ;;  %v2993_v39 = vsub.f32 %v7496_v21, %v8734_v62  ;;  %v1912_v17 = vadd.f32 %v1911_v54, %v7152_v12  ;;  %v8738_v34 = vand.u32 4294901760, %v7512_v19 }
 0x232   : > { %8730 = vst [vmem:[#allocation16_spill] sm:$0xff] %v7554_v51  ;;  %v7576_v51 = vadd.f32 %v2115_v1, %v1903_v42  ;;  %v7578_v6 = vpop.f32.mrf.mxu0  ;;  %2860 = vmatprep.subr.mxu0 %v7473_v53  ;;  %v2976_v48 = vand.u32 4294901760, %v2975_v52  ;;  %v2999_v62 = vsub.f32 %v7506_v32, %v8737_v47  ;;  %v1914_v42 = vadd.f32 %v1913_v46, %v7152_v12 }
 0x233   : > { %8736 = vst [vmem:[#allocation12_spill] sm:$0xff] %v7578_v6  ;;  %v2120_v38 = vpop.f32.mrf.mxu1  ;;  %2862 = vmatpush1.msra.mxu0 %v7490_v56  ;;  %v3005_v44 = vsub.f32 %v7512_v19, %v8738_v34  ;;  %v2988_v47 = vand.u32 4294901760, %v2987_v61  ;;  %v8740_v49 = vand.u32 4294901760, %v7515_v59  ;;  %v2994_v34 = vand.u32 4294901760, %v2993_v39 }
 0x234   : > { %8735 = vst [vmem:[#allocation23_spill] sm:$0xff] %v7576_v51  ;;  %v7591_v51 = vadd.f32 %v2120_v38, %v1912_v17  ;;  %v7593_v52 = vpop.f32.mrf.mxu0  ;;  %2864 = vmatprep.subr.mxu0 %v7493_v23  ;;  %2977 = vmatprep.subr.mxu1 %v2976_v48  ;;  %v8741_v1 = vand.u32 4294901760, %v7528_v13  ;;  %v7606_v38 = vsub.f32 %v7397_v4, %v7455_v2  ;;  %v8742_v48 = vld [vmem:[#allocation9_spill] sm:$0xff]  ;;  %v8744_v39 = vand.u32 4294901760, %v7532_v58 }
 0x235   : > { %v3011_v6 = vsub.f32 %v7515_v59, %v8740_v49  ;;  %v2122_v56 = vpop.f32.mrf.mxu1  ;;  %2866 = vmatpush1.msra.mxu0 %v7509_v31  ;;  %2983 = vmatpush1.msra.mxu1 %v2982_v35  ;;  %v1923_v61 = vadd.f32 %v1922_v63, %v8742_v48  ;;  %v3000_v35 = vand.u32 4294901760, %v2999_v62  ;;  %v3006_v4 = vand.u32 4294901760, %v3005_v44 }
 0x236   : > { %8739 = vst [vmem:[#allocation20_spill] sm:$0xff] %v7591_v51  ;;  %v3017_v12 = vsub.f32 %v7528_v13, %v8741_v1  ;;  %v7609_v17 = vadd.f32 %v2122_v56, %v1914_v42  ;;  %v2239_v49 = vpop.f32.mrf.mxu0  ;;  %2868 = vmatprep.subr.mxu0 %v7476_v22  ;;  %2989 = vmatprep.subr.mxu1 %v2988_v47  ;;  %v8745_v63 = vand.u32 4294901760, %v7551_v57  ;;  %v8565_v42 = vand.u32 4294901760, %v7469_v3 }
 0x237   : > { %v3023_v54 = vsub.f32 %v7532_v58, %v8744_v39  ;;  %v2127_v1 = vpop.f32.mrf.mxu1  ;;  %v2240_v46 = vadd.f32 %v2239_v49, %v7403_v36  ;;  %2870 = vmatpush1.msra.mxu0 %v7479_v60  ;;  %2995 = vmatpush1.msra.mxu1 %v2994_v34  ;;  %v3012_v47 = vand.u32 4294901760, %v3011_v6  ;;  %v8747_v39 = vand.u32 4294901760, %v7536_v43 }
 0x238   : > { %8743 = vst [vmem:[#allocation25_spill] sm:$0xff] %v7609_v17  ;;  %v3029_v56 = vsub.f32 %v7551_v57, %v8745_v63  ;;  %v7621_v51 = vadd.f32 %v2127_v1, %v1923_v61  ;;  %v2241_v62 = vpop.f32.mrf.mxu0  ;;  %2872 = vmatprep.subr.mxu0 %v7437_v26  ;;  %3001 = vmatprep.subr.mxu1 %v3000_v35  ;;  %v3018_v61 = vand.u32 4294901760, %v3017_v12 }
 0x239   : > { %v3035_v36 = vsub.f32 %v7536_v43, %v8747_v39  ;;  %v7628_v44 = vpop.f32.mrf.mxu1  ;;  %v2242_v49 = vadd.f32 %v2241_v62, %v7410_v45  ;;  %2874 = vmatpush1.msra.mxu0 %v7427_v29  ;;  %3007 = vmatpush1.msra.mxu1 %v3006_v4  ;;  %v2926_v1 = vsub.f32 %v7423_v7, %v7444_v55  ;;  %v3024_v63 = vand.u32 4294901760, %v3023_v54 }
 0x23a   : > { %8746 = vst [vmem:[#allocation13_spill] sm:$0xff] %v7621_v51  ;;  %v2247_v6 = vpop.f32.mrf.mxu0  ;;  %2876 = vmatprep.subr.mxu0 %v7455_v2  ;;  %3013 = vmatprep.subr.mxu1 %v3012_v47  ;;  %v8748_v39 = vand.u32 4294901760, %v7573_v41  ;;  %v7640_v45 = vand.u32 4294901760, %v7447_v33  ;;  %v3030_v4 = vand.u32 4294901760, %v3029_v56  ;;  %v3047_v47 = vsub.f32 %v7469_v3, %v8565_v42 }
 0x23b   : > { %v7642_v62 = vpop.f32.mrf.mxu1  ;;  %v2248_v12 = vadd.f32 %v2247_v6, %v7435_v18  ;;  %2878 = vmatpush1.msra.mxu0 %v7429_v11  ;;  %3019 = vmatpush1.msra.mxu1 %v3018_v61  ;;  %v8750_v51 = vand.u32 4294901760, %v7458_v0  ;;  %v7656_v18 = vsub.f32 %v7432_v20, %v7450_v50  ;;  %v7662_v6 = vand.u32 4294901760, %v2926_v1 }
 0x23c   : > { %v3041_v34 = vsub.f32 %v7573_v41, %v8748_v39  ;;  %8749 = vst [vmem:[#allocation18_spill] sm:$0xff] %v7640_v45  ;;  %v2249_v35 = vpop.f32.mrf.mxu0  ;;  %2917 = vmatmul.mubr.f32.vlgmr.msra.gmra.mxu0 %v7439_v15  ;;  %3025 = vmatprep.subr.mxu1 %v3024_v63  ;;  %v3036_v39 = vand.u32 4294901760, %v3035_v36  ;;  %v8753_v63 = vand.u32 4294901760, %v7606_v38  ;;  %v3048_v1 = vand.u32 4294901760, %v3047_v47 }
 0x23d   : > { %v3053_v17 = vsub.f32 %v7458_v0, %v8750_v51  ;;  %v7658_v56 = vpop.f32.mrf.mxu1  ;;  %v2250_v61 = vadd.f32 %v2249_v35, %v7441_v37  ;;  %3147 = vmatprep.subr.mxu0 %v7521_v14  ;;  %3031 = vmatpush1.msra.mxu1 %v3030_v4  ;;  %8752 = vst [vmem:[#allocation21_spill] sm:$0xff] %v7662_v6  ;;  %v8755_v37 = vmov 0.0   ;;  %v8756_v35 = vand.u32 4294901760, %v7461_v5 }
 0x23e   : > { %8751 = vst [vmem:[#allocation28_spill] sm:$0xff] %v7658_v56  ;;  %v3059_v36 = vsub.f32 %v7606_v38, %v8753_v63  ;;  %v7667_v42 = vpop.f32.mrf.mxu0  ;;  %3150 = vmatpush1.msra.mxu0 %v7503_v16  ;;  %3037 = vmatprep.subr.mxu1 %v3036_v39  ;;  %v3042_v20 = vand.u32 4294901760, %v3041_v34  ;;  %v2937_v51 = vsub.f32 %v7447_v33, %v7640_v45  ;;  %v7683_v39 = vand.u32 4294901760, %v7656_v18 }
 0x23f   : > { %8754 = vst [vmem:[#allocation31_spill] sm:$0xff] %v7667_v42  ;;  %v2385_v54 = vpop.f32.mrf.mxu1  ;;  %3153 = vmatprep.subr.mxu0 %v7487_v28  ;;  %2922 = vmatprep.mubr.f32.mxu0 %v8755_v37  ;;  %v3065_v4 = vsub.f32 %v7461_v5, %v8756_v35  ;;  %v3054_v34 = vand.u32 4294901760, %v3053_v17 }
 0x240   : > { %v7677_v63 = vadd.f32 %v2385_v54, %v2240_v46  ;;  %v7679_v15 = vpop.f32.mrf.mxu0  ;;  %3043 = vmatpush1.msra.mxu1 %v3042_v20  ;;  %3156 = vmatpush1.msra.mxu0 %v7496_v21  ;;  %8758 = vst [vmem:[#allocation22_spill] sm:$0xff] %v7683_v39  ;;  %v3060_v47 = vand.u32 4294901760, %v3059_v36  ;;  %v7689_v46 = vand.u32 4294901760, %v2937_v51  ;;  %v2948_v36 = vsub.f32 %v7656_v18, %v7683_v39 }
 0x241   : > { %v2387_v42 = vpop.f32.mrf.mxu1  ;;  %2928 = vmatmul.mubr.f32.gmra.mxu0 %v7662_v6  ;;  %3049 = vmatprep.subr.mxu1 %v3048_v1  ;;  %v3066_v54 = vand.u32 4294901760, %v3065_v4  ;;  %v8767_v6 = vld [vmem:[#allocation30_spill] sm:$0xff] }
 0x242   : > { %8757 = vst [vmem:[#allocation27_spill] sm:$0xff] %v7677_v63  ;;  %v7686_v56 = vadd.f32 %v2387_v42, %v2242_v49  ;;  %3159 = vmatprep.subr.mxu0 %v7506_v32  ;;  %3055 = vmatpush1.msra.mxu1 %v3054_v34  ;;  %8760 = vst [vmem:[#allocation9_spill] sm:$0xff] %v7689_v46  ;;  %v7711_v35 = vand.u32 4294901760, %v2948_v36  ;;  %v8769_v63 = vand.u32 4294901760, %v7521_v14 }
 0x243   : > { %3162 = vmatpush1.msra.mxu0 %v7512_v19  ;;  %3061 = vmatprep.subr.mxu1 %v3060_v47 }
 0x244   : > { %8759 = vst [vmem:[#allocation11_spill] sm:$0xff] %v7686_v56  ;;  %v7692_v17 = vpop.f32.mrf.mxu0  ;;  %3165 = vmatprep.subr.mxu0 %v7515_v59  ;;  %2933 = vmatprep.mubr.f32.mxu0 %v8755_v37  ;;  %8763 = vst [vmem:[#allocation37_spill] sm:$0xff] %v7711_v35 }
 0x245   : > { %v2394_v42 = vpop.f32.mrf.mxu1  ;;  %3067 = vmatpush1.msra.mxu1 %v3066_v54  ;;  %3168 = vmatpush1.msra.mxu0 %v7528_v13 }
 0x246   : > { %v7699_v49 = vadd.f32 %v2394_v42, %v2248_v12  ;;  %v7701_v20 = vpop.f32.mrf.mxu0  ;;  %2939 = vmatmul.mubr.f32.gmra.mxu0 %v7689_v46  ;;  %3102 = vmatmul.mubr.f32.vlgmr.msra.gmra.mxu1 %v7334_v9  ;;  %v8766_v46 = vld [vmem:[#allocation29_spill] sm:$0xff] }
 0x247   : > { %v2396_v51 = vpop.f32.mrf.mxu1  ;;  %3171 = vmatprep.subr.mxu0 %v7532_v58  ;;  %3275 = vmatprep.subr.mxu1 %v7500_v8 }
 0x248   : > { %8761 = vst [vmem:[#allocation35_spill] sm:$0xff] %v7699_v49  ;;  %v7707_v1 = vadd.f32 %v2396_v51, %v2250_v61  ;;  %3174 = vmatpush1.msra.mxu0 %v7551_v57  ;;  %3277 = vmatpush1.msra.mxu1 %v7484_v10  ;;  %v8765_v51 = vld [vmem:[#allocation17_spill] sm:$0xff]  ;;  %v8770_v49 = vand.u32 4294901760, %v7503_v16  ;;  %v8772_v16 = vand.u32 4294901760, %v7496_v21 }
 0x249   : > { %3177 = vmatprep.subr.mxu0 %v7536_v43  ;;  %3279 = vmatprep.subr.mxu1 %v7464_v40 }
 0x24a   : > { %8762 = vst [vmem:[#allocation36_spill] sm:$0xff] %v7707_v1  ;;  %v7715_v12 = vpop.f32.mrf.mxu0  ;;  %v7717_v4 = vpop.f32.mrf.mxu1  ;;  %2944 = vmatprep.mubr.f32.mxu0 %v8755_v37  ;;  %3107 = vmatprep.mubr.f32.mxu1 %v8755_v37 }
 0x24b   : > { %8764 = vst [vmem:[#allocation38_spill] sm:$0xff] %v7717_v4  ;;  %3180 = vmatpush1.msra.mxu0 %v7573_v41  ;;  %3281 = vmatpush1.msra.mxu1 %v7452_v27 }
 0x24c   : > { %v7723_v61 = vpop.f32.mrf.mxu0  ;;  %v7725_v34 = vpop.f32.mrf.mxu1  ;;  %2950 = vmatmul.mubr.f32.gmra.mxu0 %v7711_v35  ;;  %3109 = vmatmul.mubr.f32.gmra.mxu1 %v7405_v25 }
 0x24d   : > { %3183 = vmatprep.subr.mxu0 %v7469_v3  ;;  %3283 = vmatprep.subr.mxu1 %v7466_v30 }
 0x24e   : > { %v7731_v47 = vpop.f32.mrf.mxu0  ;;  %3186 = vmatpush1.msra.mxu0 %v7458_v0  ;;  %3285 = vmatpush1.msra.mxu1 %v7471_v24 }
 0x24f   : > { %v7735_v54 = vpop.f32.mrf.mxu1  ;;  %3189 = vmatprep.subr.mxu0 %v7606_v38  ;;  %3287 = vmatprep.subr.mxu1 %v7473_v53 }
 0x250   : > { %v7739_v36 = vpop.f32.mrf.mxu0  ;;  %3114 = vmatprep.mubr.f32.mxu1 %v8755_v37  ;;  %3192 = vmatpush1.msra.mxu0 %v7461_v5 }
 0x251   : > { %v7743_v42 = vpop.f32.mrf.mxu1  ;;  %3225 = vmatprep.mubr.f32.mxu0 %v8755_v37  ;;  %3289 = vmatpush1.msra.mxu1 %v8765_v51 }
 0x252   : > { %v7747_v35 = vpop.f32.mrf.mxu0  ;;  %3116 = vmatmul.mubr.f32.gmra.mxu1 %v8766_v46  ;;  %3228 = vmatmul.mubr.f32.vlgmr.msra.gmra.mxu0 %v8767_v6  ;;  %v8771_v6 = vand.u32 4294901760, %v7487_v28  ;;  %v8773_v28 = vand.u32 4294901760, %v7506_v32 }
 0x253   : > { %v7751_v56 = vpop.f32.mrf.mxu1  ;;  %3291 = vmatprep.subr.mxu1 %v7493_v23  ;;  %3394 = vmatprep.subr.mxu0 %v8769_v63 }
 0x254   : > { %8768 = vst [vmem:[#allocation17_spill] sm:$0xff] %v7751_v56  ;;  %v7756_v1 = vpop.f32.mrf.mxu0  ;;  %3293 = vmatpush1.msra.mxu1 %v7509_v31  ;;  %3398 = vmatpush1.msra.mxu0 %v8770_v49  ;;  %v8774_v49 = vand.u32 4294901760, %v7512_v19  ;;  %v8778_v19 = vand.u32 4294901760, %v7528_v13 }
 0x255   : > { %v7761_v4 = vpop.f32.mrf.mxu1  ;;  %3295 = vmatprep.subr.mxu1 %v7476_v22  ;;  %3402 = vmatprep.subr.mxu0 %v8771_v6 }
 0x256   : > { %v7766_v56 = vpop.f32.mrf.mxu0  ;;  %3121 = vmatprep.mubr.f32.mxu1 %v8755_v37  ;;  %3233 = vmatprep.mubr.f32.mxu0 %v8755_v37 }
 0x257   : > { %v7770_v14 = vpop.f32.mrf.mxu1  ;;  %3297 = vmatpush1.msra.mxu1 %v7479_v60  ;;  %3406 = vmatpush1.msra.mxu0 %v8772_v16  ;;  %v8776_v16 = vand.u32 4294901760, %v7515_v59 }
 0x258   : > { %3123 = vmatmul.mubr.f32.gmra.mxu1 %v7450_v50  ;;  %3236 = vmatmul.mubr.f32.gmra.mxu0 %v7423_v7  ;;  %v7777_v63 = vpop.f32.mrf.mxu0 }
 0x259   : > { %3299 = vmatprep.subr.mxu1 %v7437_v26  ;;  %3410 = vmatprep.subr.mxu0 %v8773_v28  ;;  %v7782_v6 = vpop.f32.mrf.mxu1 }
 0x25a   : > { %3301 = vmatpush1.msra.mxu1 %v7427_v29  ;;  %3414 = vmatpush1.msra.mxu0 %v8774_v49  ;;  %v7787_v21 = vpop.f32.mrf.mxu0  ;;  %v8779_v49 = vld [vmem:[#allocation26_spill] sm:$0xff] }
 0x25b   : > { %8775 = vst [vmem:[#allocation29_spill] sm:$0xff] %v7787_v21  ;;  %3303 = vmatprep.subr.mxu1 %v7455_v2  ;;  %3418 = vmatprep.subr.mxu0 %v8776_v16  ;;  %v7792_v7 = vpop.f32.mrf.mxu1  ;;  %v8780_v16 = vand.u32 4294901760, %v7532_v58  ;;  %v8783_v58 = vand.u32 4294901760, %v7573_v41  ;;  %v8786_v41 = vand.u32 4294901760, %v7606_v38 }
 0x25c   : > { %3241 = vmatprep.mubr.f32.mxu0 %v8755_v37  ;;  %3305 = vmatpush1.msra.mxu1 %v7429_v11  ;;  %v7796_v32 = vpop.f32.mrf.mxu0 }
 0x25d   : > { %8777 = vst [vmem:[#allocation39_spill] sm:$0xff] %v7796_v32  ;;  %3338 = vmatprep.mubr.f32.mxu1 %v8755_v37  ;;  %3422 = vmatpush1.msra.mxu0 %v8778_v19  ;;  %v7801_v28 = vpop.f32.mrf.mxu1  ;;  %v8781_v32 = vand.u32 4294901760, %v7551_v57  ;;  %v8782_v19 = vand.u32 4294901760, %v7536_v43  ;;  %v8784_v43 = vand.u32 4294901760, %v7469_v3 }
 0x25e   : > { %3244 = vmatmul.mubr.f32.gmra.mxu0 %v7447_v33  ;;  %3342 = vmatmul.mubr.f32.vlgmr.msra.gmra.mxu1 %v8779_v49  ;;  %v7805_v59 = vpop.f32.mrf.mxu0 }
 0x25f   : > { %3426 = vmatprep.subr.mxu0 %v8780_v16  ;;  %3533 = vmatprep.subr.mxu1 %v7500_v8  ;;  %v7810_v21 = vpop.f32.mrf.mxu1 }
 0x260   : > { %3430 = vmatpush1.msra.mxu0 %v8781_v32  ;;  %3535 = vmatpush1.msra.mxu1 %v7484_v10  ;;  %v7815_v13 = vpop.f32.mrf.mxu0  ;;  %v8785_v32 = vand.u32 4294901760, %v7458_v0 }
 0x261   : > { %3434 = vmatprep.subr.mxu0 %v8782_v19  ;;  %3537 = vmatprep.subr.mxu1 %v7464_v40  ;;  %v7820_v49 = vpop.f32.mrf.mxu1  ;;  %v8788_v19 = vld [vmem:[#allocation14_spill] sm:$0xff] }
 0x262   : > { %3249 = vmatprep.mubr.f32.mxu0 %v8755_v37  ;;  %3347 = vmatprep.mubr.f32.mxu1 %v8755_v37  ;;  %v7824_v8 = vpop.f32.mrf.mxu0 }
 0x263   : > { %3438 = vmatpush1.msra.mxu0 %v8783_v58  ;;  %3539 = vmatpush1.msra.mxu1 %v7452_v27  ;;  %v7829_v10 = vpop.f32.mrf.mxu1  ;;  %v8789_v58 = vld [vmem:[#allocation24_spill] sm:$0xff] }
 0x264   : > { %3252 = vmatmul.mubr.f32.gmra.mxu0 %v7656_v18  ;;  %3351 = vmatmul.mubr.f32.gmra.mxu1 %v7444_v55  ;;  %v2584_v40 = vpop.f32.mrf.mxu0 }
 0x265   : > { %3442 = vmatprep.subr.mxu0 %v8784_v43  ;;  %3541 = vmatprep.subr.mxu1 %v7466_v30  ;;  %v7836_v57 = vpop.f32.mrf.mxu1  ;;  %v8787_v30 = vand.u32 4294901760, %v7461_v5  ;;  %v8790_v43 = vld [vmem:[#allocation8_spill] sm:$0xff] }
 0x266   : > { %3446 = vmatpush1.msra.mxu0 %v8785_v32  ;;  %3543 = vmatpush1.msra.mxu1 %v7471_v24  ;;  %v7841_v27 = vpop.f32.mrf.mxu0  ;;  %v8791_v32 = vld [vmem:[#allocation12_spill] sm:$0xff] }
 0x267   : > { %3450 = vmatprep.subr.mxu0 %v8786_v41  ;;  %3545 = vmatprep.subr.mxu1 %v7473_v53  ;;  %v7846_v16 = vpop.f32.mrf.mxu1  ;;  %v1934_v41 = vadd.f32 %v8791_v32, %v8790_v43  ;;  %v8795_v32 = vld [vmem:[#allocation25_spill] sm:$0xff] }
 0x268   : > { %3356 = vmatprep.mubr.f32.mxu1 %v8755_v37  ;;  %3454 = vmatpush1.msra.mxu0 %v8787_v30  ;;  %v2591_v3 = vpop.f32.mrf.mxu0  ;;  %v8792_v30 = vld [vmem:[#allocation10_spill] sm:$0xff] }
 0x269   : > { %3487 = vmatprep.mubr.f32.mxu0 %v8755_v37  ;;  %3547 = vmatpush1.msra.mxu1 %v8765_v51  ;;  %v7853_v0 = vpop.f32.mrf.mxu1 }
 0x26a   : > { %3360 = vmatmul.mubr.f32.gmra.mxu1 %v7640_v45  ;;  %3489 = vmatmul.mubr.f32.vlgmr.msra.gmra.mxu0 %v7334_v9  ;;  %v7857_v24 = vpop.f32.mrf.mxu0 }
 0x26b   : > { %3549 = vmatprep.subr.mxu1 %v7493_v23  ;;  %3365 = vmatprep.mubr.f32.mxu1 %v8755_v37  ;;  %v7861_v53 = vpop.f32.mrf.mxu1 }
 0x26c   : > { %3551 = vmatpush1.msra.mxu1 %v7509_v31  ;;  %3494 = vmatprep.mubr.f32.mxu0 %v8755_v37  ;;  %v2598_v5 = vpop.f32.mrf.mxu0  ;;  %v2258_v31 = vadd.f32 %v7679_v15, %v8788_v19  ;;  %v8793_v15 = vld [vmem:[#allocation23_spill] sm:$0xff] }
 0x26d   : > { %3553 = vmatprep.subr.mxu1 %v7476_v22  ;;  %v2721_v38 = vpop.f32.mrf.mxu1  ;;  %v2274_v19 = vadd.f32 %v7723_v61, %v8793_v15 }
 0x26e   : > { %3555 = vmatpush1.msra.mxu1 %v7479_v60  ;;  %3496 = vmatmul.mubr.f32.gmra.mxu0 %v7405_v25  ;;  %v2603_v51 = vpop.f32.mrf.mxu0  ;;  %v1925_v60 = vadd.f32 %v8789_v58, %v8742_v48  ;;  %v2406_v45 = vadd.f32 %v7725_v34, %v2258_v31  ;;  %v2282_v34 = vadd.f32 %v7739_v36, %v8795_v32 }
 0x26f   : > { %3369 = vmatmul.mubr.f32.gmra.mxu1 %v7683_v39  ;;  %3557 = vmatprep.subr.mxu1 %v7437_v26  ;;  %v7870_v23 = vpop.f32.mrf.mxu1  ;;  %v2266_v39 = vadd.f32 %v7701_v20, %v8792_v30 }
 0x270   : > { %3559 = vmatpush1.msra.mxu1 %v7427_v29  ;;  %3501 = vmatprep.mubr.f32.mxu0 %v8755_v37  ;;  %v2605_v22 = vpop.f32.mrf.mxu0  ;;  %v1936_v29 = vadd.f32 %v7593_v52, %v8790_v43  ;;  %v2130_v20 = vadd.f32 %v7628_v44, %v1925_v60  ;;  %v8794_v43 = vld [vmem:[#allocation28_spill] sm:$0xff]  ;;  %v2585_v31 = vadd.f32 %v2584_v40, %v2406_v45  ;;  %v8796_v44 = vld [vmem:[#allocation15_spill] sm:$0xff] }
 0x271   : > { %3561 = vmatprep.subr.mxu1 %v7455_v2  ;;  %3596 = vmatprep.mubr.f32.mxu1 %v8755_v37  ;;  %v2728_v26 = vpop.f32.mrf.mxu1  ;;  %v2135_v2 = vadd.f32 %v7642_v62, %v1934_v41  ;;  %v2415_v58 = vadd.f32 %v7743_v42, %v2266_v39  ;;  %v8797_v60 = vld [vmem:[#allocation31_spill] sm:$0xff]  ;;  %v8799_v42 = vld [vmem:[#allocation20_spill] sm:$0xff] }
 0x272   : > { %3563 = vmatpush1.msra.mxu1 %v7429_v11  ;;  %3503 = vmatmul.mubr.f32.gmra.mxu0 %v8766_v46  ;;  %v2610_v48 = vpop.f32.mrf.mxu0  ;;  %v2137_v61 = vadd.f32 %v8794_v43, %v1936_v29  ;;  %v2424_v11 = vadd.f32 %v7761_v4, %v2274_v19  ;;  %v2256_v62 = vadd.f32 %v8797_v60, %v8796_v44  ;;  %v8798_v41 = vld [vmem:[#allocation19_spill] sm:$0xff]  ;;  %v8800_v43 = vld [vmem:[#allocation13_spill] sm:$0xff]  ;;  %v8801_v19 = vld [vmem:[#allocation16_spill] sm:$0xff] }
 0x273   : > { %3598 = vmatmul.mubr.f32.vlgmr.msra.gmra.mxu1 %v7334_v9  ;;  %3508 = vmatprep.mubr.f32.mxu0 %v8755_v37  ;;  %v2733_v52 = vpop.f32.mrf.mxu1  ;;  %v2264_v39 = vadd.f32 %v7692_v17, %v8798_v41  ;;  %v2280_v30 = vadd.f32 %v7731_v47, %v8799_v42  ;;  %v2592_v15 = vadd.f32 %v2591_v3, %v2415_v58 }
 0x274   : > { %3603 = vmatprep.mubr.f32.mxu1 %v8755_v37  ;;  %v2612_v55 = vpop.f32.mrf.mxu0  ;;  %v2288_v36 = vadd.f32 %v7747_v35, %v8800_v43  ;;  %v2433_v4 = vadd.f32 %v7782_v6, %v2282_v34  ;;  %v2599_v45 = vadd.f32 %v2598_v5, %v2424_v11  ;;  %v2722_v40 = vadd.f32 %v2721_v38, %v2585_v31  ;;  %v8802_v34 = vld [vmem:[#allocation17_spill] sm:$0xff] }
 0x275   : > { %v2735_v29 = vpop.f32.mrf.mxu1  ;;  %v2272_v32 = vadd.f32 %v7715_v12, %v8801_v19  ;;  %v2431_v17 = vadd.f32 %v7770_v14, %v2280_v30  ;;  %v2729_v47 = vadd.f32 %v2728_v26, %v2592_v15  ;;  %v2290_v58 = vadd.f32 %v7756_v1, %v2130_v20  ;;  %v8804_v15 = vld [vmem:[#allocation35_spill] sm:$0xff] }
 0x276   : > { %3510 = vmatmul.mubr.f32.gmra.mxu0 %v7450_v50  ;;  %v2440_v35 = vadd.f32 %v7792_v7, %v2288_v36  ;;  %v2606_v6 = vadd.f32 %v2605_v22, %v2433_v4  ;;  %v2736_v5 = vadd.f32 %v2735_v29, %v2599_v45  ;;  %v2413_v38 = vadd.f32 %v7735_v54, %v2264_v39  ;;  %v2617_v31 = vpop.f32.mrf.mxu0  ;;  %v8806_v4 = vld [vmem:[#allocation27_spill] sm:$0xff] }
 0x277   : > { %3605 = vmatmul.mubr.f32.gmra.mxu1 %v7405_v25  ;;  %v2740_v3 = vpop.f32.mrf.mxu1  ;;  %3705 = vmatprep.mubr.f32.mxu0 %v8755_v37  ;;  %v2422_v12 = vadd.f32 %v8802_v34, %v2272_v32  ;;  %v2296_v14 = vadd.f32 %v7766_v56, %v2135_v2  ;;  %v2604_v11 = vadd.f32 %v2603_v51, %v2431_v17  ;;  %5807 = vtanh.f32 %v2722_v40  ;;  %v8809_v32 = vld [vmem:[#allocation39_spill] sm:$0xff] }
 0x278   : > { %3610 = vmatprep.mubr.f32.mxu1 %v8755_v37  ;;  %v2442_v44 = vadd.f32 %v7801_v28, %v2290_v58  ;;  %v2611_v60 = vadd.f32 %v2610_v48, %v2440_v35  ;;  %v2298_v7 = vadd.f32 %v7777_v63, %v2137_v61  ;;  %5809 = vtanh.f32 %v2729_v47  ;;  %v8803_v28 = vld [vmem:[#allocation38_spill] sm:$0xff]  ;;  %v2619_v63 = vpop.f32.mrf.mxu0 }
 0x279   : > { %v2742_v26 = vpop.f32.mrf.mxu1  ;;  %v2597_v22 = vadd.f32 %v7857_v24, %v2422_v12  ;;  %v2741_v54 = vadd.f32 %v2740_v3, %v2604_v11  ;;  %v2449_v41 = vadd.f32 %v7810_v21, %v2296_v14  ;;  %5811 = vtanh.f32 %v2736_v5 }
 0x27a   : > { %v2743_v1 = vadd.f32 %v2742_v26, %v2606_v6  ;;  %v2613_v56 = vadd.f32 %v2612_v55, %v2442_v44  ;;  %v2404_v2 = vadd.f32 %v8803_v28, %v2256_v62  ;;  %v2590_v48 = vadd.f32 %v7841_v27, %v2413_v38 }
 0x27b   : > { %3612 = vmatmul.mubr.f32.gmra.mxu1 %v8766_v46  ;;  %v2747_v20 = vpop.f32.mrf.mxu1  ;;  %v2734_v39 = vadd.f32 %v2733_v52, %v2597_v22  ;;  %v2451_v61 = vadd.f32 %v7820_v49, %v2298_v7  ;;  %v2618_v42 = vadd.f32 %v2617_v31, %v2449_v41  ;;  %v2576_v55 = vadd.f32 %v7805_v59, %v8804_v15  ;;  %v8805_v49 = vld [vmem:[#allocation36_spill] sm:$0xff] }
 0x27c   : > { %3617 = vmatprep.mubr.f32.mxu1 %v8755_v37  ;;  %v2748_v51 = vadd.f32 %v2747_v20, %v2611_v60  ;;  %5813 = vtanh.f32 %v2743_v1  ;;  %v2727_v21 = vadd.f32 %v7870_v23, %v2590_v48  ;;  %v2583_v27 = vadd.f32 %v7824_v8, %v2404_v2  ;;  %v8807_v23 = vld [vmem:[#allocation29_spill] sm:$0xff]  ;;  %v8808_v8 = vld [vmem:[#allocation11_spill] sm:$0xff] }
 0x27d   : > { %v2749_v24 = vpop.f32.mrf.mxu1  ;;  %v2620_v52 = vadd.f32 %v2619_v63, %v2451_v61  ;;  %v2578_v43 = vadd.f32 %v7815_v13, %v8805_v49  ;;  %v2713_v36 = vadd.f32 %v7846_v16, %v2576_v55  ;;  %v2569_v45 = vadd.f32 %v8807_v23, %v8806_v4 }
 0x27e   : > { %5815 = vtanh.f32 %v2748_v51  ;;  %v2750_v30 = vadd.f32 %v2749_v24, %v2613_v56  ;;  %v2720_v40 = vadd.f32 %v7861_v53, %v2583_v27  ;;  %v2571_v17 = vadd.f32 %v8809_v32, %v8808_v8 }
 0x27f   : > { %5817 = vtanh.f32 %v2741_v54  ;;  %3619 = vmatmul.mubr.f32.gmra.mxu1 %v7450_v50  ;;  %v2754_v62 = vpop.f32.mrf.mxu1  ;;  %v2715_v47 = vadd.f32 %v7853_v0, %v2578_v43  ;;  %v2706_v3 = vadd.f32 %v7829_v10, %v2569_v45 }
 0x280   : > { %5819 = vtanh.f32 %v2750_v30  ;;  %v2755_v29 = vadd.f32 %v2754_v62, %v2618_v42  ;;  %3894 = vmatprep.mubr.f32.mxu1 %v8755_v37  ;;  %v2708_v13 = vadd.f32 %v7836_v57, %v2571_v17 }
 0x281   : > { %5821 = vtanh.f32 %v2734_v39  ;;  %v2756_v59 = vpop.f32.mrf.mxu1 }
 0x282   : > { %5823 = vtanh.f32 %v2755_v29  ;;  %v2757_v19 = vadd.f32 %v2756_v59, %v2620_v52 }
 0x283   : > { %5825 = vtanh.f32 %v2727_v21 }
 0x284   : > { %5827 = vtanh.f32 %v2757_v19  ;;  %v5808_v16 = vpop.eup %5807 }
 0x285   : > { %5829 = vtanh.f32 %v2713_v36  ;;  %v5810_v58 = vpop.eup %5809  ;;  %v7980_v2 = vand.u32 4294901760, %v5808_v16 }
 0x286   : > { %5831 = vtanh.f32 %v2720_v40  ;;  %v5812_v53 = vpop.eup %5811  ;;  %v7970_v20 = vand.u32 4294901760, %v5810_v58 }
 0x287   : > { %5833 = vtanh.f32 %v2715_v47  ;;  %v7958_v26 = vand.u32 4294901760, %v5812_v53  ;;  %v8028_v19 = vsub.f32 %v5808_v16, %v7980_v2 }
 0x288   : > { %5835 = vtanh.f32 %v2706_v3  ;;  %v8007_v49 = vsub.f32 %v5810_v58, %v7970_v20 }
 0x289   : > { %5837 = vtanh.f32 %v2708_v13  ;;  %v5814_v35 = vpop.eup %5813  ;;  %v7992_v42 = vsub.f32 %v5812_v53, %v7958_v26 }
 0x28a   : > { %v7952_v10 = vand.u32 4294901760, %v5814_v35  ;;  %v3816_v16 = vand.u32 4294901760, %v8007_v49 }
 0x28b   : > { %v5816_v6 = vpop.eup %5815  ;;  %v3804_v40 = vand.u32 4294901760, %v7992_v42 }
 0x28c   : > { %v5818_v5 = vpop.eup %5817  ;;  %v7948_v34 = vand.u32 4294901760, %v5816_v6  ;;  %v7976_v56 = vsub.f32 %v5814_v35, %v7952_v10 }
 0x28d   : > { %v5820_v38 = vpop.eup %5819  ;;  %v7954_v14 = vand.u32 4294901760, %v5818_v5 }
 0x28e   : > { %v5822_v0 = vpop.eup %5821  ;;  %v7950_v12 = vand.u32 4294901760, %v5820_v38  ;;  %v7966_v7 = vsub.f32 %v5816_v6, %v7948_v34  ;;  %v3792_v29 = vand.u32 4294901760, %v7976_v56 }
 0x28f   : > { %v5824_v57 = vpop.eup %5823  ;;  %v7963_v1 = vand.u32 4294901760, %v5822_v0  ;;  %v7983_v48 = vsub.f32 %v5818_v5, %v7954_v14 }
 0x290   : > { %v5826_v11 = vpop.eup %5825  ;;  %v7956_v31 = vand.u32 4294901760, %v5824_v57  ;;  %v7961_v44 = vsub.f32 %v5820_v38, %v7950_v12  ;;  %v3786_v15 = vand.u32 4294901760, %v7966_v7  ;;  %v3793_v13 = vsub.f32 %v7976_v56, %v3792_v29 }
 0x291   : > { %v5828_v60 = vpop.eup %5827  ;;  %v7978_v28 = vand.u32 4294901760, %v5826_v11  ;;  %v7999_v21 = vsub.f32 %v5822_v0, %v7963_v1  ;;  %v3798_v59 = vand.u32 4294901760, %v7983_v48  ;;  %v3805_v0 = vsub.f32 %v7992_v42, %v3804_v40 }
 0x292   : > { %v5830_v22 = vpop.eup %5829  ;;  %v7968_v54 = vand.u32 4294901760, %v5828_v60  ;;  %v7973_v41 = vsub.f32 %v5824_v57, %v7956_v31  ;;  %v3780_v61 = vand.u32 4294901760, %v7961_v44  ;;  %v3787_v8 = vsub.f32 %v7966_v7, %v3786_v15 }
 0x293   : > { %v5832_v51 = vpop.eup %5831  ;;  %v7996_v55 = vand.u32 4294901760, %v5830_v22  ;;  %v8017_v4 = vsub.f32 %v5826_v11, %v7978_v28  ;;  %v3810_v47 = vand.u32 4294901760, %v7999_v21  ;;  %v3799_v35 = vsub.f32 %v7983_v48, %v3798_v59 }
 0x294   : > { %v5834_v39 = vpop.eup %5833  ;;  %3642 = vmatprep.subr.mxu0 %v7968_v54  ;;  %v7987_v63 = vsub.f32 %v5828_v60, %v7968_v54  ;;  %v3774_v24 = vand.u32 4294901760, %v7973_v41  ;;  %v8003_v52 = vand.u32 4294901760, %v5832_v51  ;;  %v3781_v45 = vsub.f32 %v7961_v44, %v3780_v61 }
 0x295   : > { %v5836_v30 = vpop.eup %5835  ;;  %3644 = vmatpush1.msra.mxu0 %v7956_v31  ;;  %v8013_v36 = vand.u32 4294901760, %v5834_v39  ;;  %v8575_v6 = vand.u32 4294901760, %v8017_v4  ;;  %v8574_v57 = vand.u32 4294901760, %v8028_v19  ;;  %v8061_v11 = vsub.f32 %v5830_v22, %v7996_v55 }
 0x296   : > { %v5838_v62 = vpop.eup %5837  ;;  %3646 = vmatprep.subr.mxu0 %v7950_v12  ;;  %v3768_v27 = vand.u32 4294901760, %v7987_v63  ;;  %v3775_v43 = vsub.f32 %v7973_v41, %v3774_v24  ;;  %v8036_v17 = vand.u32 4294901760, %v5836_v30  ;;  %v8045_v58 = vsub.f32 %v5832_v51, %v8003_v52 }
 0x297   : > { %3648 = vmatpush1.msra.mxu0 %v7948_v34  ;;  %v8034_v32 = vand.u32 4294901760, %v5838_v62  ;;  %v8053_v5 = vsub.f32 %v5834_v39, %v8013_v36  ;;  %v3782_v38 = vand.u32 4294901760, %v3781_v45  ;;  %v3788_v60 = vand.u32 4294901760, %v3787_v8 }
 0x298   : > { %3650 = vmatprep.subr.mxu0 %v7952_v10  ;;  %v3769_v23 = vsub.f32 %v7987_v63, %v3768_v27  ;;  %v3776_v53 = vand.u32 4294901760, %v3775_v43  ;;  %v3811_v51 = vsub.f32 %v7999_v21, %v3810_v47  ;;  %v3794_v43 = vand.u32 4294901760, %v3793_v13 }
 0x299   : > { %3652 = vmatpush1.msra.mxu0 %v7954_v14  ;;  %v8068_v39 = vsub.f32 %v5838_v62, %v8034_v32  ;;  %v3817_v22 = vsub.f32 %v8007_v49, %v3816_v16  ;;  %v3800_v45 = vand.u32 4294901760, %v3799_v35  ;;  %v3823_v8 = vsub.f32 %v8017_v4, %v8575_v6 }
 0x29a   : > { %3654 = vmatprep.subr.mxu0 %v7958_v26  ;;  %v3770_v3 = vand.u32 4294901760, %v3769_v23  ;;  %v3834_v23 = vand.u32 4294901760, %v8045_v58  ;;  %v3840_v62 = vand.u32 4294901760, %v8053_v5  ;;  %v3806_v13 = vand.u32 4294901760, %v3805_v0 }
 0x29b   : > { %3656 = vmatpush1.msra.mxu0 %v7963_v1  ;;  %v3812_v35 = vand.u32 4294901760, %v3811_v51 }
 0x29c   : > { %3658 = vmatprep.subr.mxu0 %v7970_v20  ;;  %3771 = vmatprep.subr.mxu1 %v3770_v3  ;;  %v8081_v3 = vsub.f32 %v5836_v30, %v8036_v17  ;;  %v3818_v30 = vand.u32 4294901760, %v3817_v22  ;;  %v3835_v0 = vsub.f32 %v8045_v58, %v3834_v23 }
 0x29d   : > { %3660 = vmatpush1.msra.mxu0 %v7978_v28  ;;  %3777 = vmatpush1.msra.mxu1 %v3776_v53  ;;  %v3829_v53 = vsub.f32 %v8028_v19, %v8574_v57  ;;  %v3841_v57 = vsub.f32 %v8053_v5, %v3840_v62 }
 0x29e   : > { %3662 = vmatprep.subr.mxu0 %v7980_v2  ;;  %3783 = vmatprep.subr.mxu1 %v3782_v38  ;;  %v3846_v38 = vand.u32 4294901760, %v8061_v11  ;;  %v3858_v51 = vand.u32 4294901760, %v8081_v3 }
 0x29f   : > { %3664 = vmatpush1.msra.mxu0 %v8003_v52  ;;  %3789 = vmatpush1.msra.mxu1 %v3788_v60  ;;  %v3852_v60 = vand.u32 4294901760, %v8068_v39  ;;  %v3830_v6 = vand.u32 4294901760, %v3829_v53  ;;  %v3842_v53 = vand.u32 4294901760, %v3841_v57  ;;  %v8812_v57 = vld [vmem:[#allocation9_spill] sm:$0xff] }
 0x2a0   : > { %3666 = vmatprep.subr.mxu0 %v8013_v36  ;;  %3795 = vmatprep.subr.mxu1 %v3794_v43  ;;  %v3824_v43 = vand.u32 4294901760, %v3823_v8  ;;  %v3847_v22 = vsub.f32 %v8061_v11, %v3846_v38 }
 0x2a1   : > { %3668 = vmatpush1.msra.mxu0 %v7996_v55  ;;  %3801 = vmatpush1.msra.mxu1 %v3800_v45  ;;  %v8810_v45 = vld [vmem:[#allocation32_spill] sm:$0xff]  ;;  %v3853_v8 = vsub.f32 %v8068_v39, %v3852_v60 }
 0x2a2   : > { %3670 = vmatprep.subr.mxu0 %v8034_v32  ;;  %3807 = vmatprep.subr.mxu1 %v3806_v13  ;;  %v3836_v13 = vand.u32 4294901760, %v3835_v0  ;;  %v8813_v0 = vld [vmem:[#allocation37_spill] sm:$0xff] }
 0x2a3   : > { %3672 = vmatpush1.msra.mxu0 %v8036_v17  ;;  %3813 = vmatpush1.msra.mxu1 %v3812_v35  ;;  %v3859_v35 = vsub.f32 %v8081_v3, %v3858_v51 }
 0x2a4   : > { %3711 = vmatmul.mubr.f32.vlgmr.msra.gmra.mxu0 %v8810_v45  ;;  %3819 = vmatprep.subr.mxu1 %v3818_v30  ;;  %v3848_v30 = vand.u32 4294901760, %v3847_v22  ;;  %v3854_v45 = vand.u32 4294901760, %v3853_v8  ;;  %v8814_v22 = vld [vmem:[#allocation30_spill] sm:$0xff] }
 0x2a5   : > { %3941 = vmatprep.subr.mxu0 %v7987_v63  ;;  %3825 = vmatpush1.msra.mxu1 %v3824_v43  ;;  %v8811_v43 = vld [vmem:[#allocation21_spill] sm:$0xff] }
 0x2a6   : > { %3944 = vmatpush1.msra.mxu0 %v7973_v41  ;;  %3831 = vmatprep.subr.mxu1 %v3830_v6  ;;  %v3860_v6 = vand.u32 4294901760, %v3859_v35  ;;  %v8815_v63 = vld [vmem:[#allocation33_spill] sm:$0xff]  ;;  %v8818_v41 = vand.u32 4294901760, %v8028_v19 }
 0x2a7   : > { %3947 = vmatprep.subr.mxu0 %v7961_v44  ;;  %3716 = vmatprep.mubr.f32.mxu0 %v8755_v37  ;;  %v8816_v44 = vld [vmem:[#allocation26_spill] sm:$0xff] }
 0x2a8   : > { %3837 = vmatpush1.msra.mxu1 %v3836_v13  ;;  %3950 = vmatpush1.msra.mxu0 %v7966_v7  ;;  %v8817_v7 = vand.u32 4294901760, %v8017_v4 }
 0x2a9   : > { %3722 = vmatmul.mubr.f32.gmra.mxu0 %v8811_v43  ;;  %3843 = vmatprep.subr.mxu1 %v3842_v53 }
 0x2aa   : > { %3953 = vmatprep.subr.mxu0 %v7976_v56  ;;  %3849 = vmatpush1.msra.mxu1 %v3848_v30 }
 0x2ab   : > { %3956 = vmatpush1.msra.mxu0 %v7983_v48  ;;  %3855 = vmatprep.subr.mxu1 %v3854_v45 }
 0x2ac   : > { %3959 = vmatprep.subr.mxu0 %v7992_v42  ;;  %3727 = vmatprep.mubr.f32.mxu0 %v8755_v37 }
 0x2ad   : > { %3861 = vmatpush1.msra.mxu1 %v3860_v6  ;;  %3962 = vmatpush1.msra.mxu0 %v7999_v21 }
 0x2ae   : > { %3733 = vmatmul.mubr.f32.gmra.mxu0 %v8812_v57  ;;  %3896 = vmatmul.mubr.f32.vlgmr.msra.gmra.mxu1 %v7334_v9 }
 0x2af   : > { %3965 = vmatprep.subr.mxu0 %v8007_v49  ;;  %4069 = vmatprep.subr.mxu1 %v7968_v54 }
 0x2b0   : > { %3968 = vmatpush1.msra.mxu0 %v8017_v4  ;;  %4071 = vmatpush1.msra.mxu1 %v7956_v31  ;;  %v8236_v4 = vpop.permute.xlu1 %2811 }
 0x2b1   : > { %3971 = vmatprep.subr.mxu0 %v8028_v19  ;;  %4073 = vmatprep.subr.mxu1 %v7950_v12 }
 0x2b2   : > { %3738 = vmatprep.mubr.f32.mxu0 %v8755_v37  ;;  %3901 = vmatprep.mubr.f32.mxu1 %v8755_v37 }
 0x2b3   : > { %3974 = vmatpush1.msra.mxu0 %v8045_v58  ;;  %4075 = vmatpush1.msra.mxu1 %v7948_v34 }
 0x2b4   : > { %3744 = vmatmul.mubr.f32.gmra.mxu0 %v8813_v0  ;;  %3903 = vmatmul.mubr.f32.gmra.mxu1 %v7405_v25 }
 0x2b5   : > { %3977 = vmatprep.subr.mxu0 %v8053_v5  ;;  %4077 = vmatprep.subr.mxu1 %v7952_v10 }
 0x2b6   : > { %3980 = vmatpush1.msra.mxu0 %v8061_v11  ;;  %4079 = vmatpush1.msra.mxu1 %v7954_v14 }
 0x2b7   : > { %3983 = vmatprep.subr.mxu0 %v8068_v39  ;;  %4081 = vmatprep.subr.mxu1 %v7958_v26 }
 0x2b8   : > { %3908 = vmatprep.mubr.f32.mxu1 %v8755_v37  ;;  %3986 = vmatpush1.msra.mxu0 %v8081_v3 }
 0x2b9   : > { %4019 = vmatprep.mubr.f32.mxu0 %v8755_v37  ;;  %4083 = vmatpush1.msra.mxu1 %v7963_v1 }
 0x2ba   : > { %3910 = vmatmul.mubr.f32.gmra.mxu1 %v8766_v46  ;;  %4022 = vmatmul.mubr.f32.vlgmr.msra.gmra.mxu0 %v8814_v22 }
 0x2bb   : > { %4085 = vmatprep.subr.mxu1 %v7970_v20  ;;  %4188 = vmatprep.subr.mxu0 %v3768_v27 }
 0x2bc   : > { %4087 = vmatpush1.msra.mxu1 %v7978_v28  ;;  %4192 = vmatpush1.msra.mxu0 %v3774_v24 }
 0x2bd   : > { %4089 = vmatprep.subr.mxu1 %v7980_v2  ;;  %4196 = vmatprep.subr.mxu0 %v3780_v61 }
 0x2be   : > { %3915 = vmatprep.mubr.f32.mxu1 %v8755_v37  ;;  %4027 = vmatprep.mubr.f32.mxu0 %v8755_v37 }
 0x2bf   : > { %4091 = vmatpush1.msra.mxu1 %v8003_v52  ;;  %4200 = vmatpush1.msra.mxu0 %v3786_v15 }
 0x2c0   : > { %3917 = vmatmul.mubr.f32.gmra.mxu1 %v7450_v50  ;;  %4030 = vmatmul.mubr.f32.gmra.mxu0 %v8815_v63 }
 0x2c1   : > { %4093 = vmatprep.subr.mxu1 %v8013_v36  ;;  %4204 = vmatprep.subr.mxu0 %v3792_v29 }
 0x2c2   : > { %4095 = vmatpush1.msra.mxu1 %v7996_v55  ;;  %4208 = vmatpush1.msra.mxu0 %v3798_v59 }
 0x2c3   : > { %4097 = vmatprep.subr.mxu1 %v8034_v32  ;;  %4212 = vmatprep.subr.mxu0 %v3804_v40  ;;  %v8238_v40 = vpop.permute.xlu0 %2816 }
 0x2c4   : > { %4035 = vmatprep.mubr.f32.mxu0 %v8755_v37  ;;  %4099 = vmatpush1.msra.mxu1 %v8036_v17 }
 0x2c5   : > { %4132 = vmatprep.mubr.f32.mxu1 %v8755_v37  ;;  %4216 = vmatpush1.msra.mxu0 %v3810_v47 }
 0x2c6   : > { %4038 = vmatmul.mubr.f32.gmra.mxu0 %v7447_v33  ;;  %4136 = vmatmul.mubr.f32.vlgmr.msra.gmra.mxu1 %v8816_v44  ;;  %v8819_v33 = vld [vmem:[#allocation34_spill] sm:$0xff] }
 0x2c7   : > { %4220 = vmatprep.subr.mxu0 %v3816_v16  ;;  %4327 = vmatprep.subr.mxu1 %v7968_v54  ;;  %v8240_v16 = vpop.permute.xlu1 %2801  ;;  %v8243_v11 = vpop.permute.xlu0 %2806 }
 0x2c8   : > { %4224 = vmatpush1.msra.mxu0 %v8817_v7  ;;  %4329 = vmatpush1.msra.mxu1 %v7956_v31 }
 0x2c9   : > { %4228 = vmatprep.subr.mxu0 %v8818_v41  ;;  %4331 = vmatprep.subr.mxu1 %v7950_v12 }
 0x2ca   : > { %4043 = vmatprep.mubr.f32.mxu0 %v8755_v37  ;;  %4141 = vmatprep.mubr.f32.mxu1 %v8755_v37 }
 0x2cb   : > { %4232 = vmatpush1.msra.mxu0 %v3834_v23  ;;  %4333 = vmatpush1.msra.mxu1 %v7948_v34  ;;  %v8821_v34 = vld [vmem:[#allocation22_spill] sm:$0xff] }
 0x2cc   : > { %4046 = vmatmul.mubr.f32.gmra.mxu0 %v7656_v18  ;;  %4145 = vmatmul.mubr.f32.gmra.mxu1 %v8819_v33  ;;  %v8820_v18 = vld [vmem:[#allocation18_spill] sm:$0xff] }
 0x2cd   : > { %4236 = vmatprep.subr.mxu0 %v3840_v62  ;;  %4335 = vmatprep.subr.mxu1 %v7952_v10 }
 0x2ce   : > { %4240 = vmatpush1.msra.mxu0 %v3846_v38  ;;  %4337 = vmatpush1.msra.mxu1 %v7954_v14 }
 0x2cf   : > { %4244 = vmatprep.subr.mxu0 %v3852_v60  ;;  %4339 = vmatprep.subr.mxu1 %v7958_v26 }
 0x2d0   : > { %4150 = vmatprep.mubr.f32.mxu1 %v8755_v37  ;;  %4248 = vmatpush1.msra.mxu0 %v3858_v51 }
 0x2d1   : > { %4281 = vmatprep.mubr.f32.mxu0 %v8755_v37  ;;  %4341 = vmatpush1.msra.mxu1 %v7963_v1 }
 0x2d2   : > { %4154 = vmatmul.mubr.f32.gmra.mxu1 %v8820_v18  ;;  %4283 = vmatmul.mubr.f32.vlgmr.msra.gmra.mxu0 %v7334_v9 }
 0x2d3   : > { %4343 = vmatprep.subr.mxu1 %v7970_v20  ;;  %4159 = vmatprep.mubr.f32.mxu1 %v8755_v37 }
 0x2d4   : > { %4345 = vmatpush1.msra.mxu1 %v7978_v28  ;;  %4288 = vmatprep.mubr.f32.mxu0 %v8755_v37 }
 0x2d5   : > { %4347 = vmatprep.subr.mxu1 %v7980_v2 }
 0x2d6   : > { %4349 = vmatpush1.msra.mxu1 %v8003_v52  ;;  %4290 = vmatmul.mubr.f32.gmra.mxu0 %v7405_v25 }
 0x2d7   : > { %4163 = vmatmul.mubr.f32.gmra.mxu1 %v8821_v34  ;;  %4351 = vmatprep.subr.mxu1 %v8013_v36 }
 0x2d8   : > { %4353 = vmatpush1.msra.mxu1 %v7996_v55  ;;  %4295 = vmatprep.mubr.f32.mxu0 %v8755_v37 }
 0x2d9   : > { %4355 = vmatprep.subr.mxu1 %v8034_v32  ;;  %4390 = vmatprep.mubr.f32.mxu1 %v8755_v37 }
 0x2da   : > { %4357 = vmatpush1.msra.mxu1 %v8036_v17  ;;  %4297 = vmatmul.mubr.f32.gmra.mxu0 %v8766_v46 }
 0x2db   : > { %4392 = vmatmul.mubr.f32.vlgmr.msra.gmra.mxu1 %v7334_v9  ;;  %4302 = vmatprep.mubr.f32.mxu0 %v8755_v37 }
 0x2dc   : > { %4397 = vmatprep.mubr.f32.mxu1 %v8755_v37 }
 0x2de   : > { %4304 = vmatmul.mubr.f32.gmra.mxu0 %v7450_v50 }
 0x2df   : > { %4399 = vmatmul.mubr.f32.gmra.mxu1 %v7405_v25  ;;  %4522 = vmatprep.mubr.f32.mxu0 %v8755_v37 }
 0x2e0   : > { %4404 = vmatprep.mubr.f32.mxu1 %v8755_v37 }
 0x2e3   : > { %4406 = vmatmul.mubr.f32.gmra.mxu1 %v8766_v46 }
 0x2e4   : > { %4411 = vmatprep.mubr.f32.mxu1 %v8755_v37 }
 0x2e7   : > { %4413 = vmatmul.mubr.f32.gmra.mxu1 %v7450_v50 }
 0x2e8   : > { %4638 = vmatprep.mubr.f32.mxu1 %v8755_v37 }
 0x2fc   : > { %v2918_v9 = vpop.f32.mrf.mxu0 }
 0x2fd   : > { %v2919_v35 = vadd.f32 %v2918_v9, %v8240_v16 }
 0x2fe   : > { %v2920_v12 = vpop.f32.mrf.mxu0 }
 0x2ff   : > { %v2921_v58 = vadd.f32 %v2920_v12, %v8240_v16 }
 0x301   : > { %v2929_v10 = vpop.f32.mrf.mxu0 }
 0x302   : > { %v2930_v38 = vadd.f32 %v2929_v10, %v8243_v11 }
 0x303   : > { %v2931_v14 = vpop.f32.mrf.mxu0 }
 0x304   : > { %v2932_v23 = vadd.f32 %v2931_v14, %v8243_v11 }
 0x306   : > { %v2940_v31 = vpop.f32.mrf.mxu0  ;;  %v3103_v26 = vpop.f32.mrf.mxu1 }
 0x307   : > { %v2941_v51 = vadd.f32 %v2940_v31, %v8236_v4  ;;  %v3104_v22 = vadd.f32 %v3103_v26, %v2919_v35 }
 0x308   : > { %v2942_v1 = vpop.f32.mrf.mxu0  ;;  %v3105_v25 = vpop.f32.mrf.mxu1 }
 0x309   : > { %v3106_v62 = vadd.f32 %v3105_v25, %v2921_v58  ;;  %v2943_v45 = vadd.f32 %v2942_v1, %v8236_v4 }
 0x30c   : > { %v2951_v54 = vpop.f32.mrf.mxu0  ;;  %v3110_v20 = vpop.f32.mrf.mxu1 }
 0x30d   : > { %v3111_v30 = vadd.f32 %v3110_v20, %v2930_v38  ;;  %v2952_v63 = vadd.f32 %v2951_v54, %v8238_v40 }
 0x30e   : > { %v2953_v56 = vpop.f32.mrf.mxu0  ;;  %v3112_v28 = vpop.f32.mrf.mxu1 }
 0x30f   : > { %v3113_v8 = vadd.f32 %v3112_v28, %v2932_v23  ;;  %v2954_v10 = vadd.f32 %v2953_v56, %v8238_v40 }
 0x312   : > { %v3117_v2 = vpop.f32.mrf.mxu1  ;;  %v3229_v46 = vpop.f32.mrf.mxu0 }
 0x313   : > { %v3118_v6 = vadd.f32 %v3117_v2, %v2941_v51  ;;  %v3230_v9 = vadd.f32 %v3229_v46, %v3104_v22 }
 0x314   : > { %v3119_v48 = vpop.f32.mrf.mxu1  ;;  %v3231_v24 = vpop.f32.mrf.mxu0 }
 0x315   : > { %v3232_v13 = vadd.f32 %v3231_v24, %v3106_v62  ;;  %v3120_v33 = vadd.f32 %v3119_v48, %v2943_v45 }
 0x318   : > { %v3124_v61 = vpop.f32.mrf.mxu1  ;;  %v3237_v50 = vpop.f32.mrf.mxu0 }
 0x319   : > { %v3238_v44 = vadd.f32 %v3237_v50, %v3111_v30  ;;  %v3125_v14 = vadd.f32 %v3124_v61, %v2952_v63 }
 0x31a   : > { %v3126_v42 = vpop.f32.mrf.mxu1  ;;  %v3239_v15 = vpop.f32.mrf.mxu0 }
 0x31b   : > { %v3240_v57 = vadd.f32 %v3239_v15, %v3113_v8  ;;  %v3127_v26 = vadd.f32 %v3126_v42, %v2954_v10 }
 0x31e   : > { %v3245_v55 = vpop.f32.mrf.mxu0  ;;  %v3343_v21 = vpop.f32.mrf.mxu1 }
 0x31f   : > { %v3246_v18 = vadd.f32 %v3245_v55, %v3118_v6  ;;  %v3344_v24 = vadd.f32 %v3343_v21, %v3230_v9 }
 0x320   : > { %v3247_v27 = vpop.f32.mrf.mxu0  ;;  %v3345_v52 = vpop.f32.mrf.mxu1 }
 0x321   : > { %v3346_v0 = vadd.f32 %v3345_v52, %v3232_v13  ;;  %v3248_v1 = vadd.f32 %v3247_v27, %v3120_v33 }
 0x324   : > { %v3253_v29 = vpop.f32.mrf.mxu0  ;;  %v3352_v49 = vpop.f32.mrf.mxu1 }
 0x325   : > { %v3353_v31 = vadd.f32 %v3352_v49, %v3238_v44  ;;  %v3254_v52 = vadd.f32 %v3253_v29, %v3125_v14 }
 0x326   : > { %v3255_v36 = vpop.f32.mrf.mxu0  ;;  %v3354_v59 = vpop.f32.mrf.mxu1 }
 0x327   : > { %v3355_v34 = vadd.f32 %v3354_v59, %v3240_v57 }
 0x32a   : > { %v3361_v19 = vpop.f32.mrf.mxu1  ;;  %v3490_v32 = vpop.f32.mrf.mxu0 }
 0x32b   : > { %v3362_v20 = vadd.f32 %v3361_v19, %v3246_v18  ;;  %v3491_v58 = vadd.f32 %v3490_v32, %v3344_v24 }
 0x32c   : > { %v3363_v17 = vpop.f32.mrf.mxu1  ;;  %v3492_v47 = vpop.f32.mrf.mxu0 }
 0x32d   : > { %v3493_v12 = vadd.f32 %v3492_v47, %v3346_v0  ;;  %v3364_v48 = vadd.f32 %v3363_v17, %v3248_v1  ;;  %v3256_v47 = vadd.f32 %v3255_v36, %v3127_v26 }
 0x32e   : > { %v3497_v5 = vpop.f32.mrf.mxu0 }
 0x32f   : > { %v3370_v39 = vpop.f32.mrf.mxu1  ;;  %v3498_v54 = vadd.f32 %v3497_v5, %v3353_v31 }
 0x330   : > { %v3499_v3 = vpop.f32.mrf.mxu0  ;;  %v3371_v61 = vadd.f32 %v3370_v39, %v3254_v52  ;;  %v4435_v39 = vld [vmem:[%s8505_s7] sm:$0x1] }
 0x331   : > { %v3372_v60 = vpop.f32.mrf.mxu1  ;;  %v3500_v28 = vadd.f32 %v3499_v3, %v3355_v34  ;;  %v4448_v38 = vsel %vm4446_vm1, %v4435_v39, 0 }
 0x332   : > { %v3504_v53 = vpop.f32.mrf.mxu0  ;;  %v3373_v21 = vadd.f32 %v3372_v60, %v3256_v47  ;;  %v8255_v60 = vand.u32 4294901760, %v4448_v38 }
 0x333   : > { %v3599_v43 = vpop.f32.mrf.mxu1  ;;  %v3505_v55 = vadd.f32 %v3504_v53, %v3362_v20 }
 0x334   : > { %v3506_v7 = vpop.f32.mrf.mxu0  ;;  %v3600_v19 = vadd.f32 %v3599_v43, %v3491_v58  ;;  %v8258_v53 = vsub.f32 %v4448_v38, %v8255_v60 }
 0x335   : > { %v3601_v41 = vpop.f32.mrf.mxu1  ;;  %v3507_v49 = vadd.f32 %v3506_v7, %v3364_v48 }
 0x336   : > { %v3602_v2 = vadd.f32 %v3601_v41, %v3493_v12  ;;  %v3511_v50 = vpop.f32.mrf.mxu0  ;;  %v8269_v63 = vand.u32 4294901760, %v8258_v53 }
 0x337   : > { %v3606_v25 = vpop.f32.mrf.mxu1  ;;  %v3512_v5 = vadd.f32 %v3511_v50, %v3371_v61 }
 0x338   : > { %v3607_v56 = vadd.f32 %v3606_v25, %v3498_v54  ;;  %5839 = vtanh.f32 %v3602_v2  ;;  %v3513_v23 = vpop.f32.mrf.mxu0  ;;  %v4526_v14 = vsub.f32 %v8258_v53, %v8269_v63 }
 0x339   : > { %v3608_v15 = vpop.f32.mrf.mxu1  ;;  %v3514_v17 = vadd.f32 %v3513_v23, %v3373_v21 }
 0x33a   : > { %v3609_v59 = vadd.f32 %v3608_v15, %v3500_v28  ;;  %v8314_v52 = vand.u32 4294901760, %v4526_v14 }
 0x33b   : > { %v3613_v46 = vpop.f32.mrf.mxu1 }
 0x33c   : > { %v3614_v27 = vadd.f32 %v3613_v46, %v3505_v55  ;;  %5841 = vtanh.f32 %v3609_v59 }
 0x33d   : > { %v3615_v42 = vpop.f32.mrf.mxu1 }
 0x33e   : > { %5843 = vtanh.f32 %v3614_v27  ;;  %v3616_v62 = vadd.f32 %v3615_v42, %v3507_v49 }
 0x33f   : > { %5845 = vtanh.f32 %v3607_v56  ;;  %v3620_v29 = vpop.f32.mrf.mxu1 }
 0x340   : > { %5847 = vtanh.f32 %v3616_v62  ;;  %v3621_v36 = vadd.f32 %v3620_v29, %v3512_v5 }
 0x341   : > { %5849 = vtanh.f32 %v3600_v19  ;;  %v3622_v32 = vpop.f32.mrf.mxu1 }
 0x342   : > { %5851 = vtanh.f32 %v3621_v36  ;;  %v3623_v3 = vadd.f32 %v3622_v32, %v3514_v17 }
 0x344   : > { %5853 = vtanh.f32 %v3623_v3 }
 0x345   : > { %v5840_v51 = vpop.eup %5839 }
 0x346   : > { %v8273_v7 = vand.u32 4294901760, %v5840_v51 }
 0x348   : > { %v8301_v28 = vsub.f32 %v5840_v51, %v8273_v7 }
 0x349   : > { %v5842_v8 = vpop.eup %5841 }
 0x34a   : > { %v8264_v57 = vand.u32 4294901760, %v5842_v8  ;;  %v4596_v59 = vand.u32 4294901760, %v8301_v28 }
 0x34b   : > { %v5844_v13 = vpop.eup %5843 }
 0x34c   : > { %v5846_v35 = vpop.eup %5845  ;;  %v8260_v43 = vand.u32 4294901760, %v5844_v13  ;;  %v8289_v9 = vsub.f32 %v5842_v8, %v8264_v57  ;;  %v4597_v19 = vsub.f32 %v8301_v28, %v4596_v59 }
 0x34d   : > { %v5848_v30 = vpop.eup %5847  ;;  %v8266_v22 = vand.u32 4294901760, %v5846_v35 }
 0x34e   : > { %v5850_v45 = vpop.eup %5849  ;;  %v8262_v6 = vand.u32 4294901760, %v5848_v30  ;;  %v8281_v34 = vsub.f32 %v5844_v13, %v8260_v43  ;;  %v4584_v54 = vand.u32 4294901760, %v8289_v9  ;;  %v4598_v62 = vand.u32 4294901760, %v4597_v19 }
 0x34f   : > { %v5852_v0 = vpop.eup %5851  ;;  %v8278_v18 = vand.u32 4294901760, %v5850_v45  ;;  %v8294_v31 = vsub.f32 %v5846_v35, %v8266_v22 }
 0x350   : > { %v8271_v44 = vand.u32 4294901760, %v5852_v0  ;;  %v8276_v41 = vsub.f32 %v5848_v30, %v8262_v6  ;;  %v4578_v2 = vand.u32 4294901760, %v8281_v34  ;;  %v4585_v46 = vsub.f32 %v8289_v9, %v4584_v54 }
 0x351   : > { %v5854_v33 = vpop.eup %5853  ;;  %v8306_v26 = vsub.f32 %v5850_v45, %v8278_v18  ;;  %v4590_v15 = vand.u32 4294901760, %v8294_v31 }
 0x352   : > { %v8283_v12 = vand.u32 4294901760, %v5854_v33  ;;  %v8286_v10 = vsub.f32 %v5852_v0, %v8271_v44  ;;  %v4572_v20 = vand.u32 4294901760, %v8276_v41  ;;  %v4579_v47 = vsub.f32 %v8281_v34, %v4578_v2 }
 0x353   : > { %v4602_v58 = vand.u32 4294901760, %v8306_v26  ;;  %v4591_v49 = vsub.f32 %v8294_v31, %v4590_v15  ;;  %v4586_v21 = vand.u32 4294901760, %v4585_v46 }
 0x354   : > { %4475 = vmatprep.subr.mxu0 %v8283_v12  ;;  %v4559_v25 = vsub.f32 %v5854_v33, %v8283_v12  ;;  %v4566_v1 = vand.u32 4294901760, %v8286_v10  ;;  %v4573_v55 = vsub.f32 %v8276_v41, %v4572_v20  ;;  %v4580_v23 = vand.u32 4294901760, %v4579_v47 }
 0x355   : > { %4477 = vmatpush1.msra.mxu0 %v8271_v44  ;;  %v4603_v42 = vsub.f32 %v8306_v26, %v4602_v58  ;;  %v4592_v5 = vand.u32 4294901760, %v4591_v49 }
 0x356   : > { %4479 = vmatprep.subr.mxu0 %v8262_v6  ;;  %v4560_v24 = vand.u32 4294901760, %v4559_v25  ;;  %v4567_v50 = vsub.f32 %v8286_v10, %v4566_v1  ;;  %v4574_v27 = vand.u32 4294901760, %v4573_v55 }
 0x357   : > { %4481 = vmatpush1.msra.mxu0 %v8260_v43  ;;  %v4604_v29 = vand.u32 4294901760, %v4603_v42 }
 0x358   : > { %4483 = vmatprep.subr.mxu0 %v8264_v57  ;;  %v4561_v48 = vsub.f32 %v4559_v25, %v4560_v24  ;;  %v4568_v61 = vand.u32 4294901760, %v4567_v50 }
 0x359   : > { %4485 = vmatpush1.msra.mxu0 %v8266_v22 }
 0x35a   : > { %4487 = vmatprep.subr.mxu0 %v8273_v7  ;;  %v4562_v56 = vand.u32 4294901760, %v4561_v48 }
 0x35b   : > { %4489 = vmatpush1.msra.mxu0 %v8278_v18 }
 0x35c   : > { %4528 = vmatmul.mubr.f32.vlgmr.msra.gmra.mxu0 %v8314_v52  ;;  %4563 = vmatprep.subr.mxu1 %v4562_v56 }
 0x35d   : > { %4672 = vmatprep.subr.mxu0 %v4559_v25  ;;  %4569 = vmatpush1.msra.mxu1 %v4568_v61 }
 0x35e   : > { %4675 = vmatpush1.msra.mxu0 %v8286_v10  ;;  %4575 = vmatprep.subr.mxu1 %v4574_v27 }
 0x35f   : > { %4678 = vmatprep.subr.mxu0 %v8276_v41  ;;  %4581 = vmatpush1.msra.mxu1 %v4580_v23 }
 0x360   : > { %4681 = vmatpush1.msra.mxu0 %v8281_v34  ;;  %4587 = vmatprep.subr.mxu1 %v4586_v21 }
 0x361   : > { %4684 = vmatprep.subr.mxu0 %v8289_v9  ;;  %4593 = vmatpush1.msra.mxu1 %v4592_v5 }
 0x362   : > { %4687 = vmatpush1.msra.mxu0 %v8294_v31  ;;  %4599 = vmatprep.subr.mxu1 %v4598_v62 }
 0x363   : > { %4690 = vmatprep.subr.mxu0 %v8301_v28  ;;  %4605 = vmatpush1.msra.mxu1 %v4604_v29 }
 0x364   : > { %4693 = vmatpush1.msra.mxu0 %v8306_v26  ;;  %4640 = vmatmul.mubr.f32.vlgmr.msra.gmra.mxu1 %v8255_v60  ;;  %v8336_v17 = vpop.f32.mrf.mxu0 }
 0x365   : > { %4726 = vmatprep.mubr.f32.mxu0 %v8755_v37  ;;  %4760 = vmatprep.subr.mxu1 %v8283_v12  ;;  %v3713_v46 = vadd.f32 %v8336_v17, %v8240_v16 }
 0x366   : > { %4844 = vmatprep.subr.mxu0 %v4560_v24  ;;  %4729 = vmatmul.mubr.f32.vlgmr.msra.gmra.mxu0 %v8258_v53  ;;  %v3714_v36 = vpop.f32.mrf.mxu0 }
 0x367   : > { %4762 = vmatpush1.msra.mxu1 %v8271_v44  ;;  %4848 = vmatpush1.msra.mxu0 %v4566_v1 }
 0x368   : > { %4764 = vmatprep.subr.mxu1 %v8262_v6  ;;  %4852 = vmatprep.subr.mxu0 %v4572_v20 }
 0x369   : > { %4766 = vmatpush1.msra.mxu1 %v8260_v43  ;;  %4856 = vmatpush1.msra.mxu0 %v4578_v2  ;;  %v3723_v32 = vpop.f32.mrf.mxu0  ;;  %v3715_v2 = vadd.f32 %v3714_v36, %v8240_v16 }
 0x36a   : > { %4768 = vmatprep.subr.mxu1 %v8264_v57  ;;  %4860 = vmatprep.subr.mxu0 %v4584_v54  ;;  %v3724_v48 = vadd.f32 %v3723_v32, %v8243_v11 }
 0x36b   : > { %4770 = vmatpush1.msra.mxu1 %v8266_v22  ;;  %4864 = vmatpush1.msra.mxu0 %v4590_v15  ;;  %v3725_v39 = vpop.f32.mrf.mxu0 }
 0x36c   : > { %4772 = vmatprep.subr.mxu1 %v8273_v7  ;;  %4868 = vmatprep.subr.mxu0 %v4596_v59  ;;  %v3726_v54 = vadd.f32 %v3725_v39, %v8243_v11 }
 0x36d   : > { %4774 = vmatpush1.msra.mxu1 %v8278_v18  ;;  %4807 = vmatprep.mubr.f32.mxu1 %v8755_v37 }
 0x36e   : > { %4872 = vmatpush1.msra.mxu0 %v4602_v58  ;;  %4811 = vmatmul.mubr.f32.vlgmr.msra.gmra.mxu1 %v8269_v63  ;;  %v3734_v3 = vpop.f32.mrf.mxu0  ;;  %v3897_v38 = vpop.f32.mrf.mxu1 }
 0x36f   : > { %4938 = vmatprep.subr.mxu1 %v8283_v12  ;;  %4905 = vmatprep.mubr.f32.mxu0 %v8755_v37  ;;  %v3735_v59 = vadd.f32 %v3734_v3, %v8236_v4  ;;  %v3898_v21 = vadd.f32 %v3897_v38, %v3713_v46 }
 0x370   : > { %4940 = vmatpush1.msra.mxu1 %v8271_v44  ;;  %4907 = vmatmul.mubr.f32.vlgmr.msra.gmra.mxu0 %v8255_v60  ;;  %v3736_v51 = vpop.f32.mrf.mxu0  ;;  %v3899_v8 = vpop.f32.mrf.mxu1 }
 0x371   : > { %4942 = vmatprep.subr.mxu1 %v8262_v6  ;;  %4985 = vmatprep.mubr.f32.mxu1 %v8755_v37  ;;  %v3900_v50 = vadd.f32 %v3899_v8, %v3715_v2  ;;  %v3737_v27 = vadd.f32 %v3736_v51, %v8236_v4 }
 0x372   : > { %4944 = vmatpush1.msra.mxu1 %v8260_v43  ;;  %5065 = vmatprep.mubr.f32.mxu0 %v8755_v37 }
 0x373   : > { %4946 = vmatprep.subr.mxu1 %v8264_v57 }
 0x374   : > { %4948 = vmatpush1.msra.mxu1 %v8266_v22  ;;  %v3745_v13 = vpop.f32.mrf.mxu0  ;;  %v3904_v35 = vpop.f32.mrf.mxu1 }
 0x375   : > { %4950 = vmatprep.subr.mxu1 %v8273_v7  ;;  %v3905_v61 = vadd.f32 %v3904_v35, %v3724_v48  ;;  %v3746_v5 = vadd.f32 %v3745_v13, %v8238_v40 }
 0x376   : > { %4952 = vmatpush1.msra.mxu1 %v8278_v18  ;;  %v3747_v30 = vpop.f32.mrf.mxu0  ;;  %v3906_v45 = vpop.f32.mrf.mxu1 }
 0x377   : > { %4987 = vmatmul.mubr.f32.vlgmr.msra.gmra.mxu1 %v8255_v60  ;;  %v3907_v47 = vadd.f32 %v3906_v45, %v3726_v54  ;;  %v3748_v8 = vadd.f32 %v3747_v30, %v8238_v40 }
 0x378   : > { %5181 = vmatprep.mubr.f32.mxu1 %v8755_v37 }
 0x37a   : > { %v3911_v6 = vpop.f32.mrf.mxu1  ;;  %v4023_v43 = vpop.f32.mrf.mxu0 }
 0x37b   : > { %v3912_v19 = vadd.f32 %v3911_v6, %v3735_v59  ;;  %v4024_v16 = vadd.f32 %v4023_v43, %v3898_v21 }
 0x37c   : > { %v3913_v0 = vpop.f32.mrf.mxu1  ;;  %v4025_v44 = vpop.f32.mrf.mxu0 }
 0x37d   : > { %v4026_v58 = vadd.f32 %v4025_v44, %v3900_v50  ;;  %v3914_v36 = vadd.f32 %v3913_v0, %v3737_v27 }
 0x380   : > { %v3918_v41 = vpop.f32.mrf.mxu1  ;;  %v4031_v57 = vpop.f32.mrf.mxu0 }
 0x381   : > { %v4032_v11 = vadd.f32 %v4031_v57, %v3905_v61  ;;  %v3919_v17 = vadd.f32 %v3918_v41, %v3746_v5 }
 0x382   : > { %v3920_v33 = vpop.f32.mrf.mxu1  ;;  %v4033_v22 = vpop.f32.mrf.mxu0 }
 0x383   : > { %v4034_v23 = vadd.f32 %v4033_v22, %v3907_v47  ;;  %v3921_v38 = vadd.f32 %v3920_v33, %v3748_v8 }
 0x386   : > { %v4039_v34 = vpop.f32.mrf.mxu0  ;;  %v4137_v12 = vpop.f32.mrf.mxu1 }
 0x387   : > { %v4040_v32 = vadd.f32 %v4039_v34, %v3912_v19  ;;  %v4138_v22 = vadd.f32 %v4137_v12, %v4024_v16 }
 0x388   : > { %v4041_v10 = vpop.f32.mrf.mxu0  ;;  %v4139_v7 = vpop.f32.mrf.mxu1 }
 0x389   : > { %v4140_v42 = vadd.f32 %v4139_v7, %v4026_v58  ;;  %v4042_v4 = vadd.f32 %v4041_v10, %v3914_v36 }
 0x38c   : > { %v4047_v9 = vpop.f32.mrf.mxu0  ;;  %v4146_v18 = vpop.f32.mrf.mxu1 }
 0x38d   : > { %v4147_v35 = vadd.f32 %v4146_v18, %v4032_v11  ;;  %v4048_v2 = vadd.f32 %v4047_v9, %v3919_v17 }
 0x38e   : > { %v4049_v14 = vpop.f32.mrf.mxu0  ;;  %v4148_v31 = vpop.f32.mrf.mxu1 }
 0x38f   : > { %v4149_v39 = vadd.f32 %v4148_v31, %v4034_v23 }
 0x392   : > { %v4155_v25 = vpop.f32.mrf.mxu1  ;;  %v4284_v1 = vpop.f32.mrf.mxu0 }
 0x393   : > { %v4156_v51 = vadd.f32 %v4155_v25, %v4040_v32  ;;  %v4285_v54 = vadd.f32 %v4284_v1, %v4138_v22 }
 0x394   : > { %v4157_v20 = vpop.f32.mrf.mxu1  ;;  %v4286_v28 = vpop.f32.mrf.mxu0 }
 0x395   : > { %v4287_v3 = vadd.f32 %v4286_v28, %v4140_v42  ;;  %v4158_v0 = vadd.f32 %v4157_v20, %v4042_v4  ;;  %v4050_v28 = vadd.f32 %v4049_v14, %v3921_v38 }
 0x396   : > { %v4291_v26 = vpop.f32.mrf.mxu0 }
 0x397   : > { %v4164_v24 = vpop.f32.mrf.mxu1  ;;  %v4292_v13 = vadd.f32 %v4291_v26, %v4147_v35 }
 0x398   : > { %v4293_v15 = vpop.f32.mrf.mxu0  ;;  %v4165_v43 = vadd.f32 %v4164_v24, %v4048_v2 }
 0x399   : > { %v4166_v55 = vpop.f32.mrf.mxu1  ;;  %v4294_v6 = vadd.f32 %v4293_v15, %v4149_v39 }
 0x39a   : > { %v4298_v56 = vpop.f32.mrf.mxu0  ;;  %v4167_v12 = vadd.f32 %v4166_v55, %v4050_v28 }
 0x39b   : > { %v4393_v49 = vpop.f32.mrf.mxu1  ;;  %v4299_v34 = vadd.f32 %v4298_v56, %v4156_v51 }
 0x39c   : > { %v4300_v62 = vpop.f32.mrf.mxu0  ;;  %v4394_v18 = vadd.f32 %v4393_v49, %v4285_v54 }
 0x39d   : > { %v4395_v29 = vpop.f32.mrf.mxu1  ;;  %v4301_v41 = vadd.f32 %v4300_v62, %v4158_v0 }
 0x39e   : > { %v4396_v44 = vadd.f32 %v4395_v29, %v4287_v3  ;;  %v4305_v57 = vpop.f32.mrf.mxu0 }
 0x39f   : > { %v4400_v45 = vpop.f32.mrf.mxu1  ;;  %v4306_v26 = vadd.f32 %v4305_v57, %v4165_v43 }
 0x3a0   : > { %v4401_v40 = vadd.f32 %v4400_v45, %v4292_v13  ;;  %5855 = vtanh.f32 %v4396_v44  ;;  %v4307_v25 = vpop.f32.mrf.mxu0 }
 0x3a1   : > { %v4402_v7 = vpop.f32.mrf.mxu1  ;;  %v4308_v20 = vadd.f32 %v4307_v25, %v4167_v12 }
 0x3a2   : > { %v4403_v31 = vadd.f32 %v4402_v7, %v4294_v6 }
 0x3a3   : > { %v4407_v30 = vpop.f32.mrf.mxu1 }
 0x3a4   : > { %v4408_v10 = vadd.f32 %v4407_v30, %v4299_v34  ;;  %5857 = vtanh.f32 %v4403_v31 }
 0x3a5   : > { %v4409_v33 = vpop.f32.mrf.mxu1 }
 0x3a6   : > { %5859 = vtanh.f32 %v4408_v10  ;;  %v4410_v50 = vadd.f32 %v4409_v33, %v4301_v41 }
 0x3a7   : > { %5861 = vtanh.f32 %v4401_v40  ;;  %v4414_v9 = vpop.f32.mrf.mxu1 }
 0x3a8   : > { %5863 = vtanh.f32 %v4410_v50  ;;  %v4415_v14 = vadd.f32 %v4414_v9, %v4306_v26  ;;  %v4440_v9 = vpop.permute.xlu0 %4439 }
 0x3a9   : > { %5865 = vtanh.f32 %v4394_v18  ;;  %v4416_v1 = vpop.f32.mrf.mxu1 }
 0x3aa   : > { %5867 = vtanh.f32 %v4415_v14  ;;  %v4417_v24 = vadd.f32 %v4416_v1, %v4308_v20 }
 0x3ac   : > { %5869 = vtanh.f32 %v4417_v24  ;;  %v8822_v24 = vld [vmem:[#allocation7_spill] sm:$0xff] }
 0x3ad   : > { %v5856_v15 = vpop.eup %5855 }
 0x3ae   : > { %v8383_v23 = vand.u32 4294901760, %v5856_v15 }
 0x3b0   : > { %v8406_v16 = vsub.f32 %v5856_v15, %v8383_v23  ;;  %v4445_v15 = vrot.slane %v4440_v9, %v8822_v24 }
 0x3b1   : > { %v5858_v48 = vpop.eup %5857 }
 0x3b2   : > { %v8377_v61 = vand.u32 4294901760, %v5858_v48  ;;  %v5139_v22 = vand.u32 4294901760, %v8406_v16 }
 0x3b3   : > { %v5860_v59 = vpop.eup %5859 }
 0x3b4   : > { %v5862_v47 = vpop.eup %5861  ;;  %v8373_v56 = vand.u32 4294901760, %v5860_v59  ;;  %v8397_v36 = vsub.f32 %v5858_v48, %v8377_v61  ;;  %v5140_v28 = vsub.f32 %v8406_v16, %v5139_v22 }
 0x3b5   : > { %v5864_v58 = vpop.eup %5863  ;;  %v8379_v27 = vand.u32 4294901760, %v5862_v47 }
 0x3b6   : > { %v5866_v55 = vpop.eup %5865  ;;  %v8375_v46 = vand.u32 4294901760, %v5864_v58  ;;  %v8391_v11 = vsub.f32 %v5860_v59, %v8373_v56  ;;  %v5127_v4 = vand.u32 4294901760, %v8397_v36 }
 0x3b7   : > { %v5868_v49 = vpop.eup %5867  ;;  %v8388_v5 = vand.u32 4294901760, %v5866_v55  ;;  %v8400_v32 = vsub.f32 %v5862_v47, %v8379_v27 }
 0x3b8   : > { %v8381_v19 = vand.u32 4294901760, %v5868_v49  ;;  %v8386_v42 = vsub.f32 %v5864_v58, %v8375_v46  ;;  %v5121_v17 = vand.u32 4294901760, %v8391_v11  ;;  %v5128_v2 = vsub.f32 %v8397_v36, %v5127_v4 }
 0x3b9   : > { %v5870_v21 = vpop.eup %5869  ;;  %v8411_v35 = vsub.f32 %v5866_v55, %v8388_v5  ;;  %v5133_v6 = vand.u32 4294901760, %v8400_v32 }
 0x3ba   : > { %v8393_v62 = vand.u32 4294901760, %v5870_v21  ;;  %v5108_v29 = vsub.f32 %v5868_v49, %v8381_v19  ;;  %v5115_v8 = vand.u32 4294901760, %v8386_v42  ;;  %v5122_v13 = vsub.f32 %v8391_v11, %v5121_v17 }
 0x3bb   : > { %v5145_v57 = vand.u32 4294901760, %v8411_v35  ;;  %v5134_v34 = vsub.f32 %v8400_v32, %v5133_v6  ;;  %v5129_v30 = vand.u32 4294901760, %v5128_v2  ;;  %v8823_v2 = vld [vmem:[#allocation6_spill] sm:$0xff] }
 0x3bc   : > { %5018 = vmatprep.subr.mxu0 %v8393_v62  ;;  %v5102_v39 = vsub.f32 %v5870_v21, %v8393_v62  ;;  %v5109_v3 = vand.u32 4294901760, %v5108_v29  ;;  %v5116_v38 = vsub.f32 %v8386_v42, %v5115_v8  ;;  %v5123_v54 = vand.u32 4294901760, %v5122_v13 }
 0x3bd   : > { %5020 = vmatpush1.msra.mxu0 %v8381_v19  ;;  %v5146_v40 = vsub.f32 %v8411_v35, %v5145_v57  ;;  %v5135_v43 = vand.u32 4294901760, %v5134_v34 }
 0x3be   : > { %5022 = vmatprep.subr.mxu0 %v8375_v46  ;;  %v5103_v45 = vand.u32 4294901760, %v5102_v39  ;;  %v5110_v51 = vsub.f32 %v5108_v29, %v5109_v3  ;;  %v5117_v31 = vand.u32 4294901760, %v5116_v38 }
 0x3bf   : > { %5024 = vmatpush1.msra.mxu0 %v8373_v56  ;;  %v5147_v41 = vand.u32 4294901760, %v5146_v40 }
 0x3c0   : > { %5026 = vmatprep.subr.mxu0 %v8377_v61  ;;  %v5104_v44 = vsub.f32 %v5102_v39, %v5103_v45  ;;  %v5111_v0 = vand.u32 4294901760, %v5110_v51 }
 0x3c1   : > { %5028 = vmatpush1.msra.mxu0 %v8379_v27 }
 0x3c2   : > { %5030 = vmatprep.subr.mxu0 %v8383_v23  ;;  %v5105_v7 = vand.u32 4294901760, %v5104_v44 }
 0x3c3   : > { %5032 = vmatpush1.msra.mxu0 %v8388_v5 }
 0x3c4   : > { %5071 = vmatmul.mubr.f32.vlgmr.msra.gmra.mxu0 %v8314_v52  ;;  %5106 = vmatprep.subr.mxu1 %v5105_v7  ;;  %v5141_v52 = vand.u32 4294901760, %v5140_v28 }
 0x3c5   : > { %5215 = vmatprep.subr.mxu0 %v5102_v39  ;;  %5112 = vmatpush1.msra.mxu1 %v5111_v0 }
 0x3c6   : > { %5218 = vmatpush1.msra.mxu0 %v5108_v29  ;;  %5118 = vmatprep.subr.mxu1 %v5117_v31 }
 0x3c7   : > { %5221 = vmatprep.subr.mxu0 %v8386_v42  ;;  %5124 = vmatpush1.msra.mxu1 %v5123_v54 }
 0x3c8   : > { %5224 = vmatpush1.msra.mxu0 %v8391_v11  ;;  %5130 = vmatprep.subr.mxu1 %v5129_v30 }
 0x3c9   : > { %5227 = vmatprep.subr.mxu0 %v8397_v36  ;;  %5136 = vmatpush1.msra.mxu1 %v5135_v43  ;;  %v8824_v43 = vlaneseq }
 0x3ca   : > { %5230 = vmatpush1.msra.mxu0 %v8400_v32  ;;  %5142 = vmatprep.subr.mxu1 %v5141_v52  ;;  %v5936_v32 = vmov 1966171168  }
 0x3cb   : > { %5233 = vmatprep.subr.mxu0 %v8406_v16  ;;  %5148 = vmatpush1.msra.mxu1 %v5147_v41  ;;  %v5543_v39 = vunpack.c.l.s4 %v5936_v32  ;;  %vm5567_vm2 = vcmp.lt.s32.totalorder %v8824_v43, 512 }
 0x3cc   : > { %5236 = vmatpush1.msra.mxu0 %v8411_v35  ;;  %5183 = vmatmul.mubr.f32.vlgmr.msra.gmra.mxu1 %v8255_v60 }
 0x3cd   : > { %5269 = vmatprep.mubr.f32.mxu0 %v8755_v37  ;;  %5303 = vmatprep.subr.mxu1 %v8393_v62 }
 0x3ce   : > { %5387 = vmatprep.subr.mxu0 %v5103_v45  ;;  %5272 = vmatmul.mubr.f32.vlgmr.msra.gmra.mxu0 %v8258_v53 }
 0x3cf   : > { %5305 = vmatpush1.msra.mxu1 %v8381_v19  ;;  %5391 = vmatpush1.msra.mxu0 %v5109_v3 }
 0x3d0   : > { %5307 = vmatprep.subr.mxu1 %v8375_v46  ;;  %5395 = vmatprep.subr.mxu0 %v5115_v8 }
 0x3d1   : > { %5309 = vmatpush1.msra.mxu1 %v8373_v56  ;;  %5399 = vmatpush1.msra.mxu0 %v5121_v17 }
 0x3d2   : > { %5311 = vmatprep.subr.mxu1 %v8377_v61  ;;  %5403 = vmatprep.subr.mxu0 %v5127_v4 }
 0x3d3   : > { %5313 = vmatpush1.msra.mxu1 %v8379_v27  ;;  %5407 = vmatpush1.msra.mxu0 %v5133_v6  ;;  %v5544_v6 = vunpack.c.0.s8 %v5543_v39 }
 0x3d4   : > { %5315 = vmatprep.subr.mxu1 %v8383_v23  ;;  %5411 = vmatprep.subr.mxu0 %v5139_v22 }
 0x3d5   : > { %5317 = vmatpush1.msra.mxu1 %v8388_v5  ;;  %5350 = vmatprep.mubr.f32.mxu1 %v8755_v37  ;;  %v5547_v0 = vsub.s32 %v5544_v6, %v8823_v2 }
 0x3d6   : > { %5415 = vmatpush1.msra.mxu0 %v5145_v57  ;;  %5354 = vmatmul.mubr.f32.vlgmr.msra.gmra.mxu1 %v8269_v63 }
 0x3d7   : > { %5481 = vmatprep.subr.mxu1 %v8393_v62  ;;  %5448 = vmatprep.mubr.f32.mxu0 %v8755_v37 }
 0x3d8   : > { %5483 = vmatpush1.msra.mxu1 %v8381_v19  ;;  %5450 = vmatmul.mubr.f32.vlgmr.msra.gmra.mxu0 %v8255_v60 }
 0x3d9   : > { %5485 = vmatprep.subr.mxu1 %v8375_v46  ;;  %5528 = vmatprep.mubr.f32.mxu1 %v8755_v37 }
 0x3da   : > { %5487 = vmatpush1.msra.mxu1 %v8373_v56 }
 0x3db   : > { %5489 = vmatprep.subr.mxu1 %v8377_v61 }
 0x3dc   : > { %5491 = vmatpush1.msra.mxu1 %v8379_v27 }
 0x3dd   : > { %5493 = vmatprep.subr.mxu1 %v8383_v23 }
 0x3de   : > { %5495 = vmatpush1.msra.mxu1 %v8388_v5 }
 0x3df   : > { %5530 = vmatmul.mubr.f32.vlgmr.msra.gmra.mxu1 %v8255_v60 }
 0x41c   : > { %v4529_v53 = vpop.f32.mrf.mxu0 }
 0x41d   : > { %v4530_v60 = vadd.f32 %v4529_v53, %v4445_v15 }
 0x41e   : > { %v4531_v10 = vpop.f32.mrf.mxu0 }
 0x41f   : > { %v4532_v59 = vadd.f32 %v4531_v10, %v4445_v15 }
 0x424   : > { %v4641_v63 = vpop.f32.mrf.mxu1 }
 0x425   : > { %v4642_v46 = vadd.f32 %v4641_v63, %v4530_v60 }
 0x426   : > { %v4643_v18 = vpop.f32.mrf.mxu1  ;;  %v4730_v25 = vpop.f32.mrf.mxu0 }
 0x427   : > { %v4644_v58 = vadd.f32 %v4643_v18, %v4532_v59  ;;  %v4731_v5 = vadd.f32 %v4730_v25, %v4642_v46 }
 0x428   : > { %v4732_v12 = vpop.f32.mrf.mxu0 }
 0x429   : > { %v4733_v27 = vadd.f32 %v4732_v12, %v4644_v58 }
 0x42e   : > { %v4812_v33 = vpop.f32.mrf.mxu1 }
 0x42f   : > { %v4813_v36 = vadd.f32 %v4812_v33, %v4731_v5 }
 0x430   : > { %v4814_v37 = vpop.f32.mrf.mxu1  ;;  %v4908_v26 = vpop.f32.mrf.mxu0 }
 0x431   : > { %v4815_v11 = vadd.f32 %v4814_v37, %v4733_v27  ;;  %v4909_v4 = vadd.f32 %v4908_v26, %v4813_v36 }
 0x432   : > { %v4910_v20 = vpop.f32.mrf.mxu0 }
 0x433   : > { %v4911_v16 = vadd.f32 %v4910_v20, %v4815_v11 }
 0x437   : > { %v4988_v50 = vpop.f32.mrf.mxu1 }
 0x438   : > { %v4989_v38 = vadd.f32 %v4988_v50, %v4909_v4 }
 0x439   : > { %v4990_v14 = vpop.f32.mrf.mxu1 }
 0x43a   : > { %v4991_v51 = vadd.f32 %v4990_v14, %v4911_v16 }
 0x43c   : > { %v5540_v7 = vcombine.low %v4989_v38, %v4991_v51 }
 0x43e   : > { %v5548_v54 = vrot.slane %v5540_v7, %v5547_v0 }
 0x484   : > { %v5072_v1 = vpop.f32.mrf.mxu0 }
 0x485   : > { %v5073_v61 = vadd.f32 %v5072_v1, %v4445_v15 }
 0x486   : > { %v5074_v47 = vpop.f32.mrf.mxu0 }
 0x487   : > { %v5075_v49 = vadd.f32 %v5074_v47, %v4445_v15 }
 0x48c   : > { %v5184_v48 = vpop.f32.mrf.mxu1 }
 0x48d   : > { %v5185_v19 = vadd.f32 %v5184_v48, %v5073_v61 }
 0x48e   : > { %v5186_v56 = vpop.f32.mrf.mxu1  ;;  %v5273_v55 = vpop.f32.mrf.mxu0 }
 0x48f   : > { %v5187_v23 = vadd.f32 %v5186_v56, %v5075_v49  ;;  %v5274_v3 = vadd.f32 %v5273_v55, %v5185_v19 }
 0x490   : > { %v5275_v21 = vpop.f32.mrf.mxu0 }
 0x491   : > { %v5276_v8 = vadd.f32 %v5275_v21, %v5187_v23 }
 0x496   : > { %v5355_v42 = vpop.f32.mrf.mxu1 }
 0x497   : > { %v5356_v17 = vadd.f32 %v5355_v42, %v5274_v3 }
 0x498   : > { %v5357_v62 = vpop.f32.mrf.mxu1  ;;  %v5451_v29 = vpop.f32.mrf.mxu0 }
 0x499   : > { %v5358_v35 = vadd.f32 %v5357_v62, %v5276_v8  ;;  %v5452_v22 = vadd.f32 %v5451_v29, %v5356_v17 }
 0x49a   : > { %v5453_v45 = vpop.f32.mrf.mxu0 }
 0x49b   : > { %v5454_v13 = vadd.f32 %v5453_v45, %v5358_v35 }
 0x49f   : > { %v5531_v44 = vpop.f32.mrf.mxu1 }
 0x4a0   : > { %v5532_v34 = vadd.f32 %v5531_v44, %v5452_v22 }
 0x4a1   : > { %v5533_v57 = vpop.f32.mrf.mxu1 }
 0x4a2   : > { %v5534_v31 = vadd.f32 %v5533_v57, %v5454_v13 }
 0x4a4   : > { %v5541_v28 = vcombine.low %v5532_v34, %v5534_v31 }
 0x4a6   : > { %v5555_v40 = vrot.slane %v5541_v28, %v5547_v0 }
 0x4a8   : > { %v5556_v30 = vcombine.low %v5548_v54, %v5555_v40 }
 0x4aa   : > { %v5563_v52 = vrot.slane %v5556_v30, %v5547_v0 }
 0x4ac   : > { %5569 = vst.msk [vmem:[%s328_s18] sm:$0xf] %vm5567_vm2, %v5563_v52 }
 0x4ad   : > { %5884 = shalt.err (!%p5881_p3)
}
 0x4ae   : > { %s5885_s30 = scalar_lea.hbm %s5583_s25, 64  ;;  %s5889_s17 = scalar_lea.hbm %s8507_s9, 256 }
 0x4af   : > { %p5886_p4 = scmp.ne.s32.totalorder %s5583_s25, %s5885_s30  ;;  %p5890_p9 = scmp.lt.s32.totalorder %s5583_s25, %s8507_s9 }
 0x4b0   : > { %p5891_p10 = scmp.lt.s32.totalorder %s5889_s17, %s5885_s30 }
 0x4b1   : > { %p5887_p7 = pnand %p5886_p4, %p6029_p5 }
 0x4b2   : > { %p5892_p11 = por %p5891_p10, %p5890_p9 }
 0x4b3   : > { %p5888_p8 = pneg %p5887_p7 }
 0x4b5   : > { %p5893_p12 = pnand %p5892_p11, %p5888_p8 }
 0x4b7   : > { %5896 = shalt.err (!%p5893_p12)
}
 0x4b8   : > { %5657 = dma.vmem_to_hbm [thread:$0]  (%p6029_p5), %s5586_s22, 64, %s5583_s25, %s5571_s26  }
 0x4b9 PF: > { %p5663_p13 = scmp.ge.s32.totalorder %s5931_s14, 2  ;;  %s5597_s24 = sand.u32 1, %s5919_s11  }
 0x4ba   : > { %s5598_s27 = scalar_lea.sflag [#allocation4], %s5597_s24 }
 0x4bb   : > { %p5660_p0 = pnand %p5663_p13, %p6033_p6 }
 0x4bd   : > { %p5661_p1 = pneg %p5660_p0 }
 0x4bf   : > { %5914 = dma.done.wait (%p5661_p1), %s5598_s27, 64  }
 0x4c0   : > { %5916 = vsyncadd (%p5661_p1), %s5598_s27, 4294967232  ;;  %p21_p2 = scmp.ge.s32.totalorder %s6016_s16, 6   ;;  %s8825_s11 = smov %s5923_s12 }
 0x4c1   : > { %s8826_s12 = smov %s5927_s13  ;;  %s8827_s13 = smov %s6027_s19 }
 0x4c2   : > { %s8828_s14 = smov %s6016_s16  ;;  %23 = sbr.rel (!%p21_p2) target bundleno = 6 (0x6), region = 91 }
 0x4c7   :  { %5603 = vsyncpa [#allocation4], 1 }
 0x4c8   :  { %5605 = vsyncpa [#allocation4 + $0x1], 1 }

</bundles_post_ra>
